<compile_context>
chip_gen: v6e
topology: v6e:2x2x1
jax: 0.10.0
libtpu: 0.0.40
codegen_flags: <defaults>
</compile_context>

<pallas_src>
import numpy as np
import jax
import jax.numpy as jnp
from jax.experimental import pallas as pl
from jax.experimental.pallas import tpu as pltpu

EPS = 1e-5


# ----------------------------------------------------------------------------
# Fully fused forward kernel (per grid step: Bt samples)
# ----------------------------------------------------------------------------
def make_fused_kernel(Bt, H, W, EP, NPAD):
    assert H == 16 and W == 16, "kernel specialised for 16x16 greyscale inputs"
    H2, W2 = H // 2, W // 2          # 8, 8   (after pool1)
    H3, W3 = H // 4, W // 4          # 4, 4   (after pool2)
    PW3 = 8                          # stage-3 patch width widened to the sublane tile
    C1, C2, C3 = 32, 64, 128
    RPS = 4                          # pooled rows per stage-1 strip (8 conv rows / strip)
    SR = 2 * RPS
    NSTRIP = H2 // RPS               # 2 strips
    f32 = jnp.float32
    bf16 = jnp.bfloat16

    def kernel(x_ref, extra_ref,
               w1_ref, s1_ref, t1_ref,
               w2_ref, s2_ref, t2_ref,
               w3_ref, s3_ref, t3_ref,
               fw1f_ref, fw1e_ref, s4_ref, t4_ref,
               fw2_ref, s5_ref, t5_ref,
               fw3_ref, b3_ref,
               o_ref,
               rs1, x2p, rs2, x3p, c2col, c3col):
        # Zero the small padded activation buffers (borders give SAME padding; this also
        # guarantees the widened stage-3 columns >= W3+1 are zero).
        x2p[...] = jnp.zeros(x2p.shape, f32)
        x3p[...] = jnp.zeros(x3p.shape, f32)

        # ---------- stage 1: conv1 (1->32, 3x3 SAME) + bn1 + relu + 2x2 maxpool ----------
        # Cin == 1 -> pure VPU broadcast FMA (a K=1 matmul would waste the MXU), f32.
        # 4 pooled rows per strip; W-pool = one strided read pair + one block store.
        w1taps = [w1_ref[t:t + 1, :] for t in range(9)]               # 9 x (1, 32)
        s1 = s1_ref[...]
        t1 = t1_ref[...]
        for i in range(NSTRIP):
            r0 = i * SR
            acc = jnp.zeros((Bt, SR, W, C1), f32)
            for dy in range(3):
                for dx in range(3):
                    patch = x_ref[:, r0 + dy:r0 + dy + SR, dx:dx + W, :]   # (Bt,8,W,1)
                    acc = acc + patch * w1taps[dy * 3 + dx]
            y = jnp.maximum(acc * s1 + t1, 0.0)                       # (Bt, 8, W, 32)
            yr = y.reshape(Bt * RPS, 2, W, C1)
            yh = jnp.maximum(yr[:, 0], yr[:, 1])                      # H-direction max
            rs1[...] = yh.reshape(Bt * RPS * W, C1)
            pooled = jnp.maximum(rs1[pl.ds(0, Bt * RPS * W2, stride=2), :],
                                 rs1[pl.ds(1, Bt * RPS * W2, stride=2), :])
            x2p[:, 1 + i * RPS:1 + (i + 1) * RPS, 1:W2 + 1, :] = (
                pooled.reshape(Bt, RPS, W2, C1))

        # ---------- stage 2: conv2 (32->64) + bn2 + relu + 2x2 maxpool ----------
        # im2col: 9 lane-offset stores assemble the K=288 LHS, then ONE bf16 matmul.
        for dy in range(3):
            for dx in range(3):
                t = dy * 3 + dx
                patch = x2p[:, dy:dy + H2, dx:dx + W2, :]             # (Bt,8,8,32)
                c2col[:, t * C1:(t + 1) * C1] = patch.reshape(Bt * H2 * W2, C1)
        y2 = jnp.dot(c2col[...].astype(bf16), w2_ref[...],
                     preferred_element_type=f32)                      # (Bt*64, 64)
        y2 = jnp.maximum(y2 * s2_ref[...] + t2_ref[...], 0.0)
        y2r = y2.reshape(Bt * H3, 2, W2, C2)
        yh2 = jnp.maximum(y2r[:, 0], y2r[:, 1])                       # (Bt*H3, 8, 64)
        rs2[...] = yh2.reshape(Bt * H3 * W2, C2)
        pooled2 = jnp.maximum(rs2[pl.ds(0, Bt * H3 * W3, stride=2), :],
                              rs2[pl.ds(1, Bt * H3 * W3, stride=2), :])
        x3p[:, 1:H3 + 1, 1:W3 + 1, :] = pooled2.reshape(Bt, H3, W3, C2)

        # ---------- stage 3: conv3 (64->128) + bn3 + relu + global avg pool ----------
        # Patch width widened to 8 sublanes (x3p cols >= W3+1 are zero); the extra output
        # columns are discarded before the pool.  Same im2col trick, one K=576 bf16 matmul.
        for dy in range(3):
            for dx in range(3):
                t = dy * 3 + dx
                patch = x3p[:, dy:dy + H3, dx:dx + PW3, :]            # (Bt,4,8,64)
                c3col[:, t * C2:(t + 1) * C2] = patch.reshape(Bt * H3 * PW3, C2)
        y3 = jnp.dot(c3col[...].astype(bf16), w3_ref[...],
                     preferred_element_type=f32)                      # (Bt*32, 128)
        y3 = jnp.maximum(y3 * s3_ref[...] + t3_ref[...], 0.0)
        y3r = y3.reshape(Bt, H3, PW3, C3)[:, :, :W3, :]               # (Bt,4,4,128) valid
        hsum = y3r[:, 0]
        for hh in range(1, H3):
            hsum = hsum + y3r[:, hh]                                  # (Bt, W3, 128)
        feat = jnp.sum(hsum, axis=1) * (1.0 / (H3 * W3))              # (Bt, 128)

        # ---------- head: fc1+bn4+relu -> fc2+bn5+relu -> fc3 (bf16 MXU, f32 acc) ----------
        feat_b = feat.astype(bf16)
        extra_b = extra_ref[...].reshape(Bt, EP).astype(bf16)
        h = jnp.dot(feat_b, fw1f_ref[...], preferred_element_type=f32)
        h = h + jnp.dot(extra_b, fw1e_ref[...], preferred_element_type=f32)
        h = jnp.maximum(h * s4_ref[...] + t4_ref[...], 0.0)
        # TODO(synk): dropout1 (p=0.3) is identity in eval/inference mode (no RNG masking).
        h = jnp.dot(h.astype(bf16), fw2_ref[...], preferred_element_type=f32)
        h = jnp.maximum(h * s5_ref[...] + t5_ref[...], 0.0)
        # TODO(synk): dropout2 (p=0.3) is identity in eval/inference mode (no RNG masking).
        logits = jnp.dot(h.astype(bf16), fw3_ref[...],
                         preferred_element_type=f32) + b3_ref[...]    # (Bt, 128) padded N
        o_ref[...] = logits.reshape(Bt, 1, NPAD)

    scratch_shapes = [
        pltpu.VMEM((Bt * RPS * W, C1), f32),            # rs1: stage-1 W-pool scratch
        pltpu.VMEM((Bt, H2 + 2, W2 + 2, C1), f32),      # x2p: padded stage-2 input
        pltpu.VMEM((Bt * H3 * W2, C2), f32),            # rs2: stage-2 W-pool scratch
        pltpu.VMEM((Bt, H3 + 2, PW3 + 2, C2), f32),     # x3p: padded (widened) stage-3 input
        pltpu.VMEM((Bt * H2 * W2, 9 * C1), f32),        # c2col: stage-2 im2col buffer
        pltpu.VMEM((Bt * H3 * PW3, 9 * C2), f32),       # c3col: stage-3 im2col buffer
    ]
    return kernel, scratch_shapes


def simple_image_cnn_forward(x_nchw, extra_features, p):
    x = jnp.transpose(x_nchw, (0, 2, 3, 1)).astype(jnp.float32)      # NCHW -> NHWC
    B, H, W, Cin = x.shape
    assert Cin == 1
    xp = jnp.pad(x, ((0, 0), (1, 1), (1, 1), (0, 0)))                # single pad of raw input

    num_labels = p["fw3"].shape[1]
    extra_dim = extra_features.shape[1]
    assert extra_dim > 0
    EP = max(8, ((extra_dim + 7) // 8) * 8)                          # pad ragged K=4 -> 8
    NPAD = 128                                                       # lane-dense fc3 output
    bf16 = jnp.bfloat16

    # (B,1,EP) / (B,1,NPAD) so block last-two dims always equal the full array dims.
    extra_p = jnp.pad(extra_features.astype(jnp.float32),
                      ((0, 0), (0, EP - extra_dim))).reshape(B, 1, EP)

    # Host-side weight restructuring: im2col weight layouts + bf16 MXU operands.
    w1r = p["w1"].reshape(9, 32)                                     # stage-1 taps (VPU, f32)
    w2c = p["w2"].reshape(9 * 32, 64).astype(bf16)                   # (288, 64)
    w3c = p["w3"].reshape(9 * 64, 128).astype(bf16)                  # (576, 128)
    fw1_feat = p["fw1"][:128].astype(bf16)                           # (128, 128)
    fw1_extra = jnp.pad(p["fw1"][128:],
                        ((0, EP - extra_dim), (0, 0))).astype(bf16)  # (EP, 128)
    fw2b = p["fw2"].astype(bf16)
    fw3p = jnp.pad(p["fw3"], ((0, 0), (0, NPAD - num_labels))).astype(bf16)
    fb3p = jnp.pad(p["fb3"], ((0, 0), (0, NPAD - num_labels)))       # f32 bias/shift

    # 2-way batch split -> "parallel" grid axis (uses the 2nd TensorCore on v7x;
    # near-neutral on v5e/v6e). Weights keep a constant index_map so they stay resident.
    G = 2 if (B % 2 == 0 and B >= 2) else 1
    Bt = B // G

    kernel, scratch_shapes = make_fused_kernel(Bt, H, W, EP, NPAD)

    batch_args = (xp, extra_p)
    weight_args = (w1r, p["s1"], p["t1"],
                   w2c, p["s2"], p["t2"],
                   w3c, p["s3"], p["t3"],
                   fw1_feat, fw1_extra, p["fs4"], p["ft4"],
                   fw2b, p["fs5"], p["ft5"],
                   fw3p, fb3p)

    def batch_spec(a):
        blk = (Bt,) + a.shape[1:]
        return pl.BlockSpec(blk, lambda i, _nd=a.ndim: (i,) + (0,) * (_nd - 1))

    def const_spec(a):
        return pl.BlockSpec(a.shape, lambda i, _nd=a.ndim: (0,) * _nd)

    out = pl.pallas_call(
        kernel,
        out_shape=jax.ShapeDtypeStruct((B, 1, NPAD), jnp.float32),
        grid_spec=pltpu.PrefetchScalarGridSpec(
            num_scalar_prefetch=0,
            grid=(G,),
            in_specs=[batch_spec(a) for a in batch_args]
                     + [const_spec(a) for a in weight_args],
            out_specs=pl.BlockSpec((Bt, 1, NPAD), lambda i: (i, 0, 0)),
            scratch_shapes=scratch_shapes,
        ),
        compiler_params=pltpu.CompilerParams(
            dimension_semantics=("parallel",)),
    )(*batch_args, *weight_args)
    return out[:, 0, :num_labels]


# ----------------------------------------------------------------------------
# Deterministic parameter construction (synthetic weights, BN folded for eval)
# ----------------------------------------------------------------------------
def init_params(key, num_labels=10, extra_features_dim=4):
    keys = iter(jax.random.split(key, 40))
    nk = lambda: next(keys)

    def bn_fold(c, bias):
        gamma = 1.0 + 0.1 * jax.random.normal(nk(), (c,), jnp.float32)
        beta = 0.1 * jax.random.normal(nk(), (c,), jnp.float32)
        run_mean = 0.1 * jax.random.normal(nk(), (c,), jnp.float32)
        run_var = 1.0 + 0.5 * jax.random.uniform(nk(), (c,), jnp.float32)
        s = gamma / jnp.sqrt(run_var + EPS)
        t = beta - run_mean * s + bias * s
        return s.reshape(1, c), t.reshape(1, c)

    def conv_layer(cin, cout):
        w = jax.random.normal(nk(), (3, 3, cin, cout), jnp.float32) / np.sqrt(9.0 * cin)
        b = 0.05 * jax.random.normal(nk(), (cout,), jnp.float32)
        s, t = bn_fold(cout, b)
        return w, s, t

    def fc_bn_layer(din, dout):
        w = jax.random.normal(nk(), (din, dout), jnp.float32) / np.sqrt(float(din))
        b = 0.05 * jax.random.normal(nk(), (dout,), jnp.float32)
        s, t = bn_fold(dout, b)
        return w, s, t

    p = {}
    p["w1"], p["s1"], p["t1"] = conv_layer(1, 32)
    p["w2"], p["s2"], p["t2"] = conv_layer(32, 64)
    p["w3"], p["s3"], p["t3"] = conv_layer(64, 128)
    fc_in = 128 + extra_features_dim
    p["fw1"], p["fs4"], p["ft4"] = fc_bn_layer(fc_in, 128)
    p["fw2"], p["fs5"], p["ft5"] = fc_bn_layer(128, 64)
    p["fw3"] = jax.random.normal(nk(), (64, num_labels), jnp.float32) / np.sqrt(64.0)
    p["fb3"] = (0.05 * jax.random.normal(nk(), (num_labels,), jnp.float32)
                ).reshape(1, num_labels)
    return p


# ----------------------------------------------------------------------------
# Pure-JAX reference (same folded-BN eval semantics), full-f32 precision
# ----------------------------------------------------------------------------
def reference_forward(x_nhwc, extra, p):
    HI = jax.lax.Precision.HIGHEST

    def conv_bn_relu(x, w, s, t):
        y = jax.lax.conv_general_dilated(
            x, w, window_strides=(1, 1), padding="SAME",
            dimension_numbers=("NHWC", "HWIO", "NHWC"), precision=HI)
        return jnp.maximum(y * s + t, 0.0)

    def maxpool(x):
        return jax.lax.reduce_window(x, -jnp.inf, jax.lax.max,
                                     (1, 2, 2, 1), (1, 2, 2, 1), "VALID")

    y = maxpool(conv_bn_relu(x_nhwc, p["w1"], p["s1"], p["t1"]))
    y = maxpool(conv_bn_relu(y, p["w2"], p["s2"], p["t2"]))
    y = conv_bn_relu(y, p["w3"], p["s3"], p["t3"])
    feat = jnp.mean(y, axis=(1, 2))
    h = jnp.concatenate([feat, extra.astype(jnp.float32)], axis=1)
    h = jnp.maximum(jnp.dot(h, p["fw1"], precision=HI) * p["fs4"] + p["ft4"], 0.0)
    h = jnp.maximum(jnp.dot(h, p["fw2"], precision=HI) * p["fs5"] + p["ft5"], 0.0)
    return jnp.dot(h, p["fw3"], precision=HI) + p["fb3"]


if __name__ == "__main__":
    num_labels, extra_dim = 10, 4
    B, H, W = 2, 16, 16

    root = jax.random.PRNGKey(0)
    kx, ke, kp = jax.random.split(root, 3)
    x_nchw = jax.random.normal(kx, (B, 1, H, W), jnp.float32)     # PyTorch NCHW input
    extra = jax.random.normal(ke, (B, extra_dim), jnp.float32)
    params = init_params(kp, num_labels, extra_dim)

    out = simple_image_cnn_forward(x_nchw, extra, params)
    out = jax.block_until_ready(out)
    assert out.shape == (B, num_labels)

    ref = reference_forward(jnp.transpose(x_nchw, (0, 2, 3, 1)), extra, params)
    ref = jax.block_until_ready(ref)
    # Tolerance loosened vs. the all-f32 version: conv2/conv3/fc matmuls use bf16 operands
    # (f32 accumulation) on the bf16-native MXU.
    np.testing.assert_allclose(np.asarray(out), np.asarray(ref), rtol=5e-2, atol=5e-2)

    print("KERNEL_OK")
</pallas_src>

<mosaic_0001>
module attributes {stable_mosaic.version = 11 : i64} {
  func.func @kernel(%arg0: i32, %arg1: memref<1x18x18x1xf32, #tpu.memory_space<vmem>>, %arg2: memref<1x1x8xf32, #tpu.memory_space<vmem>>, %arg3: memref<9x32xf32, #tpu.memory_space<vmem>>, %arg4: memref<1x32xf32, #tpu.memory_space<vmem>>, %arg5: memref<1x32xf32, #tpu.memory_space<vmem>>, %arg6: memref<288x64xbf16, #tpu.memory_space<vmem>>, %arg7: memref<1x64xf32, #tpu.memory_space<vmem>>, %arg8: memref<1x64xf32, #tpu.memory_space<vmem>>, %arg9: memref<576x128xbf16, #tpu.memory_space<vmem>>, %arg10: memref<1x128xf32, #tpu.memory_space<vmem>>, %arg11: memref<1x128xf32, #tpu.memory_space<vmem>>, %arg12: memref<128x128xbf16, #tpu.memory_space<vmem>>, %arg13: memref<8x128xbf16, #tpu.memory_space<vmem>>, %arg14: memref<1x128xf32, #tpu.memory_space<vmem>>, %arg15: memref<1x128xf32, #tpu.memory_space<vmem>>, %arg16: memref<128x64xbf16, #tpu.memory_space<vmem>>, %arg17: memref<1x64xf32, #tpu.memory_space<vmem>>, %arg18: memref<1x64xf32, #tpu.memory_space<vmem>>, %arg19: memref<64x128xbf16, #tpu.memory_space<vmem>>, %arg20: memref<1x128xf32, #tpu.memory_space<vmem>>, %arg21: memref<1x1x128xf32, #tpu.memory_space<vmem>>, %arg22: memref<64x32xf32, #tpu.memory_space<vmem>>, %arg23: memref<1x10x10x32xf32, #tpu.memory_space<vmem>>, %arg24: memref<32x64xf32, #tpu.memory_space<vmem>>, %arg25: memref<1x6x10x64xf32, #tpu.memory_space<vmem>>, %arg26: memref<64x288xf32, #tpu.memory_space<vmem>>, %arg27: memref<32x576xf32, #tpu.memory_space<vmem>>) attributes {dimension_semantics = [#tpu.dimension_semantics<parallel>], iteration_bounds = array<i64: 2>, scalar_prefetch = 0 : i64, scratch_operands = 6 : i64, tpu.core_type = #tpu.core_type<tc>, window_params = [{transform_indices = @transform_0, window_bounds = array<i64: 1, 18, 18, 1>}, {transform_indices = @transform_1, window_bounds = array<i64: 1, 1, 8>}, {pipeline_mode = #tpu.pipeline_mode<synchronous>, transform_indices = @transform_2, window_bounds = array<i64: 9, 32>}, {pipeline_mode = #tpu.pipeline_mode<synchronous>, transform_indices = @transform_3, window_bounds = array<i64: 1, 32>}, {pipeline_mode = #tpu.pipeline_mode<synchronous>, transform_indices = @transform_4, window_bounds = array<i64: 1, 32>}, {pipeline_mode = #tpu.pipeline_mode<synchronous>, transform_indices = @transform_5, window_bounds = array<i64: 288, 64>}, {pipeline_mode = #tpu.pipeline_mode<synchronous>, transform_indices = @transform_6, window_bounds = array<i64: 1, 64>}, {pipeline_mode = #tpu.pipeline_mode<synchronous>, transform_indices = @transform_7, window_bounds = array<i64: 1, 64>}, {pipeline_mode = #tpu.pipeline_mode<synchronous>, transform_indices = @transform_8, window_bounds = array<i64: 576, 128>}, {pipeline_mode = #tpu.pipeline_mode<synchronous>, transform_indices = @transform_9, window_bounds = array<i64: 1, 128>}, {pipeline_mode = #tpu.pipeline_mode<synchronous>, transform_indices = @transform_10, window_bounds = array<i64: 1, 128>}, {pipeline_mode = #tpu.pipeline_mode<synchronous>, transform_indices = @transform_11, window_bounds = array<i64: 128, 128>}, {pipeline_mode = #tpu.pipeline_mode<synchronous>, transform_indices = @transform_12, window_bounds = array<i64: 8, 128>}, {pipeline_mode = #tpu.pipeline_mode<synchronous>, transform_indices = @transform_13, window_bounds = array<i64: 1, 128>}, {pipeline_mode = #tpu.pipeline_mode<synchronous>, transform_indices = @transform_14, window_bounds = array<i64: 1, 128>}, {pipeline_mode = #tpu.pipeline_mode<synchronous>, transform_indices = @transform_15, window_bounds = array<i64: 128, 64>}, {pipeline_mode = #tpu.pipeline_mode<synchronous>, transform_indices = @transform_16, window_bounds = array<i64: 1, 64>}, {pipeline_mode = #tpu.pipeline_mode<synchronous>, transform_indices = @transform_17, window_bounds = array<i64: 1, 64>}, {pipeline_mode = #tpu.pipeline_mode<synchronous>, transform_indices = @transform_18, window_bounds = array<i64: 64, 128>}, {pipeline_mode = #tpu.pipeline_mode<synchronous>, transform_indices = @transform_19, window_bounds = array<i64: 1, 128>}, {transform_indices = @transform_20, window_bounds = array<i64: 1, 1, 128>}]} {
    %cst = arith.constant 0.000000e+00 : f32
    %0 = vector.broadcast %cst : f32 to vector<1x10x10x32xf32>
    %c0 = arith.constant 0 : index
    %c0_0 = arith.constant 0 : index
    %c0_1 = arith.constant 0 : index
    %c0_2 = arith.constant 0 : index
    %1 = vector.load %arg23[%c0, %c0_0, %c0_1, %c0_2] : memref<1x10x10x32xf32, #tpu.memory_space<vmem>>, vector<1x10x10x32xf32>
    tpu.vector_store %arg23[%c0, %c0_0, %c0_1, %c0_2], %0 {strides = array<i32>} : memref<1x10x10x32xf32, #tpu.memory_space<vmem>>, vector<1x10x10x32xf32>,
    %cst_3 = arith.constant 0.000000e+00 : f32
    %2 = vector.broadcast %cst_3 : f32 to vector<1x6x10x64xf32>
    %c0_4 = arith.constant 0 : index
    %c0_5 = arith.constant 0 : index
    %c0_6 = arith.constant 0 : index
    %c0_7 = arith.constant 0 : index
    %3 = vector.load %arg25[%c0_4, %c0_5, %c0_6, %c0_7] : memref<1x6x10x64xf32, #tpu.memory_space<vmem>>, vector<1x6x10x64xf32>
    tpu.vector_store %arg25[%c0_4, %c0_5, %c0_6, %c0_7], %2 {strides = array<i32>} : memref<1x6x10x64xf32, #tpu.memory_space<vmem>>, vector<1x6x10x64xf32>,
    %c0_8 = arith.constant 0 : index
    %c0_9 = arith.constant 0 : index
    %4 = vector.load %arg3[%c0_8, %c0_9] : memref<9x32xf32, #tpu.memory_space<vmem>>, vector<1x32xf32>
    %c1 = arith.constant 1 : index
    %c0_10 = arith.constant 0 : index
    %5 = vector.load %arg3[%c1, %c0_10] : memref<9x32xf32, #tpu.memory_space<vmem>>, vector<1x32xf32>
    %c2 = arith.constant 2 : index
    %c0_11 = arith.constant 0 : index
    %6 = vector.load %arg3[%c2, %c0_11] : memref<9x32xf32, #tpu.memory_space<vmem>>, vector<1x32xf32>
    %c3 = arith.constant 3 : index
    %c0_12 = arith.constant 0 : index
    %7 = vector.load %arg3[%c3, %c0_12] : memref<9x32xf32, #tpu.memory_space<vmem>>, vector<1x32xf32>
    %c4 = arith.constant 4 : index
    %c0_13 = arith.constant 0 : index
    %8 = vector.load %arg3[%c4, %c0_13] : memref<9x32xf32, #tpu.memory_space<vmem>>, vector<1x32xf32>
    %c5 = arith.constant 5 : index
    %c0_14 = arith.constant 0 : index
    %9 = vector.load %arg3[%c5, %c0_14] : memref<9x32xf32, #tpu.memory_space<vmem>>, vector<1x32xf32>
    %c6 = arith.constant 6 : index
    %c0_15 = arith.constant 0 : index
    %10 = vector.load %arg3[%c6, %c0_15] : memref<9x32xf32, #tpu.memory_space<vmem>>, vector<1x32xf32>
    %c7 = arith.constant 7 : index
    %c0_16 = arith.constant 0 : index
    %11 = vector.load %arg3[%c7, %c0_16] : memref<9x32xf32, #tpu.memory_space<vmem>>, vector<1x32xf32>
    %c8 = arith.constant 8 : index
    %c0_17 = arith.constant 0 : index
    %12 = vector.load %arg3[%c8, %c0_17] : memref<9x32xf32, #tpu.memory_space<vmem>>, vector<1x32xf32>
    %c0_18 = arith.constant 0 : index
    %c0_19 = arith.constant 0 : index
    %13 = vector.load %arg4[%c0_18, %c0_19] : memref<1x32xf32, #tpu.memory_space<vmem>>, vector<1x32xf32>
    %c0_20 = arith.constant 0 : index
    %c0_21 = arith.constant 0 : index
    %14 = vector.load %arg5[%c0_20, %c0_21] : memref<1x32xf32, #tpu.memory_space<vmem>>, vector<1x32xf32>
    %cst_22 = arith.constant 0.000000e+00 : f32
    %15 = vector.broadcast %cst_22 : f32 to vector<1x8x16x32xf32>
    %c0_23 = arith.constant 0 : index
    %c0_24 = arith.constant 0 : index
    %c0_25 = arith.constant 0 : index
    %c0_26 = arith.constant 0 : index
    %16 = vector.load %arg1[%c0_23, %c0_24, %c0_25, %c0_26] : memref<1x18x18x1xf32, #tpu.memory_space<vmem>>, vector<1x8x16x1xf32>
    %17 = vector.shape_cast %4 : vector<1x32xf32> to vector<1x1x1x32xf32>
    %18 = vector.broadcast %16 : vector<1x8x16x1xf32> to vector<1x8x16x32xf32>
    %19 = vector.broadcast %17 : vector<1x1x1x32xf32> to vector<1x8x16x32xf32>
    %20 = arith.mulf %18, %19 : vector<1x8x16x32xf32>
    %21 = arith.addf %15, %20 : vector<1x8x16x32xf32>
    %c0_27 = arith.constant 0 : index
    %c0_28 = arith.constant 0 : index
    %c1_29 = arith.constant 1 : index
    %c0_30 = arith.constant 0 : index
    %22 = vector.load %arg1[%c0_27, %c0_28, %c1_29, %c0_30] : memref<1x18x18x1xf32, #tpu.memory_space<vmem>>, vector<1x8x16x1xf32>
    %23 = vector.shape_cast %5 : vector<1x32xf32> to vector<1x1x1x32xf32>
    %24 = vector.broadcast %22 : vector<1x8x16x1xf32> to vector<1x8x16x32xf32>
    %25 = vector.broadcast %23 : vector<1x1x1x32xf32> to vector<1x8x16x32xf32>
    %26 = arith.mulf %24, %25 : vector<1x8x16x32xf32>
    %27 = arith.addf %21, %26 : vector<1x8x16x32xf32>
    %c0_31 = arith.constant 0 : index
    %c0_32 = arith.constant 0 : index
    %c2_33 = arith.constant 2 : index
    %c0_34 = arith.constant 0 : index
    %28 = vector.load %arg1[%c0_31, %c0_32, %c2_33, %c0_34] : memref<1x18x18x1xf32, #tpu.memory_space<vmem>>, vector<1x8x16x1xf32>
    %29 = vector.shape_cast %6 : vector<1x32xf32> to vector<1x1x1x32xf32>
    %30 = vector.broadcast %28 : vector<1x8x16x1xf32> to vector<1x8x16x32xf32>
    %31 = vector.broadcast %29 : vector<1x1x1x32xf32> to vector<1x8x16x32xf32>
    %32 = arith.mulf %30, %31 : vector<1x8x16x32xf32>
    %33 = arith.addf %27, %32 : vector<1x8x16x32xf32>
    %c0_35 = arith.constant 0 : index
    %c1_36 = arith.constant 1 : index
    %c0_37 = arith.constant 0 : index
    %c0_38 = arith.constant 0 : index
    %34 = vector.load %arg1[%c0_35, %c1_36, %c0_37, %c0_38] : memref<1x18x18x1xf32, #tpu.memory_space<vmem>>, vector<1x8x16x1xf32>
    %35 = vector.shape_cast %7 : vector<1x32xf32> to vector<1x1x1x32xf32>
    %36 = vector.broadcast %34 : vector<1x8x16x1xf32> to vector<1x8x16x32xf32>
    %37 = vector.broadcast %35 : vector<1x1x1x32xf32> to vector<1x8x16x32xf32>
    %38 = arith.mulf %36, %37 : vector<1x8x16x32xf32>
    %39 = arith.addf %33, %38 : vector<1x8x16x32xf32>
    %c0_39 = arith.constant 0 : index
    %c1_40 = arith.constant 1 : index
    %c1_41 = arith.constant 1 : index
    %c0_42 = arith.constant 0 : index
    %40 = vector.load %arg1[%c0_39, %c1_40, %c1_41, %c0_42] : memref<1x18x18x1xf32, #tpu.memory_space<vmem>>, vector<1x8x16x1xf32>
    %41 = vector.shape_cast %8 : vector<1x32xf32> to vector<1x1x1x32xf32>
    %42 = vector.broadcast %40 : vector<1x8x16x1xf32> to vector<1x8x16x32xf32>
    %43 = vector.broadcast %41 : vector<1x1x1x32xf32> to vector<1x8x16x32xf32>
    %44 = arith.mulf %42, %43 : vector<1x8x16x32xf32>
    %45 = arith.addf %39, %44 : vector<1x8x16x32xf32>
    %c0_43 = arith.constant 0 : index
    %c1_44 = arith.constant 1 : index
    %c2_45 = arith.constant 2 : index
    %c0_46 = arith.constant 0 : index
    %46 = vector.load %arg1[%c0_43, %c1_44, %c2_45, %c0_46] : memref<1x18x18x1xf32, #tpu.memory_space<vmem>>, vector<1x8x16x1xf32>
    %47 = vector.shape_cast %9 : vector<1x32xf32> to vector<1x1x1x32xf32>
    %48 = vector.broadcast %46 : vector<1x8x16x1xf32> to vector<1x8x16x32xf32>
    %49 = vector.broadcast %47 : vector<1x1x1x32xf32> to vector<1x8x16x32xf32>
    %50 = arith.mulf %48, %49 : vector<1x8x16x32xf32>
    %51 = arith.addf %45, %50 : vector<1x8x16x32xf32>
    %c0_47 = arith.constant 0 : index
    %c2_48 = arith.constant 2 : index
    %c0_49 = arith.constant 0 : index
    %c0_50 = arith.constant 0 : index
    %52 = vector.load %arg1[%c0_47, %c2_48, %c0_49, %c0_50] : memref<1x18x18x1xf32, #tpu.memory_space<vmem>>, vector<1x8x16x1xf32>
    %53 = vector.shape_cast %10 : vector<1x32xf32> to vector<1x1x1x32xf32>
    %54 = vector.broadcast %52 : vector<1x8x16x1xf32> to vector<1x8x16x32xf32>
    %55 = vector.broadcast %53 : vector<1x1x1x32xf32> to vector<1x8x16x32xf32>
    %56 = arith.mulf %54, %55 : vector<1x8x16x32xf32>
    %57 = arith.addf %51, %56 : vector<1x8x16x32xf32>
    %c0_51 = arith.constant 0 : index
    %c2_52 = arith.constant 2 : index
    %c1_53 = arith.constant 1 : index
    %c0_54 = arith.constant 0 : index
    %58 = vector.load %arg1[%c0_51, %c2_52, %c1_53, %c0_54] : memref<1x18x18x1xf32, #tpu.memory_space<vmem>>, vector<1x8x16x1xf32>
    %59 = vector.shape_cast %11 : vector<1x32xf32> to vector<1x1x1x32xf32>
    %60 = vector.broadcast %58 : vector<1x8x16x1xf32> to vector<1x8x16x32xf32>
    %61 = vector.broadcast %59 : vector<1x1x1x32xf32> to vector<1x8x16x32xf32>
    %62 = arith.mulf %60, %61 : vector<1x8x16x32xf32>
    %63 = arith.addf %57, %62 : vector<1x8x16x32xf32>
    %c0_55 = arith.constant 0 : index
    %c2_56 = arith.constant 2 : index
    %c2_57 = arith.constant 2 : index
    %c0_58 = arith.constant 0 : index
    %64 = vector.load %arg1[%c0_55, %c2_56, %c2_57, %c0_58] : memref<1x18x18x1xf32, #tpu.memory_space<vmem>>, vector<1x8x16x1xf32>
    %65 = vector.shape_cast %12 : vector<1x32xf32> to vector<1x1x1x32xf32>
    %66 = vector.broadcast %64 : vector<1x8x16x1xf32> to vector<1x8x16x32xf32>
    %67 = vector.broadcast %65 : vector<1x1x1x32xf32> to vector<1x8x16x32xf32>
    %68 = arith.mulf %66, %67 : vector<1x8x16x32xf32>
    %69 = arith.addf %63, %68 : vector<1x8x16x32xf32>
    %70 = vector.shape_cast %13 : vector<1x32xf32> to vector<1x1x1x32xf32>
    %71 = vector.broadcast %70 : vector<1x1x1x32xf32> to vector<1x8x16x32xf32>
    %72 = arith.mulf %69, %71 : vector<1x8x16x32xf32>
    %73 = vector.shape_cast %14 : vector<1x32xf32> to vector<1x1x1x32xf32>
    %74 = vector.broadcast %73 : vector<1x1x1x32xf32> to vector<1x8x16x32xf32>
    %75 = arith.addf %72, %74 : vector<1x8x16x32xf32>
    %cst_59 = arith.constant 0.000000e+00 : f32
    %76 = vector.broadcast %cst_59 : f32 to vector<1x8x16x32xf32>
    %77 = arith.maximumf %75, %76 : vector<1x8x16x32xf32>
    %78 = vector.shape_cast %77 : vector<1x8x16x32xf32> to vector<4x2x16x32xf32>
    %79 = vector.extract_strided_slice %78 {offsets = [0, 0, 0, 0], sizes = [4, 1, 16, 32], strides = [1, 1, 1, 1]} : vector<4x2x16x32xf32> to vector<4x1x16x32xf32>
    %80 = vector.shape_cast %79 : vector<4x1x16x32xf32> to vector<4x16x32xf32>
    %81 = vector.extract_strided_slice %78 {offsets = [0, 1, 0, 0], sizes = [4, 1, 16, 32], strides = [1, 1, 1, 1]} : vector<4x2x16x32xf32> to vector<4x1x16x32xf32>
    %82 = vector.shape_cast %81 : vector<4x1x16x32xf32> to vector<4x16x32xf32>
    %83 = arith.maximumf %80, %82 : vector<4x16x32xf32>
    %84 = vector.shape_cast %83 : vector<4x16x32xf32> to vector<64x32xf32>
    %c0_60 = arith.constant 0 : index
    %c0_61 = arith.constant 0 : index
    %85 = vector.load %arg22[%c0_60, %c0_61] : memref<64x32xf32, #tpu.memory_space<vmem>>, vector<64x32xf32>
    tpu.vector_store %arg22[%c0_60, %c0_61], %84 {strides = array<i32>} : memref<64x32xf32, #tpu.memory_space<vmem>>, vector<64x32xf32>,
    %c0_62 = arith.constant 0 : index
    %c0_63 = arith.constant 0 : index
    %86 = tpu.strided_load %arg22[%c0_62, %c0_63] {strides = array<i32: 2, 1>} : memref<64x32xf32, #tpu.memory_space<vmem>>, vector<32x32xf32>
    %c1_64 = arith.constant 1 : index
    %c0_65 = arith.constant 0 : index
    %87 = tpu.strided_load %arg22[%c1_64, %c0_65] {strides = array<i32: 2, 1>} : memref<64x32xf32, #tpu.memory_space<vmem>>, vector<32x32xf32>
    %88 = arith.maximumf %86, %87 : vector<32x32xf32>
    %89 = vector.shape_cast %88 : vector<32x32xf32> to vector<1x4x8x32xf32>
    %c0_66 = arith.constant 0 : index
    %c1_67 = arith.constant 1 : index
    %c1_68 = arith.constant 1 : index
    %c0_69 = arith.constant 0 : index
    %90 = vector.load %arg23[%c0_66, %c1_67, %c1_68, %c0_69] : memref<1x10x10x32xf32, #tpu.memory_space<vmem>>, vector<1x4x8x32xf32>
    tpu.vector_store %arg23[%c0_66, %c1_67, %c1_68, %c0_69], %89 {strides = array<i32>} : memref<1x10x10x32xf32, #tpu.memory_space<vmem>>, vector<1x4x8x32xf32>,
    %cst_70 = arith.constant 0.000000e+00 : f32
    %91 = vector.broadcast %cst_70 : f32 to vector<1x8x16x32xf32>
    %c0_71 = arith.constant 0 : index
    %c8_72 = arith.constant 8 : index
    %c0_73 = arith.constant 0 : index
    %c0_74 = arith.constant 0 : index
    %92 = vector.load %arg1[%c0_71, %c8_72, %c0_73, %c0_74] : memref<1x18x18x1xf32, #tpu.memory_space<vmem>>, vector<1x8x16x1xf32>
    %93 = vector.shape_cast %4 : vector<1x32xf32> to vector<1x1x1x32xf32>
    %94 = vector.broadcast %92 : vector<1x8x16x1xf32> to vector<1x8x16x32xf32>
    %95 = vector.broadcast %93 : vector<1x1x1x32xf32> to vector<1x8x16x32xf32>
    %96 = arith.mulf %94, %95 : vector<1x8x16x32xf32>
    %97 = arith.addf %91, %96 : vector<1x8x16x32xf32>
    %c0_75 = arith.constant 0 : index
    %c8_76 = arith.constant 8 : index
    %c1_77 = arith.constant 1 : index
    %c0_78 = arith.constant 0 : index
    %98 = vector.load %arg1[%c0_75, %c8_76, %c1_77, %c0_78] : memref<1x18x18x1xf32, #tpu.memory_space<vmem>>, vector<1x8x16x1xf32>
    %99 = vector.shape_cast %5 : vector<1x32xf32> to vector<1x1x1x32xf32>
    %100 = vector.broadcast %98 : vector<1x8x16x1xf32> to vector<1x8x16x32xf32>
    %101 = vector.broadcast %99 : vector<1x1x1x32xf32> to vector<1x8x16x32xf32>
    %102 = arith.mulf %100, %101 : vector<1x8x16x32xf32>
    %103 = arith.addf %97, %102 : vector<1x8x16x32xf32>
    %c0_79 = arith.constant 0 : index
    %c8_80 = arith.constant 8 : index
    %c2_81 = arith.constant 2 : index
    %c0_82 = arith.constant 0 : index
    %104 = vector.load %arg1[%c0_79, %c8_80, %c2_81, %c0_82] : memref<1x18x18x1xf32, #tpu.memory_space<vmem>>, vector<1x8x16x1xf32>
    %105 = vector.shape_cast %6 : vector<1x32xf32> to vector<1x1x1x32xf32>
    %106 = vector.broadcast %104 : vector<1x8x16x1xf32> to vector<1x8x16x32xf32>
    %107 = vector.broadcast %105 : vector<1x1x1x32xf32> to vector<1x8x16x32xf32>
    %108 = arith.mulf %106, %107 : vector<1x8x16x32xf32>
    %109 = arith.addf %103, %108 : vector<1x8x16x32xf32>
    %c0_83 = arith.constant 0 : index
    %c9 = arith.constant 9 : index
    %c0_84 = arith.constant 0 : index
    %c0_85 = arith.constant 0 : index
    %110 = vector.load %arg1[%c0_83, %c9, %c0_84, %c0_85] : memref<1x18x18x1xf32, #tpu.memory_space<vmem>>, vector<1x8x16x1xf32>
    %111 = vector.shape_cast %7 : vector<1x32xf32> to vector<1x1x1x32xf32>
    %112 = vector.broadcast %110 : vector<1x8x16x1xf32> to vector<1x8x16x32xf32>
    %113 = vector.broadcast %111 : vector<1x1x1x32xf32> to vector<1x8x16x32xf32>
    %114 = arith.mulf %112, %113 : vector<1x8x16x32xf32>
    %115 = arith.addf %109, %114 : vector<1x8x16x32xf32>
    %c0_86 = arith.constant 0 : index
    %c9_87 = arith.constant 9 : index
    %c1_88 = arith.constant 1 : index
    %c0_89 = arith.constant 0 : index
    %116 = vector.load %arg1[%c0_86, %c9_87, %c1_88, %c0_89] : memref<1x18x18x1xf32, #tpu.memory_space<vmem>>, vector<1x8x16x1xf32>
    %117 = vector.shape_cast %8 : vector<1x32xf32> to vector<1x1x1x32xf32>
    %118 = vector.broadcast %116 : vector<1x8x16x1xf32> to vector<1x8x16x32xf32>
    %119 = vector.broadcast %117 : vector<1x1x1x32xf32> to vector<1x8x16x32xf32>
    %120 = arith.mulf %118, %119 : vector<1x8x16x32xf32>
    %121 = arith.addf %115, %120 : vector<1x8x16x32xf32>
    %c0_90 = arith.constant 0 : index
    %c9_91 = arith.constant 9 : index
    %c2_92 = arith.constant 2 : index
    %c0_93 = arith.constant 0 : index
    %122 = vector.load %arg1[%c0_90, %c9_91, %c2_92, %c0_93] : memref<1x18x18x1xf32, #tpu.memory_space<vmem>>, vector<1x8x16x1xf32>
    %123 = vector.shape_cast %9 : vector<1x32xf32> to vector<1x1x1x32xf32>
    %124 = vector.broadcast %122 : vector<1x8x16x1xf32> to vector<1x8x16x32xf32>
    %125 = vector.broadcast %123 : vector<1x1x1x32xf32> to vector<1x8x16x32xf32>
    %126 = arith.mulf %124, %125 : vector<1x8x16x32xf32>
    %127 = arith.addf %121, %126 : vector<1x8x16x32xf32>
    %c0_94 = arith.constant 0 : index
    %c10 = arith.constant 10 : index
    %c0_95 = arith.constant 0 : index
    %c0_96 = arith.constant 0 : index
    %128 = vector.load %arg1[%c0_94, %c10, %c0_95, %c0_96] : memref<1x18x18x1xf32, #tpu.memory_space<vmem>>, vector<1x8x16x1xf32>
    %129 = vector.shape_cast %10 : vector<1x32xf32> to vector<1x1x1x32xf32>
    %130 = vector.broadcast %128 : vector<1x8x16x1xf32> to vector<1x8x16x32xf32>
    %131 = vector.broadcast %129 : vector<1x1x1x32xf32> to vector<1x8x16x32xf32>
    %132 = arith.mulf %130, %131 : vector<1x8x16x32xf32>
    %133 = arith.addf %127, %132 : vector<1x8x16x32xf32>
    %c0_97 = arith.constant 0 : index
    %c10_98 = arith.constant 10 : index
    %c1_99 = arith.constant 1 : index
    %c0_100 = arith.constant 0 : index
    %134 = vector.load %arg1[%c0_97, %c10_98, %c1_99, %c0_100] : memref<1x18x18x1xf32, #tpu.memory_space<vmem>>, vector<1x8x16x1xf32>
    %135 = vector.shape_cast %11 : vector<1x32xf32> to vector<1x1x1x32xf32>
    %136 = vector.broadcast %134 : vector<1x8x16x1xf32> to vector<1x8x16x32xf32>
    %137 = vector.broadcast %135 : vector<1x1x1x32xf32> to vector<1x8x16x32xf32>
    %138 = arith.mulf %136, %137 : vector<1x8x16x32xf32>
    %139 = arith.addf %133, %138 : vector<1x8x16x32xf32>
    %c0_101 = arith.constant 0 : index
    %c10_102 = arith.constant 10 : index
    %c2_103 = arith.constant 2 : index
    %c0_104 = arith.constant 0 : index
    %140 = vector.load %arg1[%c0_101, %c10_102, %c2_103, %c0_104] : memref<1x18x18x1xf32, #tpu.memory_space<vmem>>, vector<1x8x16x1xf32>
    %141 = vector.shape_cast %12 : vector<1x32xf32> to vector<1x1x1x32xf32>
    %142 = vector.broadcast %140 : vector<1x8x16x1xf32> to vector<1x8x16x32xf32>
    %143 = vector.broadcast %141 : vector<1x1x1x32xf32> to vector<1x8x16x32xf32>
    %144 = arith.mulf %142, %143 : vector<1x8x16x32xf32>
    %145 = arith.addf %139, %144 : vector<1x8x16x32xf32>
    %146 = vector.shape_cast %13 : vector<1x32xf32> to vector<1x1x1x32xf32>
    %147 = vector.broadcast %146 : vector<1x1x1x32xf32> to vector<1x8x16x32xf32>
    %148 = arith.mulf %145, %147 : vector<1x8x16x32xf32>
    %149 = vector.shape_cast %14 : vector<1x32xf32> to vector<1x1x1x32xf32>
    %150 = vector.broadcast %149 : vector<1x1x1x32xf32> to vector<1x8x16x32xf32>
    %151 = arith.addf %148, %150 : vector<1x8x16x32xf32>
    %cst_105 = arith.constant 0.000000e+00 : f32
    %152 = vector.broadcast %cst_105 : f32 to vector<1x8x16x32xf32>
    %153 = arith.maximumf %151, %152 : vector<1x8x16x32xf32>
    %154 = vector.shape_cast %153 : vector<1x8x16x32xf32> to vector<4x2x16x32xf32>
    %155 = vector.extract_strided_slice %154 {offsets = [0, 0, 0, 0], sizes = [4, 1, 16, 32], strides = [1, 1, 1, 1]} : vector<4x2x16x32xf32> to vector<4x1x16x32xf32>
    %156 = vector.shape_cast %155 : vector<4x1x16x32xf32> to vector<4x16x32xf32>
    %157 = vector.extract_strided_slice %154 {offsets = [0, 1, 0, 0], sizes = [4, 1, 16, 32], strides = [1, 1, 1, 1]} : vector<4x2x16x32xf32> to vector<4x1x16x32xf32>
    %158 = vector.shape_cast %157 : vector<4x1x16x32xf32> to vector<4x16x32xf32>
    %159 = arith.maximumf %156, %158 : vector<4x16x32xf32>
    %160 = vector.shape_cast %159 : vector<4x16x32xf32> to vector<64x32xf32>
    %c0_106 = arith.constant 0 : index
    %c0_107 = arith.constant 0 : index
    %161 = vector.load %arg22[%c0_106, %c0_107] : memref<64x32xf32, #tpu.memory_space<vmem>>, vector<64x32xf32>
    tpu.vector_store %arg22[%c0_106, %c0_107], %160 {strides = array<i32>} : memref<64x32xf32, #tpu.memory_space<vmem>>, vector<64x32xf32>,
    %c0_108 = arith.constant 0 : index
    %c0_109 = arith.constant 0 : index
    %162 = tpu.strided_load %arg22[%c0_108, %c0_109] {strides = array<i32: 2, 1>} : memref<64x32xf32, #tpu.memory_space<vmem>>, vector<32x32xf32>
    %c1_110 = arith.constant 1 : index
    %c0_111 = arith.constant 0 : index
    %163 = tpu.strided_load %arg22[%c1_110, %c0_111] {strides = array<i32: 2, 1>} : memref<64x32xf32, #tpu.memory_space<vmem>>, vector<32x32xf32>
    %164 = arith.maximumf %162, %163 : vector<32x32xf32>
    %165 = vector.shape_cast %164 : vector<32x32xf32> to vector<1x4x8x32xf32>
    %c0_112 = arith.constant 0 : index
    %c5_113 = arith.constant 5 : index
    %c1_114 = arith.constant 1 : index
    %c0_115 = arith.constant 0 : index
    %166 = vector.load %arg23[%c0_112, %c5_113, %c1_114, %c0_115] : memref<1x10x10x32xf32, #tpu.memory_space<vmem>>, vector<1x4x8x32xf32>
    tpu.vector_store %arg23[%c0_112, %c5_113, %c1_114, %c0_115], %165 {strides = array<i32>} : memref<1x10x10x32xf32, #tpu.memory_space<vmem>>, vector<1x4x8x32xf32>,
    %c0_116 = arith.constant 0 : index
    %c0_117 = arith.constant 0 : index
    %c0_118 = arith.constant 0 : index
    %c0_119 = arith.constant 0 : index
    %167 = vector.load %arg23[%c0_116, %c0_117, %c0_118, %c0_119] : memref<1x10x10x32xf32, #tpu.memory_space<vmem>>, vector<1x8x8x32xf32>
    %168 = vector.shape_cast %167 : vector<1x8x8x32xf32> to vector<64x32xf32>
    %c0_120 = arith.constant 0 : index
    %c0_121 = arith.constant 0 : index
    %169 = vector.load %arg26[%c0_120, %c0_121] : memref<64x288xf32, #tpu.memory_space<vmem>>, vector<64x32xf32>
    tpu.vector_store %arg26[%c0_120, %c0_121], %168 {strides = array<i32>} : memref<64x288xf32, #tpu.memory_space<vmem>>, vector<64x32xf32>,
    %c0_122 = arith.constant 0 : index
    %c0_123 = arith.constant 0 : index
    %c1_124 = arith.constant 1 : index
    %c0_125 = arith.constant 0 : index
    %170 = vector.load %arg23[%c0_122, %c0_123, %c1_124, %c0_125] : memref<1x10x10x32xf32, #tpu.memory_space<vmem>>, vector<1x8x8x32xf32>
    %171 = vector.shape_cast %170 : vector<1x8x8x32xf32> to vector<64x32xf32>
    %c0_126 = arith.constant 0 : index
    %c32 = arith.constant 32 : index
    %172 = vector.load %arg26[%c0_126, %c32] : memref<64x288xf32, #tpu.memory_space<vmem>>, vector<64x32xf32>
    tpu.vector_store %arg26[%c0_126, %c32], %171 {strides = array<i32>} : memref<64x288xf32, #tpu.memory_space<vmem>>, vector<64x32xf32>,
    %c0_127 = arith.constant 0 : index
    %c0_128 = arith.constant 0 : index
    %c2_129 = arith.constant 2 : index
    %c0_130 = arith.constant 0 : index
    %173 = vector.load %arg23[%c0_127, %c0_128, %c2_129, %c0_130] : memref<1x10x10x32xf32, #tpu.memory_space<vmem>>, vector<1x8x8x32xf32>
    %174 = vector.shape_cast %173 : vector<1x8x8x32xf32> to vector<64x32xf32>
    %c0_131 = arith.constant 0 : index
    %c64 = arith.constant 64 : index
    %175 = vector.load %arg26[%c0_131, %c64] : memref<64x288xf32, #tpu.memory_space<vmem>>, vector<64x32xf32>
    tpu.vector_store %arg26[%c0_131, %c64], %174 {strides = array<i32>} : memref<64x288xf32, #tpu.memory_space<vmem>>, vector<64x32xf32>,
    %c0_132 = arith.constant 0 : index
    %c1_133 = arith.constant 1 : index
    %c0_134 = arith.constant 0 : index
    %c0_135 = arith.constant 0 : index
    %176 = vector.load %arg23[%c0_132, %c1_133, %c0_134, %c0_135] : memref<1x10x10x32xf32, #tpu.memory_space<vmem>>, vector<1x8x8x32xf32>
    %177 = vector.shape_cast %176 : vector<1x8x8x32xf32> to vector<64x32xf32>
    %c0_136 = arith.constant 0 : index
    %c96 = arith.constant 96 : index
    %178 = vector.load %arg26[%c0_136, %c96] : memref<64x288xf32, #tpu.memory_space<vmem>>, vector<64x32xf32>
    tpu.vector_store %arg26[%c0_136, %c96], %177 {strides = array<i32>} : memref<64x288xf32, #tpu.memory_space<vmem>>, vector<64x32xf32>,
    %c0_137 = arith.constant 0 : index
    %c1_138 = arith.constant 1 : index
    %c1_139 = arith.constant 1 : index
    %c0_140 = arith.constant 0 : index
    %179 = vector.load %arg23[%c0_137, %c1_138, %c1_139, %c0_140] : memref<1x10x10x32xf32, #tpu.memory_space<vmem>>, vector<1x8x8x32xf32>
    %180 = vector.shape_cast %179 : vector<1x8x8x32xf32> to vector<64x32xf32>
    %c0_141 = arith.constant 0 : index
    %c128 = arith.constant 128 : index
    %181 = vector.load %arg26[%c0_141, %c128] : memref<64x288xf32, #tpu.memory_space<vmem>>, vector<64x32xf32>
    tpu.vector_store %arg26[%c0_141, %c128], %180 {strides = array<i32>} : memref<64x288xf32, #tpu.memory_space<vmem>>, vector<64x32xf32>,
    %c0_142 = arith.constant 0 : index
    %c1_143 = arith.constant 1 : index
    %c2_144 = arith.constant 2 : index
    %c0_145 = arith.constant 0 : index
    %182 = vector.load %arg23[%c0_142, %c1_143, %c2_144, %c0_145] : memref<1x10x10x32xf32, #tpu.memory_space<vmem>>, vector<1x8x8x32xf32>
    %183 = vector.shape_cast %182 : vector<1x8x8x32xf32> to vector<64x32xf32>
    %c0_146 = arith.constant 0 : index
    %c160 = arith.constant 160 : index
    %184 = vector.load %arg26[%c0_146, %c160] : memref<64x288xf32, #tpu.memory_space<vmem>>, vector<64x32xf32>
    tpu.vector_store %arg26[%c0_146, %c160], %183 {strides = array<i32>} : memref<64x288xf32, #tpu.memory_space<vmem>>, vector<64x32xf32>,
    %c0_147 = arith.constant 0 : index
    %c2_148 = arith.constant 2 : index
    %c0_149 = arith.constant 0 : index
    %c0_150 = arith.constant 0 : index
    %185 = vector.load %arg23[%c0_147, %c2_148, %c0_149, %c0_150] : memref<1x10x10x32xf32, #tpu.memory_space<vmem>>, vector<1x8x8x32xf32>
    %186 = vector.shape_cast %185 : vector<1x8x8x32xf32> to vector<64x32xf32>
    %c0_151 = arith.constant 0 : index
    %c192 = arith.constant 192 : index
    %187 = vector.load %arg26[%c0_151, %c192] : memref<64x288xf32, #tpu.memory_space<vmem>>, vector<64x32xf32>
    tpu.vector_store %arg26[%c0_151, %c192], %186 {strides = array<i32>} : memref<64x288xf32, #tpu.memory_space<vmem>>, vector<64x32xf32>,
    %c0_152 = arith.constant 0 : index
    %c2_153 = arith.constant 2 : index
    %c1_154 = arith.constant 1 : index
    %c0_155 = arith.constant 0 : index
    %188 = vector.load %arg23[%c0_152, %c2_153, %c1_154, %c0_155] : memref<1x10x10x32xf32, #tpu.memory_space<vmem>>, vector<1x8x8x32xf32>
    %189 = vector.shape_cast %188 : vector<1x8x8x32xf32> to vector<64x32xf32>
    %c0_156 = arith.constant 0 : index
    %c224 = arith.constant 224 : index
    %190 = vector.load %arg26[%c0_156, %c224] : memref<64x288xf32, #tpu.memory_space<vmem>>, vector<64x32xf32>
    tpu.vector_store %arg26[%c0_156, %c224], %189 {strides = array<i32>} : memref<64x288xf32, #tpu.memory_space<vmem>>, vector<64x32xf32>,
    %c0_157 = arith.constant 0 : index
    %c2_158 = arith.constant 2 : index
    %c2_159 = arith.constant 2 : index
    %c0_160 = arith.constant 0 : index
    %191 = vector.load %arg23[%c0_157, %c2_158, %c2_159, %c0_160] : memref<1x10x10x32xf32, #tpu.memory_space<vmem>>, vector<1x8x8x32xf32>
    %192 = vector.shape_cast %191 : vector<1x8x8x32xf32> to vector<64x32xf32>
    %c0_161 = arith.constant 0 : index
    %c256 = arith.constant 256 : index
    %193 = vector.load %arg26[%c0_161, %c256] : memref<64x288xf32, #tpu.memory_space<vmem>>, vector<64x32xf32>
    tpu.vector_store %arg26[%c0_161, %c256], %192 {strides = array<i32>} : memref<64x288xf32, #tpu.memory_space<vmem>>, vector<64x32xf32>,
    %c0_162 = arith.constant 0 : index
    %c0_163 = arith.constant 0 : index
    %194 = vector.load %arg26[%c0_162, %c0_163] : memref<64x288xf32, #tpu.memory_space<vmem>>, vector<64x288xf32>
    %195 = arith.truncf %194 : vector<64x288xf32> to vector<64x288xbf16>
    %c0_164 = arith.constant 0 : index
    %c0_165 = arith.constant 0 : index
    %196 = vector.load %arg6[%c0_164, %c0_165] : memref<288x64xbf16, #tpu.memory_space<vmem>>, vector<288x64xbf16>
    %cst_166 = arith.constant dense<0.000000e+00> : vector<64x64xf32>
    %197 = tpu.matmul %195, %196, %cst_166 {dimension_numbers = #tpu.dot_dimension_numbers<[1], [0], [0], [1], [0, 0, 1, 1], [], []>} : vector<64x288xbf16>, vector<288x64xbf16>, vector<64x64xf32> -> vector<64x64xf32>
    %c0_167 = arith.constant 0 : index
    %c0_168 = arith.constant 0 : index
    %198 = vector.load %arg7[%c0_167, %c0_168] : memref<1x64xf32, #tpu.memory_space<vmem>>, vector<1x64xf32>
    %199 = vector.broadcast %198 : vector<1x64xf32> to vector<64x64xf32>
    %200 = arith.mulf %197, %199 : vector<64x64xf32>
    %c0_169 = arith.constant 0 : index
    %c0_170 = arith.constant 0 : index
    %201 = vector.load %arg8[%c0_169, %c0_170] : memref<1x64xf32, #tpu.memory_space<vmem>>, vector<1x64xf32>
    %202 = vector.broadcast %201 : vector<1x64xf32> to vector<64x64xf32>
    %203 = arith.addf %200, %202 : vector<64x64xf32>
    %cst_171 = arith.constant 0.000000e+00 : f32
    %204 = vector.broadcast %cst_171 : f32 to vector<64x64xf32>
    %205 = arith.maximumf %203, %204 : vector<64x64xf32>
    %206 = vector.shape_cast %205 : vector<64x64xf32> to vector<4x2x8x64xf32>
    %207 = vector.extract_strided_slice %206 {offsets = [0, 0, 0, 0], sizes = [4, 1, 8, 64], strides = [1, 1, 1, 1]} : vector<4x2x8x64xf32> to vector<4x1x8x64xf32>
    %208 = vector.shape_cast %207 : vector<4x1x8x64xf32> to vector<4x8x64xf32>
    %209 = vector.extract_strided_slice %206 {offsets = [0, 1, 0, 0], sizes = [4, 1, 8, 64], strides = [1, 1, 1, 1]} : vector<4x2x8x64xf32> to vector<4x1x8x64xf32>
    %210 = vector.shape_cast %209 : vector<4x1x8x64xf32> to vector<4x8x64xf32>
    %211 = arith.maximumf %208, %210 : vector<4x8x64xf32>
    %212 = vector.shape_cast %211 : vector<4x8x64xf32> to vector<32x64xf32>
    %c0_172 = arith.constant 0 : index
    %c0_173 = arith.constant 0 : index
    %213 = vector.load %arg24[%c0_172, %c0_173] : memref<32x64xf32, #tpu.memory_space<vmem>>, vector<32x64xf32>
    tpu.vector_store %arg24[%c0_172, %c0_173], %212 {strides = array<i32>} : memref<32x64xf32, #tpu.memory_space<vmem>>, vector<32x64xf32>,
    %c0_174 = arith.constant 0 : index
    %c0_175 = arith.constant 0 : index
    %214 = tpu.strided_load %arg24[%c0_174, %c0_175] {strides = array<i32: 2, 1>} : memref<32x64xf32, #tpu.memory_space<vmem>>, vector<16x64xf32>
    %c1_176 = arith.constant 1 : index
    %c0_177 = arith.constant 0 : index
    %215 = tpu.strided_load %arg24[%c1_176, %c0_177] {strides = array<i32: 2, 1>} : memref<32x64xf32, #tpu.memory_space<vmem>>, vector<16x64xf32>
    %216 = arith.maximumf %214, %215 : vector<16x64xf32>
    %217 = vector.shape_cast %216 : vector<16x64xf32> to vector<1x4x4x64xf32>
    %c0_178 = arith.constant 0 : index
    %c1_179 = arith.constant 1 : index
    %c1_180 = arith.constant 1 : index
    %c0_181 = arith.constant 0 : index
    %218 = vector.load %arg25[%c0_178, %c1_179, %c1_180, %c0_181] : memref<1x6x10x64xf32, #tpu.memory_space<vmem>>, vector<1x4x4x64xf32>
    tpu.vector_store %arg25[%c0_178, %c1_179, %c1_180, %c0_181], %217 {strides = array<i32>} : memref<1x6x10x64xf32, #tpu.memory_space<vmem>>, vector<1x4x4x64xf32>,
    %c0_182 = arith.constant 0 : index
    %c0_183 = arith.constant 0 : index
    %c0_184 = arith.constant 0 : index
    %c0_185 = arith.constant 0 : index
    %219 = vector.load %arg25[%c0_182, %c0_183, %c0_184, %c0_185] : memref<1x6x10x64xf32, #tpu.memory_space<vmem>>, vector<1x4x8x64xf32>
    %220 = vector.shape_cast %219 : vector<1x4x8x64xf32> to vector<32x64xf32>
    %c0_186 = arith.constant 0 : index
    %c0_187 = arith.constant 0 : index
    %221 = vector.load %arg27[%c0_186, %c0_187] : memref<32x576xf32, #tpu.memory_space<vmem>>, vector<32x64xf32>
    tpu.vector_store %arg27[%c0_186, %c0_187], %220 {strides = array<i32>} : memref<32x576xf32, #tpu.memory_space<vmem>>, vector<32x64xf32>,
    %c0_188 = arith.constant 0 : index
    %c0_189 = arith.constant 0 : index
    %c1_190 = arith.constant 1 : index
    %c0_191 = arith.constant 0 : index
    %222 = vector.load %arg25[%c0_188, %c0_189, %c1_190, %c0_191] : memref<1x6x10x64xf32, #tpu.memory_space<vmem>>, vector<1x4x8x64xf32>
    %223 = vector.shape_cast %222 : vector<1x4x8x64xf32> to vector<32x64xf32>
    %c0_192 = arith.constant 0 : index
    %c64_193 = arith.constant 64 : index
    %224 = vector.load %arg27[%c0_192, %c64_193] : memref<32x576xf32, #tpu.memory_space<vmem>>, vector<32x64xf32>
    tpu.vector_store %arg27[%c0_192, %c64_193], %223 {strides = array<i32>} : memref<32x576xf32, #tpu.memory_space<vmem>>, vector<32x64xf32>,
    %c0_194 = arith.constant 0 : index
    %c0_195 = arith.constant 0 : index
    %c2_196 = arith.constant 2 : index
    %c0_197 = arith.constant 0 : index
    %225 = vector.load %arg25[%c0_194, %c0_195, %c2_196, %c0_197] : memref<1x6x10x64xf32, #tpu.memory_space<vmem>>, vector<1x4x8x64xf32>
    %226 = vector.shape_cast %225 : vector<1x4x8x64xf32> to vector<32x64xf32>
    %c0_198 = arith.constant 0 : index
    %c128_199 = arith.constant 128 : index
    %227 = vector.load %arg27[%c0_198, %c128_199] : memref<32x576xf32, #tpu.memory_space<vmem>>, vector<32x64xf32>
    tpu.vector_store %arg27[%c0_198, %c128_199], %226 {strides = array<i32>} : memref<32x576xf32, #tpu.memory_space<vmem>>, vector<32x64xf32>,
    %c0_200 = arith.constant 0 : index
    %c1_201 = arith.constant 1 : index
    %c0_202 = arith.constant 0 : index
    %c0_203 = arith.constant 0 : index
    %228 = vector.load %arg25[%c0_200, %c1_201, %c0_202, %c0_203] : memref<1x6x10x64xf32, #tpu.memory_space<vmem>>, vector<1x4x8x64xf32>
    %229 = vector.shape_cast %228 : vector<1x4x8x64xf32> to vector<32x64xf32>
    %c0_204 = arith.constant 0 : index
    %c192_205 = arith.constant 192 : index
    %230 = vector.load %arg27[%c0_204, %c192_205] : memref<32x576xf32, #tpu.memory_space<vmem>>, vector<32x64xf32>
    tpu.vector_store %arg27[%c0_204, %c192_205], %229 {strides = array<i32>} : memref<32x576xf32, #tpu.memory_space<vmem>>, vector<32x64xf32>,
    %c0_206 = arith.constant 0 : index
    %c1_207 = arith.constant 1 : index
    %c1_208 = arith.constant 1 : index
    %c0_209 = arith.constant 0 : index
    %231 = vector.load %arg25[%c0_206, %c1_207, %c1_208, %c0_209] : memref<1x6x10x64xf32, #tpu.memory_space<vmem>>, vector<1x4x8x64xf32>
    %232 = vector.shape_cast %231 : vector<1x4x8x64xf32> to vector<32x64xf32>
    %c0_210 = arith.constant 0 : index
    %c256_211 = arith.constant 256 : index
    %233 = vector.load %arg27[%c0_210, %c256_211] : memref<32x576xf32, #tpu.memory_space<vmem>>, vector<32x64xf32>
    tpu.vector_store %arg27[%c0_210, %c256_211], %232 {strides = array<i32>} : memref<32x576xf32, #tpu.memory_space<vmem>>, vector<32x64xf32>,
    %c0_212 = arith.constant 0 : index
    %c1_213 = arith.constant 1 : index
    %c2_214 = arith.constant 2 : index
    %c0_215 = arith.constant 0 : index
    %234 = vector.load %arg25[%c0_212, %c1_213, %c2_214, %c0_215] : memref<1x6x10x64xf32, #tpu.memory_space<vmem>>, vector<1x4x8x64xf32>
    %235 = vector.shape_cast %234 : vector<1x4x8x64xf32> to vector<32x64xf32>
    %c0_216 = arith.constant 0 : index
    %c320 = arith.constant 320 : index
    %236 = vector.load %arg27[%c0_216, %c320] : memref<32x576xf32, #tpu.memory_space<vmem>>, vector<32x64xf32>
    tpu.vector_store %arg27[%c0_216, %c320], %235 {strides = array<i32>} : memref<32x576xf32, #tpu.memory_space<vmem>>, vector<32x64xf32>,
    %c0_217 = arith.constant 0 : index
    %c2_218 = arith.constant 2 : index
    %c0_219 = arith.constant 0 : index
    %c0_220 = arith.constant 0 : index
    %237 = vector.load %arg25[%c0_217, %c2_218, %c0_219, %c0_220] : memref<1x6x10x64xf32, #tpu.memory_space<vmem>>, vector<1x4x8x64xf32>
    %238 = vector.shape_cast %237 : vector<1x4x8x64xf32> to vector<32x64xf32>
    %c0_221 = arith.constant 0 : index
    %c384 = arith.constant 384 : index
    %239 = vector.load %arg27[%c0_221, %c384] : memref<32x576xf32, #tpu.memory_space<vmem>>, vector<32x64xf32>
    tpu.vector_store %arg27[%c0_221, %c384], %238 {strides = array<i32>} : memref<32x576xf32, #tpu.memory_space<vmem>>, vector<32x64xf32>,
    %c0_222 = arith.constant 0 : index
    %c2_223 = arith.constant 2 : index
    %c1_224 = arith.constant 1 : index
    %c0_225 = arith.constant 0 : index
    %240 = vector.load %arg25[%c0_222, %c2_223, %c1_224, %c0_225] : memref<1x6x10x64xf32, #tpu.memory_space<vmem>>, vector<1x4x8x64xf32>
    %241 = vector.shape_cast %240 : vector<1x4x8x64xf32> to vector<32x64xf32>
    %c0_226 = arith.constant 0 : index
    %c448 = arith.constant 448 : index
    %242 = vector.load %arg27[%c0_226, %c448] : memref<32x576xf32, #tpu.memory_space<vmem>>, vector<32x64xf32>
    tpu.vector_store %arg27[%c0_226, %c448], %241 {strides = array<i32>} : memref<32x576xf32, #tpu.memory_space<vmem>>, vector<32x64xf32>,
    %c0_227 = arith.constant 0 : index
    %c2_228 = arith.constant 2 : index
    %c2_229 = arith.constant 2 : index
    %c0_230 = arith.constant 0 : index
    %243 = vector.load %arg25[%c0_227, %c2_228, %c2_229, %c0_230] : memref<1x6x10x64xf32, #tpu.memory_space<vmem>>, vector<1x4x8x64xf32>
    %244 = vector.shape_cast %243 : vector<1x4x8x64xf32> to vector<32x64xf32>
    %c0_231 = arith.constant 0 : index
    %c512 = arith.constant 512 : index
    %245 = vector.load %arg27[%c0_231, %c512] : memref<32x576xf32, #tpu.memory_space<vmem>>, vector<32x64xf32>
    tpu.vector_store %arg27[%c0_231, %c512], %244 {strides = array<i32>} : memref<32x576xf32, #tpu.memory_space<vmem>>, vector<32x64xf32>,
    %c0_232 = arith.constant 0 : index
    %c0_233 = arith.constant 0 : index
    %246 = vector.load %arg27[%c0_232, %c0_233] : memref<32x576xf32, #tpu.memory_space<vmem>>, vector<32x576xf32>
    %247 = arith.truncf %246 : vector<32x576xf32> to vector<32x576xbf16>
    %c0_234 = arith.constant 0 : index
    %c0_235 = arith.constant 0 : index
    %248 = vector.load %arg9[%c0_234, %c0_235] : memref<576x128xbf16, #tpu.memory_space<vmem>>, vector<576x128xbf16>
    %cst_236 = arith.constant dense<0.000000e+00> : vector<32x128xf32>
    %249 = tpu.matmul %247, %248, %cst_236 {dimension_numbers = #tpu.dot_dimension_numbers<[1], [0], [0], [1], [0, 0, 1, 1], [], []>} : vector<32x576xbf16>, vector<576x128xbf16>, vector<32x128xf32> -> vector<32x128xf32>
    %c0_237 = arith.constant 0 : index
    %c0_238 = arith.constant 0 : index
    %250 = vector.load %arg10[%c0_237, %c0_238] : memref<1x128xf32, #tpu.memory_space<vmem>>, vector<1x128xf32>
    %251 = vector.broadcast %250 : vector<1x128xf32> to vector<32x128xf32>
    %252 = arith.mulf %249, %251 : vector<32x128xf32>
    %c0_239 = arith.constant 0 : index
    %c0_240 = arith.constant 0 : index
    %253 = vector.load %arg11[%c0_239, %c0_240] : memref<1x128xf32, #tpu.memory_space<vmem>>, vector<1x128xf32>
    %254 = vector.broadcast %253 : vector<1x128xf32> to vector<32x128xf32>
    %255 = arith.addf %252, %254 : vector<32x128xf32>
    %cst_241 = arith.constant 0.000000e+00 : f32
    %256 = vector.broadcast %cst_241 : f32 to vector<32x128xf32>
    %257 = arith.maximumf %255, %256 : vector<32x128xf32>
    %258 = vector.shape_cast %257 : vector<32x128xf32> to vector<1x4x8x128xf32>
    %259 = vector.extract_strided_slice %258 {offsets = [0, 0, 0, 0], sizes = [1, 4, 4, 128], strides = [1, 1, 1, 1]} : vector<1x4x8x128xf32> to vector<1x4x4x128xf32>
    %260 = vector.extract_strided_slice %259 {offsets = [0, 0, 0, 0], sizes = [1, 1, 4, 128], strides = [1, 1, 1, 1]} : vector<1x4x4x128xf32> to vector<1x1x4x128xf32>
    %261 = vector.shape_cast %260 : vector<1x1x4x128xf32> to vector<1x4x128xf32>
    %262 = vector.extract_strided_slice %259 {offsets = [0, 1, 0, 0], sizes = [1, 1, 4, 128], strides = [1, 1, 1, 1]} : vector<1x4x4x128xf32> to vector<1x1x4x128xf32>
    %263 = vector.shape_cast %262 : vector<1x1x4x128xf32> to vector<1x4x128xf32>
    %264 = arith.addf %261, %263 : vector<1x4x128xf32>
    %265 = vector.extract_strided_slice %259 {offsets = [0, 2, 0, 0], sizes = [1, 1, 4, 128], strides = [1, 1, 1, 1]} : vector<1x4x4x128xf32> to vector<1x1x4x128xf32>
    %266 = vector.shape_cast %265 : vector<1x1x4x128xf32> to vector<1x4x128xf32>
    %267 = arith.addf %264, %266 : vector<1x4x128xf32>
    %268 = vector.extract_strided_slice %259 {offsets = [0, 3, 0, 0], sizes = [1, 1, 4, 128], strides = [1, 1, 1, 1]} : vector<1x4x4x128xf32> to vector<1x1x4x128xf32>
    %269 = vector.shape_cast %268 : vector<1x1x4x128xf32> to vector<1x4x128xf32>
    %270 = arith.addf %267, %269 : vector<1x4x128xf32>
    %cst_242 = arith.constant dense<0.000000e+00> : vector<1x128xf32>
    %271 = vector.multi_reduction <add>, %270, %cst_242 [1] : vector<1x4x128xf32> to vector<1x128xf32>
    %cst_243 = arith.constant 6.250000e-02 : f32
    %272 = vector.broadcast %cst_243 : f32 to vector<1x128xf32>
    %273 = arith.mulf %271, %272 : vector<1x128xf32>
    %274 = arith.truncf %273 : vector<1x128xf32> to vector<1x128xbf16>
    %c0_244 = arith.constant 0 : index
    %c0_245 = arith.constant 0 : index
    %c0_246 = arith.constant 0 : index
    %275 = vector.load %arg2[%c0_244, %c0_245, %c0_246] : memref<1x1x8xf32, #tpu.memory_space<vmem>>, vector<1x1x8xf32>
    %276 = vector.shape_cast %275 : vector<1x1x8xf32> to vector<1x8xf32>
    %277 = arith.truncf %276 : vector<1x8xf32> to vector<1x8xbf16>
    %c0_247 = arith.constant 0 : index
    %c0_248 = arith.constant 0 : index
    %278 = vector.load %arg12[%c0_247, %c0_248] : memref<128x128xbf16, #tpu.memory_space<vmem>>, vector<128x128xbf16>
    %cst_249 = arith.constant dense<0.000000e+00> : vector<1x128xf32>
    %279 = tpu.matmul %274, %278, %cst_249 {dimension_numbers = #tpu.dot_dimension_numbers<[1], [0], [0], [1], [0, 0, 1, 1], [], []>} : vector<1x128xbf16>, vector<128x128xbf16>, vector<1x128xf32> -> vector<1x128xf32>
    %c0_250 = arith.constant 0 : index
    %c0_251 = arith.constant 0 : index
    %280 = vector.load %arg13[%c0_250, %c0_251] : memref<8x128xbf16, #tpu.memory_space<vmem>>, vector<8x128xbf16>
    %cst_252 = arith.constant dense<0.000000e+00> : vector<1x128xf32>
    %281 = tpu.matmul %277, %280, %cst_252 {dimension_numbers = #tpu.dot_dimension_numbers<[1], [0], [0], [1], [0, 0, 1, 1], [], []>} : vector<1x8xbf16>, vector<8x128xbf16>, vector<1x128xf32> -> vector<1x128xf32>
    %282 = arith.addf %279, %281 : vector<1x128xf32>
    %c0_253 = arith.constant 0 : index
    %c0_254 = arith.constant 0 : index
    %283 = vector.load %arg14[%c0_253, %c0_254] : memref<1x128xf32, #tpu.memory_space<vmem>>, vector<1x128xf32>
    %284 = arith.mulf %282, %283 : vector<1x128xf32>
    %c0_255 = arith.constant 0 : index
    %c0_256 = arith.constant 0 : index
    %285 = vector.load %arg15[%c0_255, %c0_256] : memref<1x128xf32, #tpu.memory_space<vmem>>, vector<1x128xf32>
    %286 = arith.addf %284, %285 : vector<1x128xf32>
    %cst_257 = arith.constant 0.000000e+00 : f32
    %287 = vector.broadcast %cst_257 : f32 to vector<1x128xf32>
    %288 = arith.maximumf %286, %287 : vector<1x128xf32>
    %289 = arith.truncf %288 : vector<1x128xf32> to vector<1x128xbf16>
    %c0_258 = arith.constant 0 : index
    %c0_259 = arith.constant 0 : index
    %290 = vector.load %arg16[%c0_258, %c0_259] : memref<128x64xbf16, #tpu.memory_space<vmem>>, vector<128x64xbf16>
    %cst_260 = arith.constant dense<0.000000e+00> : vector<1x64xf32>
    %291 = tpu.matmul %289, %290, %cst_260 {dimension_numbers = #tpu.dot_dimension_numbers<[1], [0], [0], [1], [0, 0, 1, 1], [], []>} : vector<1x128xbf16>, vector<128x64xbf16>, vector<1x64xf32> -> vector<1x64xf32>
    %c0_261 = arith.constant 0 : index
    %c0_262 = arith.constant 0 : index
    %292 = vector.load %arg17[%c0_261, %c0_262] : memref<1x64xf32, #tpu.memory_space<vmem>>, vector<1x64xf32>
    %293 = arith.mulf %291, %292 : vector<1x64xf32>
    %c0_263 = arith.constant 0 : index
    %c0_264 = arith.constant 0 : index
    %294 = vector.load %arg18[%c0_263, %c0_264] : memref<1x64xf32, #tpu.memory_space<vmem>>, vector<1x64xf32>
    %295 = arith.addf %293, %294 : vector<1x64xf32>
    %cst_265 = arith.constant 0.000000e+00 : f32
    %296 = vector.broadcast %cst_265 : f32 to vector<1x64xf32>
    %297 = arith.maximumf %295, %296 : vector<1x64xf32>
    %298 = arith.truncf %297 : vector<1x64xf32> to vector<1x64xbf16>
    %c0_266 = arith.constant 0 : index
    %c0_267 = arith.constant 0 : index
    %299 = vector.load %arg19[%c0_266, %c0_267] : memref<64x128xbf16, #tpu.memory_space<vmem>>, vector<64x128xbf16>
    %cst_268 = arith.constant dense<0.000000e+00> : vector<1x128xf32>
    %300 = tpu.matmul %298, %299, %cst_268 {dimension_numbers = #tpu.dot_dimension_numbers<[1], [0], [0], [1], [0, 0, 1, 1], [], []>} : vector<1x64xbf16>, vector<64x128xbf16>, vector<1x128xf32> -> vector<1x128xf32>
    %c0_269 = arith.constant 0 : index
    %c0_270 = arith.constant 0 : index
    %301 = vector.load %arg20[%c0_269, %c0_270] : memref<1x128xf32, #tpu.memory_space<vmem>>, vector<1x128xf32>
    %302 = arith.addf %300, %301 : vector<1x128xf32>
    %303 = vector.shape_cast %302 : vector<1x128xf32> to vector<1x1x128xf32>
    %c0_271 = arith.constant 0 : index
    %c0_272 = arith.constant 0 : index
    %c0_273 = arith.constant 0 : index
    %304 = vector.load %arg21[%c0_271, %c0_272, %c0_273] : memref<1x1x128xf32, #tpu.memory_space<vmem>>, vector<1x1x128xf32>
    tpu.vector_store %arg21[%c0_271, %c0_272, %c0_273], %303 {strides = array<i32>} : memref<1x1x128xf32, #tpu.memory_space<vmem>>, vector<1x1x128xf32>,
    return
  }
  func.func @transform_0(%arg0: i32) -> (i32, i32, i32, i32) {
    %c0_i32 = arith.constant 0 : i32
    %c0_i32_0 = arith.constant 0 : i32
    %c0_i32_1 = arith.constant 0 : i32
    %c0_i32_2 = arith.constant 0 : i32
    return %arg0, %c0_i32, %c0_i32_0, %c0_i32_1 : i32, i32, i32, i32
  }
  func.func @transform_1(%arg0: i32) -> (i32, i32, i32) {
    %c0_i32 = arith.constant 0 : i32
    %c0_i32_0 = arith.constant 0 : i32
    %c0_i32_1 = arith.constant 0 : i32
    return %arg0, %c0_i32, %c0_i32_0 : i32, i32, i32
  }
  func.func @transform_2(%arg0: i32) -> (i32, i32) {
    %c0_i32 = arith.constant 0 : i32
    %c0_i32_0 = arith.constant 0 : i32
    %c0_i32_1 = arith.constant 0 : i32
    return %c0_i32, %c0_i32_0 : i32, i32
  }
  func.func @transform_3(%arg0: i32) -> (i32, i32) {
    %c0_i32 = arith.constant 0 : i32
    %c0_i32_0 = arith.constant 0 : i32
    %c0_i32_1 = arith.constant 0 : i32
    return %c0_i32, %c0_i32_0 : i32, i32
  }
  func.func @transform_4(%arg0: i32) -> (i32, i32) {
    %c0_i32 = arith.constant 0 : i32
    %c0_i32_0 = arith.constant 0 : i32
    %c0_i32_1 = arith.constant 0 : i32
    return %c0_i32, %c0_i32_0 : i32, i32
  }
  func.func @transform_5(%arg0: i32) -> (i32, i32) {
    %c0_i32 = arith.constant 0 : i32
    %c0_i32_0 = arith.constant 0 : i32
    %c0_i32_1 = arith.constant 0 : i32
    return %c0_i32, %c0_i32_0 : i32, i32
  }
  func.func @transform_6(%arg0: i32) -> (i32, i32) {
    %c0_i32 = arith.constant 0 : i32
    %c0_i32_0 = arith.constant 0 : i32
    %c0_i32_1 = arith.constant 0 : i32
    return %c0_i32, %c0_i32_0 : i32, i32
  }
  func.func @transform_7(%arg0: i32) -> (i32, i32) {
    %c0_i32 = arith.constant 0 : i32
    %c0_i32_0 = arith.constant 0 : i32
    %c0_i32_1 = arith.constant 0 : i32
    return %c0_i32, %c0_i32_0 : i32, i32
  }
  func.func @transform_8(%arg0: i32) -> (i32, i32) {
    %c0_i32 = arith.constant 0 : i32
    %c0_i32_0 = arith.constant 0 : i32
    %c0_i32_1 = arith.constant 0 : i32
    return %c0_i32, %c0_i32_0 : i32, i32
  }
  func.func @transform_9(%arg0: i32) -> (i32, i32) {
    %c0_i32 = arith.constant 0 : i32
    %c0_i32_0 = arith.constant 0 : i32
    %c0_i32_1 = arith.constant 0 : i32
    return %c0_i32, %c0_i32_0 : i32, i32
  }
  func.func @transform_10(%arg0: i32) -> (i32, i32) {
    %c0_i32 = arith.constant 0 : i32
    %c0_i32_0 = arith.constant 0 : i32
    %c0_i32_1 = arith.constant 0 : i32
    return %c0_i32, %c0_i32_0 : i32, i32
  }
  func.func @transform_11(%arg0: i32) -> (i32, i32) {
    %c0_i32 = arith.constant 0 : i32
    %c0_i32_0 = arith.constant 0 : i32
    %c0_i32_1 = arith.constant 0 : i32
    return %c0_i32, %c0_i32_0 : i32, i32
  }
  func.func @transform_12(%arg0: i32) -> (i32, i32) {
    %c0_i32 = arith.constant 0 : i32
    %c0_i32_0 = arith.constant 0 : i32
    %c0_i32_1 = arith.constant 0 : i32
    return %c0_i32, %c0_i32_0 : i32, i32
  }
  func.func @transform_13(%arg0: i32) -> (i32, i32) {
    %c0_i32 = arith.constant 0 : i32
    %c0_i32_0 = arith.constant 0 : i32
    %c0_i32_1 = arith.constant 0 : i32
    return %c0_i32, %c0_i32_0 : i32, i32
  }
  func.func @transform_14(%arg0: i32) -> (i32, i32) {
    %c0_i32 = arith.constant 0 : i32
    %c0_i32_0 = arith.constant 0 : i32
    %c0_i32_1 = arith.constant 0 : i32
    return %c0_i32, %c0_i32_0 : i32, i32
  }
  func.func @transform_15(%arg0: i32) -> (i32, i32) {
    %c0_i32 = arith.constant 0 : i32
    %c0_i32_0 = arith.constant 0 : i32
    %c0_i32_1 = arith.constant 0 : i32
    return %c0_i32, %c0_i32_0 : i32, i32
  }
  func.func @transform_16(%arg0: i32) -> (i32, i32) {
    %c0_i32 = arith.constant 0 : i32
    %c0_i32_0 = arith.constant 0 : i32
    %c0_i32_1 = arith.constant 0 : i32
    return %c0_i32, %c0_i32_0 : i32, i32
  }
  func.func @transform_17(%arg0: i32) -> (i32, i32) {
    %c0_i32 = arith.constant 0 : i32
    %c0_i32_0 = arith.constant 0 : i32
    %c0_i32_1 = arith.constant 0 : i32
    return %c0_i32, %c0_i32_0 : i32, i32
  }
  func.func @transform_18(%arg0: i32) -> (i32, i32) {
    %c0_i32 = arith.constant 0 : i32
    %c0_i32_0 = arith.constant 0 : i32
    %c0_i32_1 = arith.constant 0 : i32
    return %c0_i32, %c0_i32_0 : i32, i32
  }
  func.func @transform_19(%arg0: i32) -> (i32, i32) {
    %c0_i32 = arith.constant 0 : i32
    %c0_i32_0 = arith.constant 0 : i32
    %c0_i32_1 = arith.constant 0 : i32
    return %c0_i32, %c0_i32_0 : i32, i32
  }
  func.func @transform_20(%arg0: i32) -> (i32, i32, i32) {
    %c0_i32 = arith.constant 0 : i32
    %c0_i32_0 = arith.constant 0 : i32
    %c0_i32_1 = arith.constant 0 : i32
    return %arg0, %c0_i32, %c0_i32_0 : i32, i32, i32
  }
}

</mosaic_0001>

<bundles_post_ra>
// kernel: tpu_custom_call.1
= control target key start
LH: loop header
LB: loop body
LE: loop exit
PB: predicated region body
PF: predicated region fallthrough
CT: control target
= control target key end

     0   :  { %s8461_s0 = inlined_call_operand.vmem [shape: f32[2,18,18,1], index: 0, kind: input, shape index: {}]   ;;  %s8462_s1 = inlined_call_operand.vmem [shape: f32[2,1,8], index: 1, kind: input, shape index: {}]   ;;  %s8463_s2 = inlined_call_operand.vmem [shape: f32[9,32], index: 2, kind: input, shape index: {}]   ;;  %s8464_s3 = inlined_call_operand.vmem [shape: f32[1,32], index: 3, kind: input, shape index: {}]   ;;  %s8465_s4 = inlined_call_operand.vmem [shape: f32[1,32], index: 4, kind: input, shape index: {}]   ;;  %s8466_s5 = inlined_call_operand.vmem [shape: bf16[288,64], index: 5, kind: input, shape index: {}]   ;;  %s8467_s6 = inlined_call_operand.vmem [shape: f32[1,64], index: 6, kind: input, shape index: {}]   ;;  %s8468_s7 = inlined_call_operand.vmem [shape: f32[1,64], index: 7, kind: input, shape index: {}]   ;;  %s8469_s8 = inlined_call_operand.vmem [shape: bf16[576,128], index: 8, kind: input, shape index: {}]   ;;  %s8470_s9 = inlined_call_operand.vmem [shape: f32[1,128], index: 9, kind: input, shape index: {}]   ;;  %s8471_s10 = inlined_call_operand.vmem [shape: f32[1,128], index: 10, kind: input, shape index: {}]   ;;  %s8472_s11 = inlined_call_operand.vmem [shape: bf16[128,128], index: 11, kind: input, shape index: {}]   ;;  %s8473_s12 = inlined_call_operand.vmem [shape: bf16[8,128], index: 12, kind: input, shape index: {}]   ;;  %s8474_s13 = inlined_call_operand.vmem [shape: f32[1,128], index: 13, kind: input, shape index: {}]   ;;  %s8475_s14 = inlined_call_operand.vmem [shape: f32[1,128], index: 14, kind: input, shape index: {}]   ;;  %s8476_s15 = inlined_call_operand.vmem [shape: bf16[128,64], index: 15, kind: input, shape index: {}]   ;;  %s8477_s16 = inlined_call_operand.vmem [shape: f32[1,64], index: 16, kind: input, shape index: {}]   ;;  %s8478_s17 = inlined_call_operand.vmem [shape: f32[1,64], index: 17, kind: input, shape index: {}]   ;;  %s8479_s18 = inlined_call_operand.vmem [shape: bf16[64,128], index: 18, kind: input, shape index: {}]   ;;  %s8480_s19 = inlined_call_operand.vmem [shape: f32[1,128], index: 19, kind: input, shape index: {}]   ;;  %s8481_s20 = inlined_call_operand.hbm [shape: f32[2,1,128], index: 20, kind: output, shape index: {}]  }
   0x1   :  { %8554 = sst [smem:[#allocation111_spill]] %s8461_s0 }
   0x2   :  { %8555 = sst [smem:[#allocation112_spill]] %s8462_s1 }
   0x3   :  { %8556 = sst [smem:[#allocation113_spill]] %s8463_s2 }
   0x4   :  { %8557 = sst [smem:[#allocation114_spill]] %s8464_s3 }
   0x5   :  { %8558 = sst [smem:[#allocation115_spill]] %s8465_s4 }
   0x6   :  { %8559 = sst [smem:[#allocation116_spill]] %s8466_s5 }
   0x7   :  { %8560 = sst [smem:[#allocation117_spill]] %s8467_s6 }
   0x8   :  { %8561 = sst [smem:[#allocation118_spill]] %s8468_s7 }
   0x9   :  { %25 = vsyncpa [#allocation9], 0 }
   0xa   :  { %27 = vsyncpa [#allocation9 + $0x1], 0  ;;  %s5886_s1 = smov 0   ;;  %s5888_s22 = smov 0  }
   0xb   :  { %s5890_s23 = smov 0   ;;  %s5892_s24 = smov 0  }
   0xc LB: > { %8562 = sst [smem:[#allocation11_spill]] %s5760_s1  ;;  %s5907_s2 = sadd.s32 4294967295, %s5772_s24   ;;  %s5772_s24 = sphi %s5892_s24, %s8940_s24   ;;  %s5768_s23 = sphi %s5890_s23, %s8942_s23   ;;  %s5764_s22 = sphi %s5888_s22, %s8944_s22   ;;  %s5760_s1 = sphi %s5886_s1, %s8943_s1  }
   0xd   : > { %8563 = sst [smem:[#allocation12_spill]] %s5768_s23  ;;  %s5016_s25 = sadd.s32 4294967294, %s5772_s24  }
   0xe   : > { %s5911_s3 = sadd.s32 1, %s5772_s24   ;;  %s470_s26 = sadd.s32 1, %s5768_s23 }
   0xf   : > { %8564 = sst [smem:[#allocation13_spill]] %s5911_s3  ;;  %s467_s27 = ssub.s32 %s5772_s24, %s5911_s3 }
  0x10   : > { %p480_p0 = scmp.ne.s32.totalorder %s5768_s23, %s5764_s22  ;;  %p468_p1 = scmp.eq.s32.totalorder %s467_s27, 0 }
  0x11   : > { %p481_p2 = scmp.eq.s32.totalorder %s5907_s2, 1  ;;  %p486_p3 = scmp.ne.s32.totalorder %s5764_s22, %s5760_s1 }
  0x12   : > { %p487_p4 = scmp.eq.s32.totalorder %s5016_s25, 1  ;;  %p5019_p7 = scmp.ge.s32.totalorder %s5772_s24, 1 }
  0x13   : > { %s5922_s28 = scalar_select %p468_p1, %s5768_s23, %s470_s26  }
  0x14   : > { %p5924_p5 = por %p481_p2, %p480_p0  ;;  %p5928_p6 = por %p487_p4, %p486_p3 }
  0x15   : > { %8565 = sst [smem:[#allocation14_spill]] %s5922_s28  ;;  %p573_p8 = scmp.lt.s32.totalorder %s5772_s24, 3 }
  0x16   : > { %s8567_s29 = scalar_select %p5928_p6, 1, 0 }
  0x17   : > { %p574_p9 = pnand %p5019_p7, %p573_p8 }
  0x18   : > { %8568 = sst [smem:[#allocation15_spill]] %s8567_s29 }
  0x19   : > { %577 = sbr.rel (%p574_p9) target bundleno = 2131 (0x853), region = 100 }
  0x1e   : > { %p633_p10 = scmp.lt.s32.totalorder %s5907_s2, 1  ;;  %v5774_v0 = vmov 0   ;;  %s8569_s26 = sld [smem:[#allocation111_spill]]  ;;  %vm642_vm0 = vcmask 261120   ;;  %vm644_vm1 = vcmask 254976   ;;  %vm3271_vm2 = vcmask 523520  }
  0x1f   : > { %5623 = vset.pattern.permute.xlu1 %v5774_v0  ;;  %5622 = vset.pattern.permute.xlu0 %v5774_v0  ;;  %s8657_s25 = sld [smem:[#allocation113_spill]]  ;;  %s8544_s3 = smov 32   ;;  %vm3320_vm3 = vcmask 785920   ;;  %vm3369_vm4 = vcmask 1048320   ;;  %vm664_vm5 = vcmask 523264   ;;  %vm666_vm6 = vcmask 517120  }
  0x20   : > { %s5936_s30 = scalar_select %p633_p10, %s5907_s2, 1  ;;  %vm3939_vm7 = vcmask 519168   ;;  %vm3972_vm8 = vcmask 1048064   ;;  %vm4582_vm9 = vcmask 1043456   ;;  %vm5779_vm10 = vmmov 0  }
  0x21   : > { %s8720_s28 = sld [smem:[#allocation114_spill]]  ;;  %s8547_s23 = smov 64   ;;  %vm4611_vm11 = vcmask 64512  }
  0x22   : > { %s5576_s0 = smul.u32 432, %s5936_s30  ;;  %s8774_s5 = sld [smem:[#allocation116_spill]] }
  0x23   : > { %s5778_s1 = smov 96   ;;  %s8935_s6 = sld [smem:[#allocation117_spill]] }
  0x24   : > { %s5942_s27 = scalar_lea.vmem %s8569_s26, %s5576_s0  ;;  %s8725_s26 = sld [smem:[#allocation115_spill]] }
  0x25   : > { %v5945_v1 = vld [vmem:[%s5942_s27 + $0x18] sm:$0xff]  ;;  %v689_v2 = vld [vmem:[%s5942_s27] sm:$0xff]  ;;  %v690_v4 = vld [vmem:[%s5942_s27 + $0x8] sm:$0xff]  ;;  %s8936_s7 = sld [smem:[#allocation118_spill]]  ;;  %s631_s29 = sand.u32 1, %s5764_s22  }
  0x26   : > { %717 = vperm.xlu1 %5623, %v5945_v1   ;;  %707 = vperm.xlu0 %5622, %v689_v2   ;;  %v5950_v3 = vld [vmem:[%s5942_s27 + $0x20] sm:$0xff]  ;;  %v5955_v5 = vld [vmem:[%s5942_s27 + $0x38] sm:$0xff]  ;;  %v5958_v6 = vld [vmem:[%s5942_s27 + $0x30] sm:$0xff] }
  0x27   : > { %v5963_v7 = vld [vmem:[%s5942_s27 + $0x50] sm:$0xff]  ;;  %v5966_v8 = vld [vmem:[%s5942_s27 + $0x48] sm:$0xff]  ;;  %v5976_v12 = vld [vmem:[%s5942_s27 + $0x19] sm:$0xff] }
  0x28   : > { %v822_v9 = vld [vmem:[%s5942_s27 + $0x9] sm:$0xff]  ;;  %v821_v10 = vld [vmem:[%s5942_s27 + $0x1] sm:$0xff]  ;;  %v5979_v13 = vld [vmem:[%s5942_s27 + $0x39] sm:$0xff] }
  0x29   : > { %v5973_v11 = vld [vmem:[%s5942_s27 + $0x21] sm:$0xff]  ;;  %v5982_v14 = vld [vmem:[%s5942_s27 + $0x31] sm:$0xff]  ;;  %v5990_v16 = vld [vmem:[%s5942_s27 + $0x49] sm:$0xff] }
  0x2a   : > { %722 = vperm.xlu1 %5623, %v5950_v3   ;;  %712 = vperm.xlu0 %5622, %v690_v4   ;;  %v5987_v15 = vld [vmem:[%s5942_s27 + $0x51] sm:$0xff]  ;;  %v5995_v17 = vld [vmem:[%s5942_s27 + $0x68] sm:$0xff]  ;;  %v5998_v18 = vld [vmem:[%s5942_s27 + $0x60] sm:$0xff] }
  0x2b   : > { %v6003_v19 = vld [vmem:[%s5942_s27 + $0x80] sm:$0xff]  ;;  %v6006_v20 = vld [vmem:[%s5942_s27 + $0x78] sm:$0xff]  ;;  %v6011_v21 = vld [vmem:[%s5942_s27 + $0x69] sm:$0xff] }
  0x2c   : > { %v6014_v22 = vld [vmem:[%s5942_s27 + $0x61] sm:$0xff]  ;;  %v6022_v24 = vld [vmem:[%s5942_s27 + $0x79] sm:$0xff]  ;;  %v954_v25 = vld [vmem:[%s5942_s27 + $0xa] sm:$0xff] }
  0x2d   : > { %v6019_v23 = vld [vmem:[%s5942_s27 + $0x81] sm:$0xff]  ;;  %v6040_v30 = vld [vmem:[%s5942_s27 + $0x32] sm:$0xff]  ;;  %v6048_v32 = vld [vmem:[%s5942_s27 + $0x4a] sm:$0xff] }
  0x2e   : > { %732 = vperm.xlu1 %5623, %v5955_v5   ;;  %727 = vperm.xlu0 %5622, %v5958_v6   ;;  %v953_v26 = vld [vmem:[%s5942_s27 + $0x2] sm:$0xff]  ;;  %v6034_v28 = vld [vmem:[%s5942_s27 + $0x1a] sm:$0xff]  ;;  %v6045_v31 = vld [vmem:[%s5942_s27 + $0x52] sm:$0xff] }
  0x2f   : > { %v6031_v27 = vld [vmem:[%s5942_s27 + $0x22] sm:$0xff]  ;;  %v6037_v29 = vld [vmem:[%s5942_s27 + $0x3a] sm:$0xff]  ;;  %v6053_v33 = vld [vmem:[%s5942_s27 + $0x6a] sm:$0xff] }
  0x30   : > { %v6056_v34 = vld [vmem:[%s5942_s27 + $0x62] sm:$0xff]  ;;  %v6066_v36 = vld [vmem:[%s5942_s27 + $0x7a] sm:$0xff]  ;;  %v6084_v38 = vld [vmem:[%s5942_s27 + $0x90] sm:$0xff] }
  0x31   : > { %v6063_v35 = vld [vmem:[%s5942_s27 + $0x82] sm:$0xff]  ;;  %v6081_v37 = vld [vmem:[%s5942_s27 + $0x98] sm:$0xff]  ;;  %v6109_v41 = vld [vmem:[%s5942_s27 + $0xb0] sm:$0xff] }
  0x32   : > { %742 = vperm.xlu1 %5623, %v5963_v7   ;;  %737 = vperm.xlu0 %5622, %v5966_v8   ;;  %v6099_v39 = vld [vmem:[%s5942_s27 + $0x99] sm:$0xff]  ;;  %v6102_v40 = vld [vmem:[%s5942_s27 + $0x91] sm:$0xff]  ;;  %v6112_v42 = vld [vmem:[%s5942_s27 + $0xa8] sm:$0xff] }
  0x33   : > { %v6127_v47 = vld [vmem:[%s5942_s27 + $0xb1] sm:$0xff]  ;;  %v6130_v48 = vld [vmem:[%s5942_s27 + $0xa9] sm:$0xff]  ;;  %v6169_v61 = vld [vmem:[%s5942_s27 + $0x9a] sm:$0xff] }
  0x34   : > { %v6172_v62 = vld [vmem:[%s5942_s27 + $0x92] sm:$0xff]  ;;  %v6184_v2 = vld [vmem:[%s5942_s27 + $0xc0] sm:$0xff] }
  0x36   : > { %844 = vperm.xlu1 %5623, %v822_v9   ;;  %839 = vperm.xlu0 %5622, %v821_v10   ;;  %v6193_v9 = vld [vmem:[%s5942_s27 + $0xe0] sm:$0xff]  ;;  %v6196_v10 = vld [vmem:[%s5942_s27 + $0xd8] sm:$0xff] }
  0x3a   : > { %854 = vperm.xlu1 %5623, %v5973_v11   ;;  %849 = vperm.xlu0 %5622, %v5976_v12  }
  0x3e   : > { %864 = vperm.xlu1 %5623, %v5979_v13   ;;  %859 = vperm.xlu0 %5622, %v5982_v14  }
  0x42   : > { %874 = vperm.xlu1 %5623, %v5987_v15   ;;  %869 = vperm.xlu0 %5622, %v5990_v16  }
  0x46   : > { %752 = vperm.xlu1 %5623, %v5995_v17   ;;  %747 = vperm.xlu0 %5622, %v5998_v18  }
  0x4a   : > { %762 = vperm.xlu1 %5623, %v6003_v19   ;;  %757 = vperm.xlu0 %5622, %v6006_v20  }
  0x4e   : > { %884 = vperm.xlu1 %5623, %v6011_v21   ;;  %879 = vperm.xlu0 %5622, %v6014_v22  }
  0x52   : > { %894 = vperm.xlu1 %5623, %v6019_v23   ;;  %889 = vperm.xlu0 %5622, %v6022_v24  }
  0x56   : > { %976 = vperm.xlu1 %5623, %v954_v25   ;;  %971 = vperm.xlu0 %5622, %v953_v26   ;;  %v6205_v25 = vld [vmem:[%s5942_s27 + $0xc9] sm:$0xff]  ;;  %v6208_v26 = vld [vmem:[%s5942_s27 + $0xc1] sm:$0xff] }
  0x5a   : > { %986 = vperm.xlu1 %5623, %v6031_v27   ;;  %981 = vperm.xlu0 %5622, %v6034_v28  }
  0x5e   : > { %996 = vperm.xlu1 %5623, %v6037_v29   ;;  %991 = vperm.xlu0 %5622, %v6040_v30  }
  0x62   : > { %1006 = vperm.xlu1 %5623, %v6045_v31   ;;  %1001 = vperm.xlu0 %5622, %v6048_v32  }
  0x66   : > { %1016 = vperm.xlu1 %5623, %v6053_v33   ;;  %1011 = vperm.xlu0 %5622, %v6056_v34  }
  0x6a   : > { %1026 = vperm.xlu1 %5623, %v6063_v35   ;;  %1021 = vperm.xlu0 %5622, %v6066_v36  }
  0x6e   : > { %1109 = vperm.xlu1 %5623, %v5950_v3   ;;  %1104 = vperm.xlu0 %5622, %v5945_v1   ;;  %v6181_v1 = vld [vmem:[%s5942_s27 + $0xc8] sm:$0xff] }
  0x72   : > { %1119 = vperm.xlu1 %5623, %v5955_v5   ;;  %1114 = vperm.xlu0 %5622, %v5958_v6  }
  0x76   : > { %1129 = vperm.xlu1 %5623, %v5963_v7   ;;  %1124 = vperm.xlu0 %5622, %v5966_v8  }
  0x7a   : > { %1139 = vperm.xlu1 %5623, %v5995_v17   ;;  %1134 = vperm.xlu0 %5622, %v5998_v18  }
  0x7e   : > { %1149 = vperm.xlu1 %5623, %v6003_v19   ;;  %1144 = vperm.xlu0 %5622, %v6006_v20  }
  0x82   : > { %1159 = vperm.xlu1 %5623, %v6081_v37   ;;  %1154 = vperm.xlu0 %5622, %v6084_v38  }
  0x86   : > { %1241 = vperm.xlu1 %5623, %v5973_v11   ;;  %1236 = vperm.xlu0 %5622, %v5976_v12  }
  0x8a   : > { %1251 = vperm.xlu1 %5623, %v5979_v13   ;;  %1246 = vperm.xlu0 %5622, %v5982_v14  }
  0x8e   : > { %1261 = vperm.xlu1 %5623, %v5987_v15   ;;  %1256 = vperm.xlu0 %5622, %v5990_v16  }
  0x92   : > { %1271 = vperm.xlu1 %5623, %v6011_v21   ;;  %1266 = vperm.xlu0 %5622, %v6014_v22  }
  0x96   : > { %1281 = vperm.xlu1 %5623, %v6019_v23   ;;  %1276 = vperm.xlu0 %5622, %v6022_v24  }
  0x9a   : > { %1291 = vperm.xlu1 %5623, %v6099_v39   ;;  %1286 = vperm.xlu0 %5622, %v6102_v40  }
  0x9e   : > { %772 = vperm.xlu1 %5623, %v6081_v37   ;;  %767 = vperm.xlu0 %5622, %v6084_v38  }
  0xa1   : > { %v6114_v43 = vpop.permute.xlu1 %717  ;;  %v6116_v44 = vpop.permute.xlu0 %707 }
  0xa2   : > { %782 = vperm.xlu1 %5623, %v6109_v41   ;;  %777 = vperm.xlu0 %5622, %v6112_v42  }
  0xa5   : > { %v6120_v45 = vpop.permute.xlu1 %722  ;;  %v6122_v46 = vpop.permute.xlu0 %712 }
  0xa6   : > { %904 = vperm.xlu1 %5623, %v6099_v39   ;;  %899 = vperm.xlu0 %5622, %v6102_v40  }
  0xa9   : > { %v6132_v49 = vpop.permute.xlu1 %732  ;;  %v6134_v50 = vpop.permute.xlu0 %727 }
  0xaa   : > { %914 = vperm.xlu1 %5623, %v6127_v47   ;;  %909 = vperm.xlu0 %5622, %v6130_v48  }
  0xad   : > { %v6138_v51 = vpop.permute.xlu1 %742  ;;  %v6140_v52 = vpop.permute.xlu0 %737 }
  0xae   : > { %8570 = vst [vmem:[#allocation16_spill] sm:$0xff] %v6138_v51  ;;  %8571 = vst [vmem:[#allocation17_spill] sm:$0xff] %v6140_v52  ;;  %1373 = vperm.xlu1 %5623, %v6031_v27   ;;  %1368 = vperm.xlu0 %5622, %v6034_v28  }
  0xb1   : > { %v6144_v53 = vpop.permute.xlu1 %844  ;;  %v6146_v54 = vpop.permute.xlu0 %839 }
  0xb2   : > { %1383 = vperm.xlu1 %5623, %v6037_v29   ;;  %1378 = vperm.xlu0 %5622, %v6040_v30  }
  0xb5   : > { %v6150_v55 = vpop.permute.xlu1 %854  ;;  %v6152_v56 = vpop.permute.xlu0 %849 }
  0xb6   : > { %1393 = vperm.xlu1 %5623, %v6045_v31   ;;  %1388 = vperm.xlu0 %5622, %v6048_v32  }
  0xb9   : > { %v6156_v57 = vpop.permute.xlu1 %864  ;;  %v6158_v58 = vpop.permute.xlu0 %859 }
  0xba   : > { %1403 = vperm.xlu1 %5623, %v6053_v33   ;;  %1398 = vperm.xlu0 %5622, %v6056_v34  }
  0xbd   : > { %v6162_v59 = vpop.permute.xlu1 %874  ;;  %v6164_v60 = vpop.permute.xlu0 %869 }
  0xbe   : > { %1413 = vperm.xlu1 %5623, %v6063_v35   ;;  %1408 = vperm.xlu0 %5622, %v6066_v36  }
  0xc1   : > { %v6174_v63 = vpop.permute.xlu1 %752  ;;  %v6176_v0 = vpop.permute.xlu0 %747 }
  0xc2   : > { %8572 = vst [vmem:[#allocation18_spill] sm:$0xff] %v6174_v63  ;;  %8573 = vst [vmem:[#allocation19_spill] sm:$0xff] %v6176_v0  ;;  %1423 = vperm.xlu1 %5623, %v6169_v61   ;;  %1418 = vperm.xlu0 %5622, %v6172_v62  }
  0xc5   : > { %v6186_v3 = vpop.permute.xlu1 %762  ;;  %v6188_v4 = vpop.permute.xlu0 %757 }
  0xc6   : > { %8574 = vst [vmem:[#allocation20_spill] sm:$0xff] %v6186_v3  ;;  %8575 = vst [vmem:[#allocation21_spill] sm:$0xff] %v6188_v4  ;;  %2003 = vperm.xlu1 %5623, %v6181_v1   ;;  %1998 = vperm.xlu0 %5622, %v6184_v2   ;;  %v6217_v4 = vld [vmem:[%s5942_s27 + $0xe1] sm:$0xff]  ;;  %v6220_v3 = vld [vmem:[%s5942_s27 + $0xd9] sm:$0xff] }
  0xc9   : > { %v6198_v11 = vpop.permute.xlu1 %884  ;;  %v6200_v12 = vpop.permute.xlu0 %879 }
  0xca   : > { %8576 = vst [vmem:[#allocation22_spill] sm:$0xff] %v6198_v11  ;;  %8577 = vst [vmem:[#allocation23_spill] sm:$0xff] %v6200_v12  ;;  %2013 = vperm.xlu1 %5623, %v6193_v9   ;;  %2008 = vperm.xlu0 %5622, %v6196_v10   ;;  %v6238_v11 = vld [vmem:[%s5942_s27 + $0xaa] sm:$0xff] }
  0xcd   : > { %v6210_v27 = vpop.permute.xlu1 %894  ;;  %v6212_v28 = vpop.permute.xlu0 %889 }
  0xce   : > { %8578 = vst [vmem:[#allocation24_spill] sm:$0xff] %v6210_v27  ;;  %8579 = vst [vmem:[#allocation25_spill] sm:$0xff] %v6212_v28  ;;  %2131 = vperm.xlu1 %5623, %v6205_v25   ;;  %2126 = vperm.xlu0 %5622, %v6208_v26   ;;  %v6235_v28 = vld [vmem:[%s5942_s27 + $0xb2] sm:$0xff] }
  0xd1   : > { %v6222_v0 = vpop.permute.xlu1 %976  ;;  %v6224_v12 = vpop.permute.xlu0 %971 }
  0xd2   : > { %8580 = vst [vmem:[#allocation26_spill] sm:$0xff] %v6222_v0  ;;  %8581 = vst [vmem:[#allocation27_spill] sm:$0xff] %v6224_v12  ;;  %2141 = vperm.xlu1 %5623, %v6217_v4   ;;  %2136 = vperm.xlu0 %5622, %v6220_v3  }
  0xd5   : > { %v6228_v63 = vpop.permute.xlu1 %986  ;;  %v6230_v27 = vpop.permute.xlu0 %981 }
  0xd6   : > { %8582 = vst [vmem:[#allocation28_spill] sm:$0xff] %v6228_v63  ;;  %8583 = vst [vmem:[#allocation29_spill] sm:$0xff] %v6230_v27  ;;  %1036 = vperm.xlu1 %5623, %v6169_v61   ;;  %1031 = vperm.xlu0 %5622, %v6172_v62  }
  0xd9   : > { %v6240_v52 = vpop.permute.xlu1 %996  ;;  %v6242_v0 = vpop.permute.xlu0 %991 }
  0xda   : > { %8584 = vst [vmem:[#allocation30_spill] sm:$0xff] %v6240_v52  ;;  %8585 = vst [vmem:[#allocation31_spill] sm:$0xff] %v6242_v0  ;;  %1046 = vperm.xlu1 %5623, %v6235_v28   ;;  %1041 = vperm.xlu0 %5622, %v6238_v11  }
  0xdd   : > { %v6246_v12 = vpop.permute.xlu1 %1006  ;;  %v6248_v63 = vpop.permute.xlu0 %1001 }
  0xde   : > { %1506 = vperm.xlu1 %5623, %v5955_v5   ;;  %1501 = vperm.xlu0 %5622, %v5958_v6  }
  0xe1   : > { %v6252_v27 = vpop.permute.xlu1 %1016  ;;  %v6254_v51 = vpop.permute.xlu0 %1011 }
  0xe2   : > { %1516 = vperm.xlu1 %5623, %v5963_v7   ;;  %1511 = vperm.xlu0 %5622, %v5966_v8  }
  0xe5   : > { %v6258_v0 = vpop.permute.xlu1 %1026  ;;  %v6260_v52 = vpop.permute.xlu0 %1021 }
  0xe6   : > { %1526 = vperm.xlu1 %5623, %v5995_v17   ;;  %1521 = vperm.xlu0 %5622, %v5998_v18  }
  0xe9   : > { %v6264_v5 = vpop.permute.xlu1 %1109  ;;  %v6266_v6 = vpop.permute.xlu0 %1104 }
  0xea   : > { %8586 = vst [vmem:[#allocation32_spill] sm:$0xff] %v6264_v5  ;;  %8587 = vst [vmem:[#allocation33_spill] sm:$0xff] %v6266_v6  ;;  %1536 = vperm.xlu1 %5623, %v6003_v19   ;;  %1531 = vperm.xlu0 %5622, %v6006_v20   ;;  %v6283_v19 = vld [vmem:[%s5942_s27 + $0xca] sm:$0xff]  ;;  %v6286_v20 = vld [vmem:[%s5942_s27 + $0xc2] sm:$0xff] }
  0xed   : > { %v6270_v7 = vpop.permute.xlu1 %1119  ;;  %v6272_v8 = vpop.permute.xlu0 %1114 }
  0xee   : > { %8588 = vst [vmem:[#allocation34_spill] sm:$0xff] %v6270_v7  ;;  %8589 = vst [vmem:[#allocation35_spill] sm:$0xff] %v6272_v8  ;;  %1546 = vperm.xlu1 %5623, %v6081_v37   ;;  %1541 = vperm.xlu0 %5622, %v6084_v38   ;;  %v6295_v37 = vld [vmem:[%s5942_s27 + $0xe2] sm:$0xff]  ;;  %v6298_v38 = vld [vmem:[%s5942_s27 + $0xda] sm:$0xff] }
  0xf1   : > { %v6276_v17 = vpop.permute.xlu1 %1129  ;;  %v6278_v18 = vpop.permute.xlu0 %1124 }
  0xf2   : > { %8590 = vst [vmem:[#allocation36_spill] sm:$0xff] %v6276_v17  ;;  %8591 = vst [vmem:[#allocation37_spill] sm:$0xff] %v6278_v18  ;;  %1556 = vperm.xlu1 %5623, %v6109_v41   ;;  %1551 = vperm.xlu0 %5622, %v6112_v42  }
  0xf5   : > { %v6288_v6 = vpop.permute.xlu1 %1139  ;;  %v6290_v7 = vpop.permute.xlu0 %1134 }
  0xf6   : > { %8592 = vst [vmem:[#allocation38_spill] sm:$0xff] %v6288_v6  ;;  %8593 = vst [vmem:[#allocation39_spill] sm:$0xff] %v6290_v7  ;;  %2259 = vperm.xlu1 %5623, %v6283_v19   ;;  %2254 = vperm.xlu0 %5622, %v6286_v20  }
  0xf9   : > { %v6300_v18 = vpop.permute.xlu1 %1149  ;;  %v6302_v17 = vpop.permute.xlu0 %1144 }
  0xfa   : > { %8594 = vst [vmem:[#allocation40_spill] sm:$0xff] %v6300_v18  ;;  %8595 = vst [vmem:[#allocation41_spill] sm:$0xff] %v6302_v17  ;;  %2269 = vperm.xlu1 %5623, %v6295_v37   ;;  %2264 = vperm.xlu0 %5622, %v6298_v38  }
  0xfd   : > { %v6306_v8 = vpop.permute.xlu1 %1159  ;;  %v6308_v6 = vpop.permute.xlu0 %1154 }
  0xfe   : > { %8596 = vst [vmem:[#allocation42_spill] sm:$0xff] %v6308_v6  ;;  %1169 = vperm.xlu1 %5623, %v6109_v41   ;;  %1164 = vperm.xlu0 %5622, %v6112_v42  }
 0x101   : > { %v6312_v7 = vpop.permute.xlu1 %1241  ;;  %v6314_v5 = vpop.permute.xlu0 %1236 }
 0x102   : > { %8597 = vst [vmem:[#allocation43_spill] sm:$0xff] %v6314_v5  ;;  %1179 = vperm.xlu1 %5623, %v6181_v1   ;;  %1174 = vperm.xlu0 %5622, %v6184_v2  }
 0x105   : > { %v6318_v17 = vpop.permute.xlu1 %1251  ;;  %v6320_v18 = vpop.permute.xlu0 %1246 }
 0x106   : > { %8598 = vst [vmem:[#allocation44_spill] sm:$0xff] %v6320_v18  ;;  %1638 = vperm.xlu1 %5623, %v5979_v13   ;;  %1633 = vperm.xlu0 %5622, %v5982_v14  }
 0x109   : > { %v6324_v6 = vpop.permute.xlu1 %1261  ;;  %v6326_v41 = vpop.permute.xlu0 %1256 }
 0x10a   : > { %1648 = vperm.xlu1 %5623, %v5987_v15   ;;  %1643 = vperm.xlu0 %5622, %v5990_v16  }
 0x10d   : > { %v6330_v42 = vpop.permute.xlu1 %1271  ;;  %v6332_v5 = vpop.permute.xlu0 %1266 }
 0x10e   : > { %1658 = vperm.xlu1 %5623, %v6011_v21   ;;  %1653 = vperm.xlu0 %5622, %v6014_v22  }
 0x111   : > { %v6336_v18 = vpop.permute.xlu1 %1281  ;;  %v6338_v13 = vpop.permute.xlu0 %1276 }
 0x112   : > { %1668 = vperm.xlu1 %5623, %v6019_v23   ;;  %1663 = vperm.xlu0 %5622, %v6022_v24   ;;  %v6361_v24 = vld [vmem:[%s5942_s27 + $0xf8] sm:$0xff] }
 0x115   : > { %v6342_v14 = vpop.permute.xlu1 %1291  ;;  %v6344_v15 = vpop.permute.xlu0 %1286 }
 0x116   : > { %8599 = vst [vmem:[#allocation45_spill] sm:$0xff] %v6344_v15  ;;  %1678 = vperm.xlu1 %5623, %v6099_v39   ;;  %1673 = vperm.xlu0 %5622, %v6102_v40   ;;  %v6364_v39 = vld [vmem:[%s5942_s27 + $0xf0] sm:$0xff] }
 0x119   : > { %v6348_v16 = vpop.permute.xlu1 %772  ;;  %v6350_v21 = vpop.permute.xlu0 %767 }
 0x11a   : > { %8600 = vst [vmem:[#allocation46_spill] sm:$0xff] %v6348_v16  ;;  %8601 = vst [vmem:[#allocation47_spill] sm:$0xff] %v6350_v21  ;;  %1688 = vperm.xlu1 %5623, %v6127_v47   ;;  %1683 = vperm.xlu0 %5622, %v6130_v48  }
 0x11d   : > { %v6354_v22 = vpop.permute.xlu1 %782  ;;  %v6356_v23 = vpop.permute.xlu0 %777 }
 0x11e   : > { %8602 = vst [vmem:[#allocation48_spill] sm:$0xff] %v6354_v22  ;;  %8603 = vst [vmem:[#allocation49_spill] sm:$0xff] %v6356_v23  ;;  %2388 = vperm.xlu1 %5623, %v6193_v9   ;;  %2383 = vperm.xlu0 %5622, %v6196_v10  }
 0x121   : > { %v6366_v40 = vpop.permute.xlu1 %904  ;;  %v6368_v16 = vpop.permute.xlu0 %899 }
 0x122   : > { %8604 = vst [vmem:[#allocation50_spill] sm:$0xff] %v6366_v40  ;;  %8605 = vst [vmem:[#allocation51_spill] sm:$0xff] %v6368_v16  ;;  %2398 = vperm.xlu1 %5623, %v6361_v24   ;;  %2393 = vperm.xlu0 %5622, %v6364_v39  }
 0x125   : > { %v6372_v21 = vpop.permute.xlu1 %914  ;;  %v6374_v22 = vpop.permute.xlu0 %909 }
 0x126   : > { %8606 = vst [vmem:[#allocation52_spill] sm:$0xff] %v6372_v21  ;;  %8607 = vst [vmem:[#allocation53_spill] sm:$0xff] %v6374_v22  ;;  %1301 = vperm.xlu1 %5623, %v6127_v47   ;;  %1296 = vperm.xlu0 %5622, %v6130_v48  }
 0x129   : > { %v6378_v23 = vpop.permute.xlu1 %1373  ;;  %v6380_v15 = vpop.permute.xlu0 %1368 }
 0x12a   : > { %1311 = vperm.xlu1 %5623, %v6205_v25   ;;  %1306 = vperm.xlu0 %5622, %v6208_v26  }
 0x12d   : > { %v6384_v16 = vpop.permute.xlu1 %1383  ;;  %v6386_v40 = vpop.permute.xlu0 %1378 }
 0x12e   : > { %1770 = vperm.xlu1 %5623, %v6037_v29   ;;  %1765 = vperm.xlu0 %5622, %v6040_v30  }
 0x131   : > { %v6390_v22 = vpop.permute.xlu1 %1393  ;;  %v6392_v47 = vpop.permute.xlu0 %1388 }
 0x132   : > { %1780 = vperm.xlu1 %5623, %v6045_v31   ;;  %1775 = vperm.xlu0 %5622, %v6048_v32  }
 0x135   : > { %v6396_v48 = vpop.permute.xlu1 %1403  ;;  %v6398_v25 = vpop.permute.xlu0 %1398 }
 0x136   : > { %1790 = vperm.xlu1 %5623, %v6053_v33   ;;  %1785 = vperm.xlu0 %5622, %v6056_v34   ;;  %v8485_v34 = vmov 0.0  }
 0x137   : > { %648 = vst.msk [vmem:[#allocation3 + $0x20] sm:$0xff] %vm642_vm0, %v8485_v34  ;;  %643 = vst.msk [vmem:[#allocation3] sm:$0xff] %vm642_vm0, %v8485_v34 }
 0x138   : > { %649 = vst.msk [vmem:[#allocation3 + $0x28] sm:$0x3] %vm644_vm1, %v8485_v34  ;;  %645 = vst.msk [vmem:[#allocation3 + $0x8] sm:$0x3] %vm644_vm1, %v8485_v34 }
 0x139   : > { %v6402_v26 = vpop.permute.xlu1 %1413  ;;  %v6404_v29 = vpop.permute.xlu0 %1408  ;;  %646 = vst.msk [vmem:[#allocation3 + $0x10] sm:$0xff] %vm642_vm0, %v8485_v34  ;;  %650 = vst.msk [vmem:[#allocation3 + $0x30] sm:$0xff] %vm642_vm0, %v8485_v34 }
 0x13a   : > { %8608 = vst [vmem:[#allocation54_spill] sm:$0xff] %v6404_v29  ;;  %1800 = vperm.xlu1 %5623, %v6063_v35   ;;  %1795 = vperm.xlu0 %5622, %v6066_v36   ;;  %647 = vst.msk [vmem:[#allocation3 + $0x18] sm:$0x3] %vm644_vm1, %v8485_v34 }
 0x13b   : > { %651 = vst.msk [vmem:[#allocation3 + $0x38] sm:$0x3] %vm644_vm1, %v8485_v34  ;;  %653 = vst.msk [vmem:[#allocation3 + $0x48] sm:$0x3] %vm644_vm1, %v8485_v34 }
 0x13c   : > { %652 = vst.msk [vmem:[#allocation3 + $0x40] sm:$0xff] %vm642_vm0, %v8485_v34  ;;  %654 = vst.msk [vmem:[#allocation3 + $0x50] sm:$0xff] %vm642_vm0, %v8485_v34 }
 0x13d   : > { %v6408_v30 = vpop.permute.xlu1 %1423  ;;  %v6410_v31 = vpop.permute.xlu0 %1418  ;;  %655 = vst.msk [vmem:[#allocation3 + $0x58] sm:$0x3] %vm644_vm1, %v8485_v34  ;;  %657 = vst.msk [vmem:[#allocation3 + $0x68] sm:$0x3] %vm644_vm1, %v8485_v34 }
 0x13e   : > { %8609 = vst [vmem:[#allocation55_spill] sm:$0xff] %v6408_v30  ;;  %8610 = vst [vmem:[#allocation56_spill] sm:$0xff] %v6410_v31  ;;  %1810 = vperm.xlu1 %5623, %v6169_v61   ;;  %1805 = vperm.xlu0 %5622, %v6172_v62   ;;  %v6467_v61 = vld [vmem:[%s5942_s27 + $0xf9] sm:$0xff]  ;;  %v6470_v62 = vld [vmem:[%s5942_s27 + $0xf1] sm:$0xff] }
 0x13f   : > { %656 = vst.msk [vmem:[#allocation3 + $0x60] sm:$0xff] %vm642_vm0, %v8485_v34  ;;  %658 = vst.msk [vmem:[#allocation3 + $0x70] sm:$0xff] %vm642_vm0, %v8485_v34  ;;  %v6542_v31 = vld [vmem:[%s5942_s27 + $0x138] sm:$0xff] }
 0x140   : > { %659 = vst.msk [vmem:[#allocation3 + $0x78] sm:$0x3] %vm644_vm1, %v8485_v34  ;;  %661 = vst.msk [vmem:[#allocation3 + $0x88] sm:$0x3] %vm644_vm1, %v8485_v34 }
 0x141   : > { %v6414_v32 = vpop.permute.xlu1 %2003  ;;  %v6416_v33 = vpop.permute.xlu0 %1998  ;;  %660 = vst.msk [vmem:[#allocation3 + $0x80] sm:$0xff] %vm642_vm0, %v8485_v34  ;;  %662 = vst.msk [vmem:[#allocation3 + $0x90] sm:$0xff] %vm642_vm0, %v8485_v34 }
 0x142   : > { %8611 = vst [vmem:[#allocation57_spill] sm:$0xff] %v6414_v32  ;;  %8612 = vst [vmem:[#allocation58_spill] sm:$0xff] %v6416_v33  ;;  %1820 = vperm.xlu1 %5623, %v6235_v28   ;;  %1815 = vperm.xlu0 %5622, %v6238_v11  }
 0x143   : > { %663 = vst.msk [vmem:[#allocation3 + $0x98] sm:$0x3] %vm644_vm1, %v8485_v34  ;;  %8615 = vst [vmem:[#allocation61_spill] sm:$0xff] %v6467_v61 }
 0x144   : > { %8616 = vst [vmem:[#allocation62_spill] sm:$0xff] %v6470_v62  ;;  %8638 = vst [vmem:[#allocation84_spill] sm:$0xff] %v6542_v31 }
 0x145   : > { %v6460_v35 = vpop.permute.xlu1 %2013  ;;  %v6462_v36 = vpop.permute.xlu0 %2008 }
 0x146   : > { %8613 = vst [vmem:[#allocation59_spill] sm:$0xff] %v6460_v35  ;;  %8614 = vst [vmem:[#allocation60_spill] sm:$0xff] %v6462_v36  ;;  %2516 = vperm.xlu1 %5623, %v6217_v4   ;;  %2511 = vperm.xlu0 %5622, %v6220_v3  }
 0x149   : > { %v6472_v33 = vpop.permute.xlu1 %2131  ;;  %v6474_v32 = vpop.permute.xlu0 %2126 }
 0x14a   : > { %8617 = vst [vmem:[#allocation63_spill] sm:$0xff] %v6472_v33  ;;  %8618 = vst [vmem:[#allocation64_spill] sm:$0xff] %v6474_v32  ;;  %2526 = vperm.xlu1 %5623, %v6467_v61   ;;  %2521 = vperm.xlu0 %5622, %v6470_v62   ;;  %v6515_v33 = vld [vmem:[%s5942_s27 + $0x111] sm:$0xff] }
 0x14b   : > { %8629 = vst [vmem:[#allocation75_spill] sm:$0xff] %v6515_v33 }
 0x14d   : > { %v6478_v34 = vpop.permute.xlu1 %2141  ;;  %v6480_v36 = vpop.permute.xlu0 %2136 }
 0x14e   : > { %8619 = vst [vmem:[#allocation65_spill] sm:$0xff] %v6478_v34  ;;  %8620 = vst [vmem:[#allocation66_spill] sm:$0xff] %v6480_v36  ;;  %1433 = vperm.xlu1 %5623, %v6235_v28   ;;  %1428 = vperm.xlu0 %5622, %v6238_v11   ;;  %v6497_v28 = vld [vmem:[%s5942_s27 + $0x110] sm:$0xff]  ;;  %v6500_v11 = vld [vmem:[%s5942_s27 + $0x108] sm:$0xff] }
 0x151   : > { %v6484_v3 = vpop.permute.xlu1 %1036  ;;  %v6486_v4 = vpop.permute.xlu0 %1031 }
 0x152   : > { %8621 = vst [vmem:[#allocation67_spill] sm:$0xff] %v6484_v3  ;;  %8622 = vst [vmem:[#allocation68_spill] sm:$0xff] %v6486_v4  ;;  %1443 = vperm.xlu1 %5623, %v6283_v19   ;;  %1438 = vperm.xlu0 %5622, %v6286_v20   ;;  %v6527_v4 = vld [vmem:[%s5942_s27 + $0x128] sm:$0xff]  ;;  %v6530_v3 = vld [vmem:[%s5942_s27 + $0x120] sm:$0xff] }
 0x153   : > { %8633 = vst [vmem:[#allocation79_spill] sm:$0xff] %v6527_v4  ;;  %8634 = vst [vmem:[#allocation80_spill] sm:$0xff] %v6530_v3 }
 0x155   : > { %v6490_v35 = vpop.permute.xlu1 %1046  ;;  %v6492_v32 = vpop.permute.xlu0 %1041 }
 0x156   : > { %8623 = vst [vmem:[#allocation69_spill] sm:$0xff] %v6490_v35  ;;  %8624 = vst [vmem:[#allocation70_spill] sm:$0xff] %v6492_v32  ;;  %2023 = vperm.xlu1 %5623, %v6361_v24   ;;  %2018 = vperm.xlu0 %5622, %v6364_v39   ;;  %v6518_v32 = vld [vmem:[%s5942_s27 + $0x109] sm:$0xff] }
 0x157   : > { %8630 = vst [vmem:[#allocation76_spill] sm:$0xff] %v6518_v32 }
 0x159   : > { %v6502_v36 = vpop.permute.xlu1 %1506  ;;  %v6504_v19 = vpop.permute.xlu0 %1501 }
 0x15a   : > { %8625 = vst [vmem:[#allocation71_spill] sm:$0xff] %v6502_v36  ;;  %8626 = vst [vmem:[#allocation72_spill] sm:$0xff] %v6504_v19  ;;  %2033 = vperm.xlu1 %5623, %v6497_v28   ;;  %2028 = vperm.xlu0 %5622, %v6500_v11   ;;  %v8686_v19 = vld [vmem:[#allocation31_spill] sm:$0xff] }
 0x15d   : > { %v6508_v20 = vpop.permute.xlu1 %1516  ;;  %v6510_v34 = vpop.permute.xlu0 %1511 }
 0x15e   : > { %8627 = vst [vmem:[#allocation73_spill] sm:$0xff] %v6508_v20  ;;  %8628 = vst [vmem:[#allocation74_spill] sm:$0xff] %v6510_v34  ;;  %2151 = vperm.xlu1 %5623, %v6467_v61   ;;  %2146 = vperm.xlu0 %5622, %v6470_v62  }
 0x161   : > { %v6520_v35 = vpop.permute.xlu1 %1526  ;;  %v6522_v21 = vpop.permute.xlu0 %1521 }
 0x162   : > { %8631 = vst [vmem:[#allocation77_spill] sm:$0xff] %v6520_v35  ;;  %8632 = vst [vmem:[#allocation78_spill] sm:$0xff] %v6522_v21  ;;  %2161 = vperm.xlu1 %5623, %v6515_v33   ;;  %2156 = vperm.xlu0 %5622, %v6518_v32   ;;  %v6539_v21 = vld [vmem:[%s5942_s27 + $0x140] sm:$0xff] }
 0x163   : > { %8637 = vst [vmem:[#allocation83_spill] sm:$0xff] %v6539_v21 }
 0x165   : > { %v6532_v61 = vpop.permute.xlu1 %1536  ;;  %v6534_v62 = vpop.permute.xlu0 %1531 }
 0x166   : > { %8635 = vst [vmem:[#allocation81_spill] sm:$0xff] %v6532_v61  ;;  %8636 = vst [vmem:[#allocation82_spill] sm:$0xff] %v6534_v62  ;;  %2043 = vperm.xlu1 %5623, %v6527_v4   ;;  %2038 = vperm.xlu0 %5622, %v6530_v3   ;;  %v6551_v61 = vld [vmem:[%s5942_s27 + $0x129] sm:$0xff]  ;;  %v6554_v62 = vld [vmem:[%s5942_s27 + $0x121] sm:$0xff] }
 0x167   : > { %8641 = vst [vmem:[#allocation87_spill] sm:$0xff] %v6551_v61  ;;  %8642 = vst [vmem:[#allocation88_spill] sm:$0xff] %v6554_v62 }
 0x169   : > { %v6544_v33 = vpop.permute.xlu1 %1546  ;;  %v6546_v32 = vpop.permute.xlu0 %1541 }
 0x16a   : > { %8639 = vst [vmem:[#allocation85_spill] sm:$0xff] %v6544_v33  ;;  %8640 = vst [vmem:[#allocation86_spill] sm:$0xff] %v6546_v32  ;;  %2053 = vperm.xlu1 %5623, %v6539_v21   ;;  %2048 = vperm.xlu0 %5622, %v6542_v31   ;;  %v6563_v33 = vld [vmem:[%s5942_s27 + $0x141] sm:$0xff]  ;;  %v6566_v32 = vld [vmem:[%s5942_s27 + $0x139] sm:$0xff] }
 0x16b   : > { %8645 = vst [vmem:[#allocation91_spill] sm:$0xff] %v6563_v33  ;;  %8646 = vst [vmem:[#allocation92_spill] sm:$0xff] %v6566_v32 }
 0x16d   : > { %v6556_v4 = vpop.permute.xlu1 %1556  ;;  %v6558_v3 = vpop.permute.xlu0 %1551 }
 0x16e   : > { %8643 = vst [vmem:[#allocation89_spill] sm:$0xff] %v6556_v4  ;;  %8644 = vst [vmem:[#allocation90_spill] sm:$0xff] %v6558_v3  ;;  %2171 = vperm.xlu1 %5623, %v6551_v61   ;;  %2166 = vperm.xlu0 %5622, %v6554_v62   ;;  %v6581_v62 = vld [vmem:[%s5942_s27 + $0xfa] sm:$0xff]  ;;  %v6584_v61 = vld [vmem:[%s5942_s27 + $0xf2] sm:$0xff] }
 0x16f   : > { %8651 = vst [vmem:[#allocation97_spill] sm:$0xff] %v6581_v62  ;;  %8652 = vst [vmem:[#allocation98_spill] sm:$0xff] %v6584_v61 }
 0x171   : > { %v6568_v21 = vpop.permute.xlu1 %2259  ;;  %v6570_v31 = vpop.permute.xlu0 %2254 }
 0x172   : > { %8647 = vst [vmem:[#allocation93_spill] sm:$0xff] %v6568_v21  ;;  %8648 = vst [vmem:[#allocation94_spill] sm:$0xff] %v6570_v31  ;;  %2181 = vperm.xlu1 %5623, %v6563_v33   ;;  %2176 = vperm.xlu0 %5622, %v6566_v32   ;;  %v8665_v33 = vld [vmem:[#allocation17_spill] sm:$0xff] }
 0x175   : > { %v6574_v35 = vpop.permute.xlu1 %2269  ;;  %v6576_v4 = vpop.permute.xlu0 %2264 }
 0x176   : > { %8649 = vst [vmem:[#allocation95_spill] sm:$0xff] %v6574_v35  ;;  %8650 = vst [vmem:[#allocation96_spill] sm:$0xff] %v6576_v4  ;;  %2644 = vperm.xlu1 %5623, %v6295_v37   ;;  %2639 = vperm.xlu0 %5622, %v6298_v38   ;;  %v6601_v37 = vld [vmem:[%s8657_s25] ss:$0 sm:$0xff]  ;;  %v6606_v38 = vld [vmem:[%s8657_s25 + $0x1] ss:$0 sm:$0xff] }
 0x177   : > { %8658 = vst [vmem:[#allocation103_spill] sm:$0xff] %v6601_v37  ;;  %8659 = vst [vmem:[#allocation104_spill] sm:$0xff] %v6606_v38  ;;  %v794_v32 = vmul.f32 %v6601_v37, %v6132_v49 }
 0x179   : > { %v6586_v3 = vpop.permute.xlu1 %1169  ;;  %v6588_v21 = vpop.permute.xlu0 %1164 }
 0x17a   : > { %8653 = vst [vmem:[#allocation99_spill] sm:$0xff] %v6586_v3  ;;  %8654 = vst [vmem:[#allocation100_spill] sm:$0xff] %v6588_v21  ;;  %2654 = vperm.xlu1 %5623, %v6581_v62   ;;  %2649 = vperm.xlu0 %5622, %v6584_v61   ;;  %v923_v3 = vmul.f32 %v6606_v38, %v6152_v56 }
 0x17d   : > { %v6592_v31 = vpop.permute.xlu1 %1179  ;;  %v6594_v35 = vpop.permute.xlu0 %1174 }
 0x17e   : > { %8655 = vst [vmem:[#allocation101_spill] sm:$0xff] %v6592_v31  ;;  %8656 = vst [vmem:[#allocation102_spill] sm:$0xff] %v6594_v35  ;;  %1566 = vperm.xlu1 %5623, %v6181_v1   ;;  %1561 = vperm.xlu0 %5622, %v6184_v2   ;;  %v791_v1 = vmul.f32 %v6601_v37, %v6114_v43  ;;  %v922_v2 = vmul.f32 %v6606_v38, %v6144_v53 }
 0x17f   : > { %v921_v35 = vmul.f32 %v6606_v38, %v6146_v54  ;;  %v924_v31 = vmul.f32 %v6606_v38, %v6150_v55  ;;  %v925_v43 = vmul.f32 %v6606_v38, %v6158_v58  ;;  %v928_v53 = vmul.f32 %v6606_v38, %v6162_v59  ;;  %v8664_v59 = vld [vmem:[#allocation16_spill] sm:$0xff] }
 0x180   : > { %v927_v54 = vmul.f32 %v6606_v38, %v6164_v60  ;;  %v793_v58 = vmul.f32 %v6601_v37, %v6134_v50  ;;  %v796_v60 = vmul.f32 %v6601_v37, %v8664_v59 }
 0x181   : > { %v6608_v4 = vpop.permute.xlu1 %1638  ;;  %v6610_v21 = vpop.permute.xlu0 %1633 }
 0x182   : > { %8660 = vst [vmem:[#allocation105_spill] sm:$0xff] %v6608_v4  ;;  %8661 = vst [vmem:[#allocation106_spill] sm:$0xff] %v6610_v21  ;;  %1576 = vperm.xlu1 %5623, %v6193_v9   ;;  %1571 = vperm.xlu0 %5622, %v6196_v10   ;;  %v926_v9 = vmul.f32 %v6606_v38, %v6156_v57  ;;  %v790_v10 = vmul.f32 %v6601_v37, %v6122_v46 }
 0x183   : > { %v789_v57 = vmul.f32 %v6601_v37, %v6116_v44  ;;  %v792_v46 = vmul.f32 %v6601_v37, %v6120_v45  ;;  %v6656_v45 = vld [vmem:[%s5942_s27 + $0x10a] sm:$0xff]  ;;  %v939_v4 = vadd.f32 %v923_v3, %v791_v1  ;;  %v941_v50 = vadd.f32 %v925_v43, %v793_v58  ;;  %v8674_v1 = vld [vmem:[#allocation24_spill] sm:$0xff]  ;;  %v8675_v43 = vld [vmem:[#allocation19_spill] sm:$0xff] }
 0x184   : > { %v938_v44 = vadd.f32 %v922_v2, %v790_v10  ;;  %8667 = vst [vmem:[#allocation17_spill] sm:$0xff] %v6656_v45  ;;  %v944_v59 = vadd.f32 %v928_v53, %v796_v60  ;;  %v797_v53 = vmul.f32 %v6601_v37, %v8675_v43  ;;  %v8678_v58 = vld [vmem:[#allocation27_spill] sm:$0xff]  ;;  %v8683_v43 = vld [vmem:[#allocation29_spill] sm:$0xff] }
 0x185   : > { %v6634_v55 = vpop.permute.xlu1 %1648  ;;  %v6636_v56 = vpop.permute.xlu0 %1643  ;;  %v937_v21 = vadd.f32 %v921_v35, %v789_v57  ;;  %v940_v49 = vadd.f32 %v924_v31, %v792_v46  ;;  %v8672_v31 = vld [vmem:[#allocation18_spill] sm:$0xff]  ;;  %v8673_v35 = vld [vmem:[#allocation23_spill] sm:$0xff] }
 0x186   : > { %8662 = vst [vmem:[#allocation107_spill] sm:$0xff] %v6634_v55  ;;  %8663 = vst [vmem:[#allocation108_spill] sm:$0xff] %v6636_v56  ;;  %2279 = vperm.xlu1 %5623, %v6581_v62   ;;  %2274 = vperm.xlu0 %5622, %v6584_v61   ;;  %v795_v56 = vmul.f32 %v6601_v37, %v8665_v33  ;;  %v6653_v55 = vld [vmem:[%s5942_s27 + $0x112] sm:$0xff]  ;;  %v942_v62 = vadd.f32 %v926_v9, %v794_v32  ;;  %v6661_v61 = vld [vmem:[%s8657_s25 + $0x2] ss:$0 sm:$0xff] }
 0x187   : > { %8666 = vst [vmem:[#allocation16_spill] sm:$0xff] %v6653_v55  ;;  %8668 = vst [vmem:[#allocation109_spill] sm:$0xff] %v6661_v61  ;;  %v8669_v33 = vld [vmem:[#allocation22_spill] sm:$0xff]  ;;  %v798_v32 = vmul.f32 %v6601_v37, %v8672_v31  ;;  %v929_v3 = vmul.f32 %v6606_v38, %v8673_v35  ;;  %v932_v9 = vmul.f32 %v6606_v38, %v8674_v1  ;;  %v6689_v31 = vld [vmem:[%s5942_s27 + $0x122] sm:$0xff] }
 0x188   : > { %v943_v34 = vadd.f32 %v927_v54, %v795_v56  ;;  %v930_v2 = vmul.f32 %v6606_v38, %v8669_v33  ;;  %v8676_v54 = vld [vmem:[#allocation25_spill] sm:$0xff]  ;;  %v8677_v57 = vld [vmem:[#allocation26_spill] sm:$0xff]  ;;  %v1053_v60 = vmul.f32 %v6661_v61, %v8678_v58  ;;  %8680 = vst [vmem:[#allocation23_spill] sm:$0xff] %v6689_v31  ;;  %v8681_v35 = vld [vmem:[#allocation20_spill] sm:$0xff]  ;;  %v1057_v30 = vmul.f32 %v6661_v61, %v8686_v19 }
 0x189   : > { %v6665_v10 = vpop.permute.xlu1 %1658  ;;  %v6667_v20 = vpop.permute.xlu0 %1653  ;;  %v931_v56 = vmul.f32 %v6606_v38, %v8676_v54  ;;  %v1054_v46 = vmul.f32 %v6661_v61, %v8677_v57  ;;  %v6686_v33 = vld [vmem:[%s5942_s27 + $0x12a] sm:$0xff]  ;;  %v800_v1 = vmul.f32 %v6601_v37, %v8681_v35  ;;  %v8684_v54 = vld [vmem:[#allocation30_spill] sm:$0xff]  ;;  %v1060_v35 = vmul.f32 %v6661_v61, %v6246_v12  ;;  %v6718_v12 = vld [vmem:[%s8657_s25 + $0x3] ss:$0 sm:$0xff] }
 0x18a   : > { %8670 = vst [vmem:[#allocation22_spill] sm:$0xff] %v6665_v10  ;;  %8671 = vst [vmem:[#allocation110_spill] sm:$0xff] %v6667_v20  ;;  %2289 = vperm.xlu1 %5623, %v6653_v55   ;;  %2284 = vperm.xlu0 %5622, %v6656_v45   ;;  %v8682_v45 = vld [vmem:[#allocation28_spill] sm:$0xff]  ;;  %v1055_v20 = vmul.f32 %v6661_v61, %v8683_v43  ;;  %v1058_v38 = vmul.f32 %v6661_v61, %v8684_v54  ;;  %v8685_v57 = vld [vmem:[#allocation21_spill] sm:$0xff] }
 0x18b   : > { %8679 = vst [vmem:[#allocation18_spill] sm:$0xff] %v6686_v33  ;;  %v1056_v55 = vmul.f32 %v6661_v61, %v8682_v45  ;;  %v799_v10 = vmul.f32 %v6601_v37, %v8685_v57  ;;  %v946_v58 = vadd.f32 %v930_v2, %v798_v32  ;;  %v945_v43 = vadd.f32 %v929_v3, %v797_v53  ;;  %v6721_v3 = vld [vmem:[%s5942_s27 + $0x142] sm:$0xff] }
 0x18c   : > { %v948_v29 = vadd.f32 %v932_v9, %v800_v1  ;;  %v1059_v54 = vmul.f32 %v6661_v61, %v6248_v63  ;;  %v1070_v32 = vadd.f32 %v1054_v46, %v938_v44  ;;  %v1069_v57 = vadd.f32 %v1053_v60, %v937_v21  ;;  %8687 = vst [vmem:[#allocation24_spill] sm:$0xff] %v6721_v3  ;;  %v6724_v9 = vld [vmem:[%s5942_s27 + $0x13a] sm:$0xff] }
 0x18d   : > { %v6705_v36 = vpop.permute.xlu1 %1668  ;;  %v6707_v45 = vpop.permute.xlu0 %1663  ;;  %v947_v2 = vadd.f32 %v931_v56, %v799_v10  ;;  %v1062_v19 = vmul.f32 %v6661_v61, %v6252_v27  ;;  %8688 = vst [vmem:[#allocation19_spill] sm:$0xff] %v6724_v9  ;;  %v1072_v63 = vadd.f32 %v1056_v55, %v940_v49  ;;  %v1071_v53 = vadd.f32 %v1055_v20, %v939_v4  ;;  %v8693_v55 = vld [vmem:[#allocation36_spill] sm:$0xff] }
 0x18e   : > { %2299 = vperm.xlu1 %5623, %v6686_v33   ;;  %2294 = vperm.xlu0 %5622, %v6689_v31   ;;  %v1074_v1 = vadd.f32 %v1058_v38, %v942_v62  ;;  %v1061_v10 = vmul.f32 %v6661_v61, %v6254_v51  ;;  %v1073_v44 = vadd.f32 %v1057_v30, %v941_v50  ;;  %v8689_v31 = vld [vmem:[#allocation32_spill] sm:$0xff]  ;;  %v8690_v62 = vld [vmem:[#allocation33_spill] sm:$0xff] }
 0x18f   : > { %v1076_v21 = vadd.f32 %v1060_v35, %v944_v59  ;;  %v1064_v27 = vmul.f32 %v6661_v61, %v6258_v0  ;;  %v1063_v56 = vmul.f32 %v6661_v61, %v6260_v52  ;;  %v1075_v37 = vadd.f32 %v1059_v54, %v943_v34  ;;  %v8691_v0 = vld [vmem:[#allocation34_spill] sm:$0xff]  ;;  %v8692_v52 = vld [vmem:[#allocation35_spill] sm:$0xff]  ;;  %v8694_v50 = vld [vmem:[#allocation37_spill] sm:$0xff] }
 0x190   : > { %v1187_v4 = vmul.f32 %v6718_v12, %v8689_v31  ;;  %v1186_v20 = vmul.f32 %v6718_v12, %v8690_v62  ;;  %v1078_v51 = vadd.f32 %v1062_v19, %v946_v58  ;;  %v1189_v30 = vmul.f32 %v6718_v12, %v8691_v0  ;;  %v8695_v31 = vld [vmem:[#allocation38_spill] sm:$0xff]  ;;  %v8696_v54 = vld [vmem:[#allocation39_spill] sm:$0xff]  ;;  %v8697_v61 = vld [vmem:[#allocation40_spill] sm:$0xff] }
 0x191   : > { %v6732_v46 = vpop.permute.xlu1 %1678  ;;  %v6734_v60 = vpop.permute.xlu0 %1673  ;;  %v1188_v38 = vmul.f32 %v6718_v12, %v8692_v52  ;;  %v1191_v34 = vmul.f32 %v6718_v12, %v8693_v55  ;;  %v1077_v49 = vadd.f32 %v1061_v10, %v945_v43  ;;  %v1190_v59 = vmul.f32 %v6718_v12, %v8694_v50  ;;  %v6761_v43 = vld [vmem:[%s8657_s25 + $0x4] ss:$0 sm:$0xff] }
 0x192   : > { %2309 = vperm.xlu1 %5623, %v6721_v3   ;;  %2304 = vperm.xlu0 %5622, %v6724_v9   ;;  %v1193_v35 = vmul.f32 %v6718_v12, %v8695_v31  ;;  %v1192_v62 = vmul.f32 %v6718_v12, %v8696_v54  ;;  %v1080_v58 = vadd.f32 %v1064_v27, %v948_v29  ;;  %v8698_v9 = vld [vmem:[#allocation41_spill] sm:$0xff]  ;;  %v8699_v27 = vld [vmem:[#allocation42_spill] sm:$0xff] }
 0x193   : > { %v1079_v19 = vadd.f32 %v1063_v56, %v947_v2  ;;  %v1195_v0 = vmul.f32 %v6718_v12, %v8697_v61  ;;  %v1194_v52 = vmul.f32 %v6718_v12, %v8698_v9  ;;  %v1203_v50 = vadd.f32 %v1187_v4, %v1070_v32 }
 0x194   : > { %v1202_v31 = vadd.f32 %v1186_v20, %v1069_v57  ;;  %v1197_v29 = vmul.f32 %v6718_v12, %v6306_v8  ;;  %v1205_v61 = vadd.f32 %v1189_v30, %v1072_v63  ;;  %v1204_v2 = vadd.f32 %v1188_v38, %v1071_v53  ;;  %v8700_v8 = vld [vmem:[#allocation43_spill] sm:$0xff] }
 0x195   : > { %v6763_v10 = vpop.permute.xlu1 %1688  ;;  %v6765_v55 = vpop.permute.xlu0 %1683  ;;  %v1207_v9 = vadd.f32 %v1191_v34, %v1074_v1  ;;  %v1196_v56 = vmul.f32 %v6718_v12, %v8699_v27  ;;  %v1206_v54 = vadd.f32 %v1190_v59, %v1073_v44  ;;  %v1209_v3 = vadd.f32 %v1193_v35, %v1076_v21  ;;  %v8701_v44 = vld [vmem:[#allocation44_spill] sm:$0xff]  ;;  %v5106_v27 = vld [vmem:[%s5942_s27 + $0xd9] sm:$0xff] }
 0x196   : > { %2773 = vperm.xlu1 %5623, %v6361_v24   ;;  %2768 = vperm.xlu0 %5622, %v6364_v39   ;;  %v1208_v33 = vadd.f32 %v1192_v62, %v1075_v37  ;;  %v1319_v32 = vmul.f32 %v6761_v43, %v6312_v7  ;;  %v1211_v57 = vadd.f32 %v1195_v0, %v1078_v51  ;;  %v6790_v21 = vld [vmem:[%s8657_s25 + $0x5] ss:$0 sm:$0xff] }
 0x197   : > { %v1210_v4 = vadd.f32 %v1194_v52, %v1077_v49  ;;  %v1318_v24 = vmul.f32 %v6761_v43, %v8700_v8  ;;  %v1321_v39 = vmul.f32 %v6761_v43, %v6318_v17  ;;  %v1213_v1 = vadd.f32 %v1197_v29, %v1080_v58  ;;  %v5104_v38 = vld [vmem:[%s5942_s27 + $0xc1] sm:$0xff] }
 0x198   : > { %v1320_v37 = vmul.f32 %v6761_v43, %v8701_v44  ;;  %v1323_v7 = vmul.f32 %v6761_v43, %v6324_v6  ;;  %v1212_v17 = vadd.f32 %v1196_v56, %v1079_v19  ;;  %v1322_v20 = vmul.f32 %v6761_v43, %v6326_v41  ;;  %v5105_v6 = vld [vmem:[%s5942_s27 + $0xc9] sm:$0xff]  ;;  %v8704_v44 = vld [vmem:[#allocation71_spill] sm:$0xff] }
 0x199   : > { %v6779_v63 = vpop.permute.xlu1 %2388  ;;  %v6781_v53 = vpop.permute.xlu0 %2383  ;;  %v1325_v51 = vmul.f32 %v6761_v43, %v6330_v42  ;;  %v1324_v30 = vmul.f32 %v6761_v43, %v6332_v5  ;;  %v1335_v34 = vadd.f32 %v1319_v32, %v1203_v50  ;;  %v1327_v49 = vmul.f32 %v6761_v43, %v6336_v18  ;;  %v8702_v42 = vld [vmem:[#allocation45_spill] sm:$0xff] }
 0x19a   : > { %2783 = vperm.xlu1 %5623, %v6497_v28   ;;  %2778 = vperm.xlu0 %5622, %v6500_v11   ;;  %v1326_v59 = vmul.f32 %v6761_v43, %v6338_v13  ;;  %v1329_v35 = vmul.f32 %v6761_v43, %v6342_v14  ;;  %v1334_v41 = vadd.f32 %v1318_v24, %v1202_v31  ;;  %v6846_v24 = vld [vmem:[%s8657_s25 + $0x7] ss:$0 sm:$0xff] }
 0x19b   : > { %v1337_v62 = vadd.f32 %v1321_v39, %v1205_v61  ;;  %v1328_v58 = vmul.f32 %v6761_v43, %v8702_v42  ;;  %v1451_v5 = vmul.f32 %v6790_v21, %v6378_v23  ;;  %v1336_v18 = vadd.f32 %v1320_v37, %v1204_v2  ;;  %v5107_v61 = vld [vmem:[%s5942_s27 + $0xe1] sm:$0xff]  ;;  %v8703_v39 = vld [vmem:[#allocation54_spill] sm:$0xff] }
 0x19c   : > { %v1339_v52 = vadd.f32 %v1323_v7, %v1207_v9  ;;  %v1450_v13 = vmul.f32 %v6790_v21, %v6380_v15  ;;  %v1338_v14 = vadd.f32 %v1322_v20, %v1206_v54  ;;  %v1341_v50 = vadd.f32 %v1325_v51, %v1209_v3  ;;  %v6827_v15 = vld [vmem:[%s8657_s25 + $0x6] ss:$0 sm:$0xff]  ;;  %v8705_v7 = vld [vmem:[#allocation55_spill] sm:$0xff]  ;;  %v8707_v51 = vld [vmem:[#allocation73_spill] sm:$0xff] }
 0x19d   : > { %v6812_v19 = vpop.permute.xlu1 %2398  ;;  %v6814_v0 = vpop.permute.xlu0 %2393  ;;  %v1340_v31 = vadd.f32 %v1324_v30, %v1208_v33  ;;  %v1453_v29 = vmul.f32 %v6790_v21, %v6384_v16  ;;  %v1343_v23 = vadd.f32 %v1327_v49, %v1211_v57  ;;  %v1342_v56 = vadd.f32 %v1326_v59, %v1210_v4  ;;  %v8709_v49 = vld [vmem:[#allocation105_spill] sm:$0xff] }
 0x19e   : > { %1698 = vperm.xlu1 %5623, %v5105_v6   ;;  %1693 = vperm.xlu0 %5622, %v5104_v38   ;;  %v1345_v32 = vadd.f32 %v1329_v35, %v1213_v1  ;;  %v1452_v2 = vmul.f32 %v6790_v21, %v6386_v40  ;;  %v6829_v9 = vadd.f32 %v1328_v58, %v1212_v17  ;;  %v8706_v17 = vld [vmem:[#allocation72_spill] sm:$0xff]  ;;  %v8710_v58 = vld [vmem:[#allocation106_spill] sm:$0xff] }
 0x19f   : > { %v1467_v3 = vadd.f32 %v1451_v5, %v1335_v34  ;;  %v1455_v33 = vmul.f32 %v6790_v21, %v6390_v22  ;;  %v1454_v16 = vmul.f32 %v6790_v21, %v6392_v47  ;;  %v1466_v4 = vadd.f32 %v1450_v13, %v1334_v41  ;;  %v8708_v34 = vld [vmem:[#allocation74_spill] sm:$0xff] }
 0x1a0   : > { %v1457_v40 = vmul.f32 %v6790_v21, %v6396_v48  ;;  %v1456_v8 = vmul.f32 %v6790_v21, %v6398_v25  ;;  %v1469_v22 = vadd.f32 %v1453_v29, %v1337_v62  ;;  %v1459_v47 = vmul.f32 %v6790_v21, %v6402_v26 }
 0x1a1   : > { %v6835_v54 = vpop.permute.xlu1 %1301  ;;  %v6837_v57 = vpop.permute.xlu0 %1296  ;;  %v1458_v1 = vmul.f32 %v6790_v21, %v8703_v39  ;;  %v1584_v48 = vmul.f32 %v6827_v15, %v8704_v44  ;;  %v1468_v37 = vadd.f32 %v1452_v2, %v1336_v18  ;;  %v1461_v25 = vmul.f32 %v6790_v21, %v8705_v7  ;;  %v8716_v44 = vld [vmem:[#allocation80_spill] sm:$0xff] }
 0x1a2   : > { %1708 = vperm.xlu1 %5623, %v5107_v61   ;;  %1703 = vperm.xlu0 %5622, %v5106_v27   ;;  %v1583_v20 = vmul.f32 %v6827_v15, %v8706_v17  ;;  %v1586_v30 = vmul.f32 %v6827_v15, %v8707_v51  ;;  %v1471_v6 = vadd.f32 %v1455_v33, %v1339_v52  ;;  %v6877_v61 = vld [vmem:[%s8657_s25 + $0x8] ss:$0 sm:$0xff]  ;;  %v8721_v51 = vld [vmem:[#allocation85_spill] sm:$0xff] }
 0x1a3   : > { %v1470_v38 = vadd.f32 %v1454_v16, %v1338_v14  ;;  %v1585_v26 = vmul.f32 %v6827_v15, %v8708_v34  ;;  %v1716_v59 = vmul.f32 %v6846_v24, %v8709_v49  ;;  %v1473_v62 = vadd.f32 %v1457_v40, %v1341_v50  ;;  %v8711_v14 = vld [vmem:[#allocation77_spill] sm:$0xff]  ;;  %v8714_v33 = vld [vmem:[#allocation108_spill] sm:$0xff]  ;;  %v8722_v34 = vld [vmem:[#allocation86_spill] sm:$0xff] }
 0x1a4   : > { %v1472_v42 = vadd.f32 %v1456_v8, %v1340_v31  ;;  %v1715_v5 = vmul.f32 %v6846_v24, %v8710_v58  ;;  %v1475_v18 = vadd.f32 %v1459_v47, %v1343_v23  ;;  %v1474_v52 = vadd.f32 %v1458_v1, %v1342_v56  ;;  %v8712_v31 = vld [vmem:[#allocation56_spill] sm:$0xff]  ;;  %v8713_v56 = vld [vmem:[#allocation107_spill] sm:$0xff] }
 0x1a5   : > { %v6864_v35 = vpop.permute.xlu1 %1311  ;;  %v6866_v41 = vpop.permute.xlu0 %1306  ;;  %v1600_v13 = vadd.f32 %v1584_v48, %v1467_v3  ;;  %v1588_v29 = vmul.f32 %v6827_v15, %v8711_v14  ;;  %v6879_v50 = vadd.f32 %v1461_v25, %v1345_v32  ;;  %v6883_v27 = vmul.f32 %v6790_v21, %v8712_v31  ;;  %v8715_v1 = vld [vmem:[#allocation79_spill] sm:$0xff]  ;;  %v8719_v25 = vld [vmem:[#allocation82_spill] sm:$0xff] }
 0x1a6   : > { %2408 = vperm.xlu1 %5623, %v6497_v28   ;;  %2403 = vperm.xlu0 %5622, %v6500_v11   ;;  %v1599_v28 = vadd.f32 %v1583_v20, %v1466_v4  ;;  %v1602_v2 = vadd.f32 %v1586_v30, %v1469_v22  ;;  %v1601_v11 = vadd.f32 %v1585_v26, %v1468_v37  ;;  %v8717_v22 = vld [vmem:[#allocation78_spill] sm:$0xff]  ;;  %v8718_v37 = vld [vmem:[#allocation81_spill] sm:$0xff]  ;;  %v6902_v20 = vld [vmem:[%s8720_s28] ss:$0 sm:$0xff] }
 0x1a7   : > { %v1732_v23 = vadd.f32 %v1716_v59, %v1600_v13  ;;  %v1718_v3 = vmul.f32 %v6846_v24, %v8713_v56  ;;  %v1717_v16 = vmul.f32 %v6846_v24, %v8714_v33  ;;  %v1604_v4 = vadd.f32 %v1588_v29, %v1471_v6  ;;  %v8724_v14 = vld [vmem:[#allocation110_spill] sm:$0xff]  ;;  %v6915_v56 = vld [vmem:[%s8725_s26] ss:$0 sm:$0xff] }
 0x1a8   : > { %v1731_v47 = vadd.f32 %v1715_v5, %v1599_v28  ;;  %v1587_v48 = vmul.f32 %v6827_v15, %v8717_v22  ;;  %v1590_v7 = vmul.f32 %v6827_v15, %v8718_v37  ;;  %v1589_v17 = vmul.f32 %v6827_v15, %v8719_v25  ;;  %v8723_v5 = vld [vmem:[#allocation22_spill] sm:$0xff]  ;;  %v8726_v33 = vld [vmem:[#allocation83_spill] sm:$0xff] }
 0x1a9   : > { %v1771_v40 = vpop.permute.xlu1 %1770  ;;  %v1766_v8 = vpop.permute.xlu0 %1765  ;;  %v1592_v30 = vmul.f32 %v6827_v15, %v8721_v51  ;;  %v1591_v6 = vmul.f32 %v6827_v15, %v8722_v34  ;;  %v1734_v59 = vadd.f32 %v1718_v3, %v1602_v2  ;;  %v1733_v58 = vadd.f32 %v1717_v16, %v1601_v11  ;;  %v6931_v34 = vld [vmem:[%s5942_s27 + $0x150] sm:$0xff] }
 0x1aa   : > { %v1848_v32 = vmul.f32 %v6877_v61, %v1771_v40  ;;  %v1847_v39 = vmul.f32 %v6877_v61, %v1766_v8  ;;  %2418 = vperm.xlu1 %5623, %v8715_v1   ;;  %2413 = vperm.xlu0 %5622, %v8716_v44   ;;  %v1720_v13 = vmul.f32 %v6846_v24, %v8723_v5 }
 0x1ab   : > { %v1719_v29 = vmul.f32 %v6846_v24, %v8724_v14  ;;  %v1603_v16 = vadd.f32 %v1587_v48, %v1470_v38  ;;  %v1606_v40 = vadd.f32 %v1590_v7, %v1473_v62  ;;  %v1605_v8 = vadd.f32 %v1589_v17, %v1472_v42 }
 0x1ac   : > { %v1864_v26 = vadd.f32 %v1848_v32, %v1732_v23  ;;  %v1863_v49 = vadd.f32 %v1847_v39, %v1731_v47  ;;  %v1722_v47 = vmul.f32 %v6846_v24, %v6705_v36  ;;  %v8727_v32 = vld [vmem:[#allocation84_spill] sm:$0xff]  ;;  %v6926_v39 = vld [vmem:[%s5942_s27 + $0x158] sm:$0xff]  ;;  %v1608_v22 = vadd.f32 %v1592_v30, %v1475_v18 }
 0x1ad   : > { %v1781_v31 = vpop.permute.xlu1 %1780  ;;  %v1776_v28 = vpop.permute.xlu0 %1775  ;;  %v1721_v37 = vmul.f32 %v6846_v24, %v6707_v45  ;;  %v1736_v7 = vadd.f32 %v1720_v13, %v1604_v4  ;;  %v1735_v17 = vadd.f32 %v1719_v29, %v1603_v16  ;;  %v1723_v4 = vmul.f32 %v6846_v24, %v6734_v60 }
 0x1ae   : > { %v1886_v23 = vmul.f32 %v6902_v20, %v1864_v26  ;;  %v1885_v2 = vmul.f32 %v6902_v20, %v1863_v49  ;;  %v1850_v11 = vmul.f32 %v6877_v61, %v1781_v31  ;;  %v1849_v3 = vmul.f32 %v6877_v61, %v1776_v28  ;;  %2428 = vperm.xlu1 %5623, %v8726_v33   ;;  %v8728_v49 = vld [vmem:[#allocation89_spill] sm:$0xff] }
 0x1af   : > { %2423 = vperm.xlu0 %5622, %v8727_v32   ;;  %v1607_v26 = vadd.f32 %v1591_v6, %v1474_v52  ;;  %v1594_v38 = vmul.f32 %v6827_v15, %v8728_v49  ;;  %v1738_v30 = vadd.f32 %v1722_v47, %v1606_v40  ;;  %v1724_v52 = vmul.f32 %v6846_v24, %v6732_v46  ;;  %v8729_v40 = vld [vmem:[#allocation61_spill] sm:$0xff] }
 0x1b0   : > { %v1866_v25 = vadd.f32 %v1850_v11, %v1734_v59  ;;  %v1865_v51 = vadd.f32 %v1849_v3, %v1733_v58  ;;  %v1908_v62 = vadd.f32 %v6915_v56, %v1886_v23  ;;  %v1907_v36 = vadd.f32 %v6915_v56, %v1885_v2 }
 0x1b1   : > { %v1791_v42 = vpop.permute.xlu1 %1790  ;;  %v1786_v48 = vpop.permute.xlu0 %1785  ;;  %v1737_v58 = vadd.f32 %v1721_v37, %v1605_v8  ;;  %v8730_v8 = vld [vmem:[#allocation90_spill] sm:$0xff]  ;;  %v1740_v47 = vadd.f32 %v1724_v52, %v1608_v22 }
 0x1b2   : > { %v1888_v18 = vmul.f32 %v6902_v20, %v1866_v25  ;;  %v1887_v45 = vmul.f32 %v6902_v20, %v1865_v51  ;;  %2438 = vperm.xlu1 %5623, %v6926_v39   ;;  %v1852_v6 = vmul.f32 %v6877_v61, %v1791_v42  ;;  %v1851_v59 = vmul.f32 %v6877_v61, %v1786_v48  ;;  %v8731_v51 = vld [vmem:[#allocation62_spill] sm:$0xff] }
 0x1b3   : > { %2433 = vperm.xlu0 %5622, %v6931_v34   ;;  %v1924_v14 = vmax.f32 %v1908_v62, 0.0  ;;  %v1923_v29 = vmax.f32 %v1907_v36, 0.0  ;;  %v1593_v60 = vmul.f32 %v6827_v15, %v8730_v8  ;;  %v1739_v48 = vadd.f32 %v1723_v4, %v1607_v26 }
 0x1b4   : > { %v1910_v5 = vadd.f32 %v6915_v56, %v1888_v18  ;;  %v1909_v13 = vadd.f32 %v6915_v56, %v1887_v45  ;;  %v1868_v31 = vadd.f32 %v1852_v6, %v1736_v7  ;;  %v1867_v28 = vadd.f32 %v1851_v59, %v1735_v17  ;;  %v8732_v6 = vld [vmem:[#allocation75_spill] sm:$0xff] }
 0x1b5   : > { %v1801_v23 = vpop.permute.xlu1 %1800  ;;  %v1796_v46 = vpop.permute.xlu0 %1795  ;;  %v1726_v7 = vmul.f32 %v6846_v24, %v6763_v10  ;;  %v1476_v59 = vadd.f32 %v6883_v27, %v6829_v9  ;;  %v1725_v4 = vmul.f32 %v6846_v24, %v6765_v55 }
 0x1b6   : > { %v1926_v2 = vmax.f32 %v1910_v5, 0.0  ;;  %v1925_v11 = vmax.f32 %v1909_v13, 0.0  ;;  %v1854_v3 = vmul.f32 %v6877_v61, %v1801_v23  ;;  %v1853_v16 = vmul.f32 %v6877_v61, %v1796_v46  ;;  %2901 = vperm.xlu1 %5623, %v8729_v40   ;;  %v8733_v5 = vld [vmem:[#allocation76_spill] sm:$0xff]  ;;  %v5122_v13 = vld [vmem:[%s5942_s27 + $0xca] sm:$0xff] }
 0x1b7   : > { %v1890_v37 = vmul.f32 %v6902_v20, %v1868_v31  ;;  %v1889_v25 = vmul.f32 %v6902_v20, %v1867_v28  ;;  %2896 = vperm.xlu0 %5622, %v8731_v51   ;;  %v5121_v23 = vld [vmem:[%s5942_s27 + $0xc2] sm:$0xff]  ;;  %v1609_v46 = vadd.f32 %v1593_v60, %v1476_v59  ;;  %v5123_v51 = vld [vmem:[%s5942_s27 + $0xda] sm:$0xff] }
 0x1b8   : > { %v1940_v49 = vmax.f32 %v1924_v14, %v1926_v2  ;;  %v1939_v62 = vmax.f32 %v1923_v29, %v1925_v11  ;;  %v1870_v36 = vadd.f32 %v1854_v3, %v1738_v30  ;;  %v1869_v42 = vadd.f32 %v1853_v16, %v1737_v58  ;;  %v5124_v60 = vld [vmem:[%s5942_s27 + $0xe2] sm:$0xff] }
 0x1b9   : > { %v1912_v17 = vadd.f32 %v6915_v56, %v1890_v37  ;;  %v1911_v18 = vadd.f32 %v6915_v56, %v1889_v25  ;;  %v1811_v22 = vpop.permute.xlu1 %1810  ;;  %v1806_v45 = vpop.permute.xlu0 %1805  ;;  %v1610_v58 = vadd.f32 %v1594_v38, %v6879_v50  ;;  %v1741_v16 = vadd.f32 %v1725_v4, %v1609_v46 }
 0x1ba   : > { %1948 = vst.msk [vmem:[#allocation2 + $0x8] sm:$0xff] %vm642_vm0, %v1940_v49  ;;  %1947 = vst.msk [vmem:[#allocation2] sm:$0xff] %vm642_vm0, %v1939_v62  ;;  %v1892_v52 = vmul.f32 %v6902_v20, %v1870_v36  ;;  %v1891_v30 = vmul.f32 %v6902_v20, %v1869_v42  ;;  %v1856_v26 = vmul.f32 %v6877_v61, %v1811_v22  ;;  %2911 = vperm.xlu1 %5623, %v8732_v6  }
 0x1bb   : > { %v1855_v10 = vmul.f32 %v6877_v61, %v1806_v45  ;;  %2906 = vperm.xlu0 %5622, %v8733_v5   ;;  %v1742_v2 = vadd.f32 %v1726_v7, %v1610_v58  ;;  %v1928_v11 = vmax.f32 %v1912_v17, 0.0  ;;  %v1927_v27 = vmax.f32 %v1911_v18, 0.0 }
 0x1bc   : > { %v1914_v14 = vadd.f32 %v6915_v56, %v1892_v52  ;;  %v1913_v29 = vadd.f32 %v6915_v56, %v1891_v30  ;;  %v1872_v31 = vadd.f32 %v1856_v26, %v1740_v47 }
 0x1bd   : > { %v1871_v28 = vadd.f32 %v1855_v10, %v1739_v48  ;;  %v1821_v9 = vpop.permute.xlu1 %1820  ;;  %v1816_v50 = vpop.permute.xlu0 %1815 }
 0x1be   : > { %v1930_v38 = vmax.f32 %v1914_v14, 0.0  ;;  %v1929_v55 = vmax.f32 %v1913_v29, 0.0  ;;  %v1894_v3 = vmul.f32 %v6902_v20, %v1872_v31  ;;  %1830 = vperm.xlu1 %5623, %v5122_v13   ;;  %v1858_v8 = vmul.f32 %v6877_v61, %v1821_v9  ;;  %v8736_v9 = vld [vmem:[#allocation87_spill] sm:$0xff] }
 0x1bf   : > { %v1893_v40 = vmul.f32 %v6902_v20, %v1871_v28  ;;  %v1857_v47 = vmul.f32 %v6877_v61, %v1816_v50  ;;  %1825 = vperm.xlu0 %5622, %v5121_v23  }
 0x1c0   : > { %v1942_v37 = vmax.f32 %v1928_v11, %v1930_v38  ;;  %v1941_v25 = vmax.f32 %v1927_v27, %v1929_v55  ;;  %v1874_v49 = vadd.f32 %v1858_v8, %v1742_v2  ;;  %v1916_v17 = vadd.f32 %v6915_v56, %v1894_v3  ;;  %v8740_v55 = vld [vmem:[#allocation91_spill] sm:$0xff]  ;;  %v8741_v3 = vld [vmem:[#allocation92_spill] sm:$0xff] }
 0x1c1   : > { %v1873_v62 = vadd.f32 %v1857_v47, %v1741_v16  ;;  %v6984_v36 = vpop.permute.xlu1 %2516  ;;  %v6986_v42 = vpop.permute.xlu0 %2511  ;;  %v1955_v48 = vld [vmem:[#allocation2] ss:$2 sm:$0xff]  ;;  %v1963_v7 = vld [vmem:[#allocation2 + $0x1] ss:$2 sm:$0xff]  ;;  %v1915_v18 = vadd.f32 %v6915_v56, %v1893_v40  ;;  %v7030_v40 = vld [vmem:[%s5942_s27 + $0x151] sm:$0xff] }
 0x1c2   : > { %1950 = vst.msk [vmem:[#allocation2 + $0x18] sm:$0xff] %vm642_vm0, %v1942_v37  ;;  %1949 = vst.msk [vmem:[#allocation2 + $0x10] sm:$0xff] %vm642_vm0, %v1941_v25  ;;  %1840 = vperm.xlu1 %5623, %v5124_v60   ;;  %v1896_v22 = vmul.f32 %v6902_v20, %v1874_v49  ;;  %v1970_v52 = vmax.f32 %v1955_v48, %v1963_v7  ;;  %v1932_v58 = vmax.f32 %v1916_v17, 0.0  ;;  %v7027_v16 = vld [vmem:[%s5942_s27 + $0x159] sm:$0xff]  ;;  %v8749_v17 = vld [vmem:[#allocation97_spill] sm:$0xff] }
 0x1c3   : > { %v1895_v45 = vmul.f32 %v6902_v20, %v1873_v62  ;;  %1835 = vperm.xlu0 %5622, %v5123_v51   ;;  %v1931_v4 = vmax.f32 %v1915_v18, 0.0  ;;  %v8750_v18 = vld [vmem:[#allocation98_spill] sm:$0xff] }
 0x1c4   : > { %v1918_v30 = vadd.f32 %v6915_v56, %v1896_v22  ;;  %1975 = vst.msk [vmem:[#allocation3 + $0x11] sm:$0xff] %vm642_vm0, %v1970_v52  ;;  %v8753_v52 = vld [vmem:[#allocation16_spill] sm:$0xff] }
 0x1c5   : > { %v1917_v26 = vadd.f32 %v6915_v56, %v1895_v45  ;;  %v6996_v10 = vpop.permute.xlu1 %2526  ;;  %v6998_v59 = vpop.permute.xlu0 %2521 }
 0x1c6   : > { %8734 = vst [vmem:[#allocation25_spill] sm:$0xff] %v6996_v10  ;;  %8735 = vst [vmem:[#allocation26_spill] sm:$0xff] %v6998_v59  ;;  %2536 = vperm.xlu1 %5623, %v8732_v6   ;;  %v1934_v13 = vmax.f32 %v1918_v30, 0.0  ;;  %v8737_v6 = vld [vmem:[#allocation88_spill] sm:$0xff]  ;;  %v8754_v30 = vld [vmem:[#allocation17_spill] sm:$0xff] }
 0x1c7   : > { %v1933_v14 = vmax.f32 %v1917_v26, 0.0  ;;  %2531 = vperm.xlu0 %5622, %v8733_v5  }
 0x1c8   : > { %v1944_v28 = vmax.f32 %v1932_v58, %v1934_v13 }
 0x1c9   : > { %v1957_v29 = vld [vmem:[#allocation2 + $0x10] ss:$2 sm:$0xff]  ;;  %v1965_v31 = vld [vmem:[#allocation2 + $0x11] ss:$2 sm:$0xff]  ;;  %v1943_v23 = vmax.f32 %v1931_v4, %v1933_v14  ;;  %v7003_v46 = vpop.permute.xlu1 %1433  ;;  %v7005_v2 = vpop.permute.xlu0 %1428 }
 0x1ca   : > { %v1971_v11 = vmax.f32 %v1957_v29, %v1965_v31  ;;  %2546 = vperm.xlu1 %5623, %v8736_v9   ;;  %1952 = vst.msk [vmem:[#allocation2 + $0x28] sm:$0xff] %vm642_vm0, %v1944_v28  ;;  %v7082_v29 = vld [vmem:[%s5942_s27 + $0x170] sm:$0xff]  ;;  %v7085_v31 = vld [vmem:[%s5942_s27 + $0x168] sm:$0xff] }
 0x1cb   : > { %1951 = vst.msk [vmem:[#allocation2 + $0x20] sm:$0xff] %vm642_vm0, %v1943_v23  ;;  %2541 = vperm.xlu0 %5622, %v8737_v6   ;;  %v7012_v5 = vld [vmem:[#allocation3 + $0x11] sm:$0xff] }
 0x1cc   : > { %1976 = vst.msk [vmem:[#allocation3 + $0x21] sm:$0xff] %vm642_vm0, %v1971_v11  ;;  %8738 = vst [vmem:[#allocation27_spill] sm:$0xff] %v7012_v5  ;;  %v7014_v50 = vld [vmem:[#allocation3 + $0x10] sm:$0xff] }
 0x1cd   : > { %8739 = vst [vmem:[#allocation20_spill] sm:$0xff] %v7014_v50  ;;  %v7016_v27 = vpop.permute.xlu1 %1443  ;;  %v7018_v38 = vpop.permute.xlu0 %1438  ;;  %3386 = vst.msk [vmem:[#allocation6 + $0x8] sm:$0xff] %vm642_vm0, %v7012_v5 }
 0x1ce   : > { %3224 = vst.msk [vmem:[#allocation6 + $0x18] sm:$0xff] %vm642_vm0, %v7014_v50  ;;  %2556 = vperm.xlu1 %5623, %v8740_v55  }
 0x1cf   : > { %2551 = vperm.xlu0 %5622, %v8741_v3  }
 0x1d1   : > { %v7032_v8 = vpop.permute.xlu1 %2023  ;;  %v7034_v47 = vpop.permute.xlu0 %2018 }
 0x1d2   : > { %8742 = vst [vmem:[#allocation28_spill] sm:$0xff] %v7032_v8  ;;  %8743 = vst [vmem:[#allocation29_spill] sm:$0xff] %v7034_v47  ;;  %v1959_v60 = vld [vmem:[#allocation2 + $0x20] ss:$2 sm:$0xff]  ;;  %v1967_v37 = vld [vmem:[#allocation2 + $0x21] ss:$2 sm:$0xff]  ;;  %2566 = vperm.xlu1 %5623, %v7027_v16  }
 0x1d3   : > { %v1972_v25 = vmax.f32 %v1959_v60, %v1967_v37  ;;  %2561 = vperm.xlu0 %5622, %v7030_v40   ;;  %v7038_v51 = vld [vmem:[#allocation3 + $0x22] sm:$0xff]  ;;  %v7101_v60 = vld [vmem:[%s5942_s27 + $0x171] sm:$0xff] }
 0x1d4   : > { %8744 = vst [vmem:[#allocation30_spill] sm:$0xff] %v7038_v51  ;;  %v7040_v49 = vld [vmem:[#allocation3 + $0x20] sm:$0xff]  ;;  %3547 = vst.msk [vmem:[#allocation6 + $0x10] sm:$0xff] %vm642_vm0, %v7038_v51  ;;  %v7104_v37 = vld [vmem:[%s5942_s27 + $0x169] sm:$0xff] }
 0x1d5   : > { %8745 = vst [vmem:[#allocation21_spill] sm:$0xff] %v7040_v49  ;;  %v7044_v62 = vld [vmem:[#allocation3 + $0x21] sm:$0xff]  ;;  %3225 = vst.msk [vmem:[#allocation6 + $0x30] sm:$0xff] %vm642_vm0, %v7040_v49  ;;  %v7049_v48 = vpop.permute.xlu1 %2033  ;;  %v7051_v7 = vpop.permute.xlu0 %2028 }
 0x1d6   : > { %8746 = vst [vmem:[#allocation31_spill] sm:$0xff] %v7044_v62  ;;  %1977 = vst.msk [vmem:[#allocation3 + $0x31] sm:$0xff] %vm642_vm0, %v1972_v25  ;;  %3029 = vperm.xlu1 %5623, %v8749_v17  }
 0x1d7   : > { %8747 = vst [vmem:[#allocation32_spill] sm:$0xff] %v7049_v48  ;;  %8748 = vst [vmem:[#allocation33_spill] sm:$0xff] %v7051_v7  ;;  %3024 = vperm.xlu0 %5622, %v8750_v18   ;;  %v7158_v48 = vld [vmem:[%s5942_s27 + $0x16a] sm:$0xff] }
 0x1d8   : > { %3387 = vst.msk [vmem:[#allocation6 + $0x20] sm:$0xff] %vm642_vm0, %v7044_v62 }
 0x1d9   : > { %v7057_v22 = vpop.permute.xlu1 %2151  ;;  %v7059_v45 = vpop.permute.xlu0 %2146 }
 0x1da   : > { %8751 = vst [vmem:[#allocation34_spill] sm:$0xff] %v7057_v22  ;;  %8752 = vst [vmem:[#allocation35_spill] sm:$0xff] %v7059_v45  ;;  %3039 = vperm.xlu1 %5623, %v8753_v52  }
 0x1db   : > { %3034 = vperm.xlu0 %5622, %v8754_v30   ;;  %v3557_v11 = vld [vmem:[#allocation6 + $0x10] sm:$0xff] }
 0x1dd   : > { %v7063_v26 = vld [vmem:[#allocation3 + $0x32] sm:$0xff]  ;;  %v7069_v13 = vpop.permute.xlu1 %2161  ;;  %v7071_v14 = vpop.permute.xlu0 %2156 }
 0x1de   : > { %8755 = vst [vmem:[#allocation36_spill] sm:$0xff] %v7063_v26  ;;  %v7065_v58 = vld [vmem:[#allocation3 + $0x30] sm:$0xff]  ;;  %8758 = vst [vmem:[#allocation39_spill] sm:$0xff] %v7069_v13  ;;  %2063 = vperm.xlu1 %5623, %v6926_v39  }
 0x1df   : > { %8756 = vst [vmem:[#allocation37_spill] sm:$0xff] %v7065_v58  ;;  %v7067_v4 = vld [vmem:[#allocation3 + $0x31] sm:$0xff]  ;;  %8759 = vst [vmem:[#allocation40_spill] sm:$0xff] %v7071_v14  ;;  %2058 = vperm.xlu0 %5622, %v6931_v34   ;;  %v5625_v14 = vld [vmem:[%s8774_s5 + $0x80] sm:$0xff]  }
 0x1e0   : > { %8757 = vst [vmem:[#allocation38_spill] sm:$0xff] %v7067_v4  ;;  %3548 = vst.msk [vmem:[#allocation6 + $0x28] sm:$0xff] %vm642_vm0, %v7063_v26 }
 0x1e1   : > { %3388 = vst.msk [vmem:[#allocation6 + $0x38] sm:$0xff] %vm642_vm0, %v7067_v4  ;;  %3226 = vst.msk [vmem:[#allocation6 + $0x48] sm:$0xff] %vm642_vm0, %v7065_v58  ;;  %v7087_v28 = vpop.permute.xlu1 %2043  ;;  %v7089_v23 = vpop.permute.xlu0 %2038 }
 0x1e2   : > { %8760 = vst [vmem:[#allocation41_spill] sm:$0xff] %v7087_v28  ;;  %8761 = vst [vmem:[#allocation42_spill] sm:$0xff] %v7089_v23  ;;  %2073 = vperm.xlu1 %5623, %v7082_v29  }
 0x1e3   : > { %2068 = vperm.xlu0 %5622, %v7085_v31  }
 0x1e5   : > { %v7093_v6 = vpop.permute.xlu1 %2053  ;;  %v7095_v55 = vpop.permute.xlu0 %2048 }
 0x1e6   : > { %8762 = vst [vmem:[#allocation43_spill] sm:$0xff] %v7093_v6  ;;  %8763 = vst [vmem:[#allocation44_spill] sm:$0xff] %v7095_v55  ;;  %2191 = vperm.xlu1 %5623, %v7027_v16   ;;  %v8770_v55 = vld [vmem:[#allocation18_spill] sm:$0xff]  ;;  %v8771_v6 = vld [vmem:[#allocation23_spill] sm:$0xff] }
 0x1e7   : > { %v3560_v9 = vld [vmem:[#allocation6 + $0x28] sm:$0xff]  ;;  %2186 = vperm.xlu0 %5622, %v7030_v40  }
 0x1e8   : > { %v3581_v3 = vpack.c.bf16 %v3560_v9, %v3557_v11 }
 0x1e9   : > { %v7106_v25 = vpop.permute.xlu1 %2171  ;;  %v7108_v17 = vpop.permute.xlu0 %2166 }
 0x1ea   : > { %5498 = vmatprep.mubr.msk.bf16.mxu1 %vm642_vm0, %v3581_v3  ;;  %8764 = vst [vmem:[#allocation45_spill] sm:$0xff] %v7106_v25  ;;  %8765 = vst [vmem:[#allocation54_spill] sm:$0xff] %v7108_v17  ;;  %2201 = vperm.xlu1 %5623, %v7101_v60   ;;  %v7137_v17 = vld [vmem:[%s5942_s27 + $0x152] sm:$0xff] }
 0x1eb   : > { %2196 = vperm.xlu0 %5622, %v7104_v37  }
 0x1ed   : > { %v7112_v18 = vpop.permute.xlu1 %2181  ;;  %v7114_v11 = vpop.permute.xlu0 %2176 }
 0x1ee   : > { %8766 = vst [vmem:[#allocation71_spill] sm:$0xff] %v7112_v18  ;;  %8767 = vst [vmem:[#allocation55_spill] sm:$0xff] %v7114_v11  ;;  %2664 = vperm.xlu1 %5623, %v8753_v52   ;;  %v5624_v11 = vld [vmem:[%s8774_s5 + $0x88] sm:$0xff]   ;;  %v8776_v52 = vld [vmem:[#allocation19_spill] sm:$0xff] }
 0x1ef   : > { %2659 = vperm.xlu0 %5622, %v8754_v30   ;;  %v8775_v18 = vld [vmem:[#allocation24_spill] sm:$0xff]  ;;  %v7134_v30 = vld [vmem:[%s5942_s27 + $0x15a] sm:$0xff]  ;;  %5494 = vmatprep.subr.bf16.mxu1 %v5624_v11 }
 0x1f0   : > { %5495 = vmatpush3.bf16.msra.mxu1 %v5624_v11  ;;  %v7155_v11 = vld [vmem:[%s5942_s27 + $0x172] sm:$0xff] }
 0x1f1   : > { %v7118_v9 = vpop.permute.xlu1 %2644  ;;  %v7120_v3 = vpop.permute.xlu0 %2639  ;;  %5496 = vmatprep.subr.bf16.mxu1 %v5625_v14 }
 0x1f2   : > { %8768 = vst [vmem:[#allocation72_spill] sm:$0xff] %v7118_v9  ;;  %8769 = vst [vmem:[#allocation73_spill] sm:$0xff] %v7120_v3  ;;  %2674 = vperm.xlu1 %5623, %v8770_v55   ;;  %v1330_v3 = vmul.f32 %v6761_v43, %v6837_v57  ;;  %v1462_v57 = vmul.f32 %v6790_v21, %v7005_v2 }
 0x1f3   : > { %2669 = vperm.xlu0 %5622, %v8771_v6  }
 0x1f4   : > { %5497 = vmatpush3.bf16.msra.mxu1 %v5625_v14 }
 0x1f5   : > { %v7124_v23 = vpop.permute.xlu1 %2654  ;;  %v7126_v28 = vpop.permute.xlu0 %2649 }
 0x1f6   : > { %8772 = vst [vmem:[#allocation74_spill] sm:$0xff] %v7124_v23  ;;  %8773 = vst [vmem:[#allocation105_spill] sm:$0xff] %v7126_v28  ;;  %2684 = vperm.xlu1 %5623, %v8775_v18  }
 0x1f7   : > { %2679 = vperm.xlu0 %5622, %v8776_v52  }
 0x1f9   : > { %v7139_v6 = vpop.permute.xlu1 %1566  ;;  %v7141_v25 = vpop.permute.xlu0 %1561 }
 0x1fa   : > { %2694 = vperm.xlu1 %5623, %v7134_v30  }
 0x1fb   : > { %2689 = vperm.xlu0 %5622, %v7137_v17  }
 0x1fd   : > { %v7148_v13 = vpop.permute.xlu1 %1576  ;;  %v7150_v7 = vpop.permute.xlu0 %1571 }
 0x1fe   : > { %2319 = vperm.xlu1 %5623, %v7134_v30  }
 0x1ff   : > { %2314 = vperm.xlu0 %5622, %v7137_v17  }
 0x201   : > { %v7160_v47 = vpop.permute.xlu1 %2279  ;;  %v7162_v8 = vpop.permute.xlu0 %2274 }
 0x202   : > { %8777 = vst [vmem:[#allocation106_spill] sm:$0xff] %v7160_v47  ;;  %8778 = vst [vmem:[#allocation77_spill] sm:$0xff] %v7162_v8  ;;  %2329 = vperm.xlu1 %5623, %v7155_v11  }
 0x203   : > { %2324 = vperm.xlu0 %5622, %v7158_v48  }
 0x205   : > { %v7166_v14 = vpop.permute.xlu1 %2289  ;;  %v7168_v45 = vpop.permute.xlu0 %2284 }
 0x206   : > { %8779 = vst [vmem:[#allocation56_spill] sm:$0xff] %v7166_v14  ;;  %8780 = vst [vmem:[#allocation107_spill] sm:$0xff] %v7168_v45  ;;  %2793 = vperm.xlu1 %5623, %v8715_v1  }
 0x207   : > { %2788 = vperm.xlu0 %5622, %v8716_v44  }
 0x209   : > { %v7172_v22 = vpop.permute.xlu1 %2299  ;;  %v7174_v26 = vpop.permute.xlu0 %2294 }
 0x20a   : > { %8781 = vst [vmem:[#allocation108_spill] sm:$0xff] %v7172_v22  ;;  %8782 = vst [vmem:[#allocation79_spill] sm:$0xff] %v7174_v26  ;;  %2803 = vperm.xlu1 %5623, %v8726_v33   ;;  %v5245_v26 = vld [vmem:[%s5942_s27 + $0x129] sm:$0xff]  ;;  %v5244_v22 = vld [vmem:[%s5942_s27 + $0x121] sm:$0xff] }
 0x20b   : > { %2798 = vperm.xlu0 %5622, %v8727_v32  }
 0x20d   : > { %v7178_v8 = vpop.permute.xlu1 %2309  ;;  %v7180_v47 = vpop.permute.xlu0 %2304 }
 0x20e   : > { %8783 = vst [vmem:[#allocation80_spill] sm:$0xff] %v7178_v8  ;;  %8784 = vst [vmem:[#allocation78_spill] sm:$0xff] %v7180_v47  ;;  %2813 = vperm.xlu1 %5623, %v6926_v39   ;;  %v7197_v39 = vld [vmem:[%s5942_s27 + $0x188] sm:$0xff] }
 0x20f   : > { %2808 = vperm.xlu0 %5622, %v6931_v34   ;;  %8789 = vst [vmem:[#allocation22_spill] sm:$0xff] %v7197_v39  ;;  %v7200_v34 = vld [vmem:[%s5942_s27 + $0x180] sm:$0xff] }
 0x210   : > { %8790 = vst [vmem:[#allocation110_spill] sm:$0xff] %v7200_v34 }
 0x211   : > { %v7184_v1 = vpop.permute.xlu1 %2773  ;;  %v7186_v44 = vpop.permute.xlu0 %2768 }
 0x212   : > { %8785 = vst [vmem:[#allocation81_spill] sm:$0xff] %v7184_v1  ;;  %8786 = vst [vmem:[#allocation82_spill] sm:$0xff] %v7186_v44  ;;  %2823 = vperm.xlu1 %5623, %v7082_v29   ;;  %v8815_v1 = vld [vmem:[#allocation70_spill] sm:$0xff] }
 0x213   : > { %2818 = vperm.xlu0 %5622, %v7085_v31  }
 0x215   : > { %v7190_v33 = vpop.permute.xlu1 %2783  ;;  %v7192_v32 = vpop.permute.xlu0 %2778 }
 0x216   : > { %8787 = vst [vmem:[#allocation85_spill] sm:$0xff] %v7190_v33  ;;  %8788 = vst [vmem:[#allocation86_spill] sm:$0xff] %v7192_v32  ;;  %2448 = vperm.xlu1 %5623, %v7082_v29   ;;  %v5247_v29 = vld [vmem:[%s5942_s27 + $0x141] sm:$0xff] }
 0x217   : > { %2443 = vperm.xlu0 %5622, %v7085_v31   ;;  %v5246_v31 = vld [vmem:[%s5942_s27 + $0x139] sm:$0xff] }
 0x219   : > { %v7202_v47 = vpop.permute.xlu1 %1698  ;;  %v7204_v8 = vpop.permute.xlu0 %1693 }
 0x21a   : > { %2458 = vperm.xlu1 %5623, %v7197_v39   ;;  %v8808_v39 = vld [vmem:[#allocation99_spill] sm:$0xff] }
 0x21b   : > { %2453 = vperm.xlu0 %5622, %v7200_v34  }
 0x21d   : > { %v7210_v45 = vpop.permute.xlu1 %1708  ;;  %v7212_v14 = vpop.permute.xlu0 %1703 }
 0x21e   : > { %2921 = vperm.xlu1 %5623, %v5245_v26   ;;  %v8796_v26 = vld [vmem:[#allocation50_spill] sm:$0xff] }
 0x21f   : > { %2916 = vperm.xlu0 %5622, %v5244_v22   ;;  %v8797_v22 = vld [vmem:[#allocation104_spill] sm:$0xff] }
 0x220   : > { %v934_v5 = vmul.f32 %v8797_v22, %v8796_v26  ;;  %v8805_v26 = vld [vmem:[#allocation68_spill] sm:$0xff] }
 0x221   : > { %v7216_v50 = vpop.permute.xlu1 %2408  ;;  %v7218_v62 = vpop.permute.xlu0 %2403 }
 0x222   : > { %8791 = vst [vmem:[#allocation83_spill] sm:$0xff] %v7216_v50  ;;  %8792 = vst [vmem:[#allocation84_spill] sm:$0xff] %v7218_v62  ;;  %2931 = vperm.xlu1 %5623, %v5247_v29   ;;  %v8799_v62 = vld [vmem:[#allocation51_spill] sm:$0xff] }
 0x223   : > { %2926 = vperm.xlu0 %5622, %v5246_v31   ;;  %v933_v29 = vmul.f32 %v8797_v22, %v8799_v62  ;;  %v8800_v31 = vld [vmem:[#allocation46_spill] sm:$0xff]  ;;  %v7249_v62 = vld [vmem:[%s8657_s25 + $0x1] ss:$0 sm:$0xff]  ;;  %v8807_v22 = vld [vmem:[#allocation52_spill] sm:$0xff] }
 0x225   : > { %v7220_v4 = vpop.permute.xlu1 %2418  ;;  %v7222_v49 = vpop.permute.xlu0 %2413 }
 0x226   : > { %8793 = vst [vmem:[#allocation89_spill] sm:$0xff] %v7220_v4  ;;  %8794 = vst [vmem:[#allocation61_spill] sm:$0xff] %v7222_v49  ;;  %2941 = vperm.xlu1 %5623, %v7027_v16   ;;  %v8801_v49 = vld [vmem:[#allocation103_spill] sm:$0xff] }
 0x227   : > { %2936 = vperm.xlu0 %5622, %v7030_v40   ;;  %v802_v16 = vmul.f32 %v8801_v49, %v8800_v31  ;;  %v8802_v4 = vld [vmem:[#allocation67_spill] sm:$0xff]  ;;  %v8803_v40 = vld [vmem:[#allocation109_spill] sm:$0xff]  ;;  %v936_v31 = vmul.f32 %v7249_v62, %v8807_v22 }
 0x228   : > { %v1066_v50 = vmul.f32 %v8803_v40, %v8802_v4  ;;  %v1199_v4 = vmul.f32 %v6718_v12, %v8808_v39  ;;  %v7269_v22 = vld [vmem:[%s8657_s25] ss:$0 sm:$0xff]  ;;  %v8812_v39 = vld [vmem:[#allocation48_spill] sm:$0xff]  ;;  %v1067_v59 = vmul.f32 %v8803_v40, %v8815_v1  ;;  %v8817_v1 = vld [vmem:[#allocation102_spill] sm:$0xff] }
 0x229   : > { %v7226_v58 = vpop.permute.xlu1 %2428  ;;  %v950_v34 = vadd.f32 %v934_v5, %v802_v16  ;;  %v8811_v16 = vld [vmem:[#allocation100_spill] sm:$0xff] }
 0x22a   : > { %8795 = vst [vmem:[#allocation90_spill] sm:$0xff] %v7226_v58  ;;  %v7230_v51 = vpop.permute.xlu0 %2423  ;;  %2951 = vperm.xlu1 %5623, %v7101_v60   ;;  %v8804_v58 = vld [vmem:[#allocation47_spill] sm:$0xff] }
 0x22b   : > { %8798 = vst [vmem:[#allocation62_spill] sm:$0xff] %v7230_v51  ;;  %2946 = vperm.xlu0 %5622, %v7104_v37   ;;  %v801_v32 = vmul.f32 %v8801_v49, %v8804_v58  ;;  %v1065_v51 = vmul.f32 %v8803_v40, %v8805_v26  ;;  %v8810_v58 = vld [vmem:[#allocation53_spill] sm:$0xff]  ;;  %v1198_v26 = vmul.f32 %v6718_v12, %v8811_v16  ;;  %v7278_v16 = vld [vmem:[%s5942_s27 + $0x181] sm:$0xff] }
 0x22c   : > { %v935_v5 = vmul.f32 %v7249_v62, %v8810_v58  ;;  %v1331_v58 = vmul.f32 %v6761_v43, %v6835_v54  ;;  %v1463_v54 = vmul.f32 %v6790_v21, %v7003_v46  ;;  %v1596_v46 = vmul.f32 %v6827_v15, %v7139_v6 }
 0x22d   : > { %v7244_v33 = vpop.permute.xlu1 %2438  ;;  %v949_v49 = vadd.f32 %v933_v29, %v801_v32  ;;  %v8813_v32 = vld [vmem:[#allocation69_spill] sm:$0xff] }
 0x22e   : > { %8806 = vst [vmem:[#allocation75_spill] sm:$0xff] %v7244_v33  ;;  %v7255_v28 = vpop.permute.xlu0 %2433  ;;  %2576 = vperm.xlu1 %5623, %v7101_v60   ;;  %v7264_v33 = vld [vmem:[%s5942_s27 + $0x189] sm:$0xff]  ;;  %v1082_v60 = vadd.f32 %v1066_v50, %v950_v34  ;;  %v1068_v29 = vmul.f32 %v8803_v40, %v8813_v32  ;;  %v1200_v40 = vmul.f32 %v6718_v12, %v8817_v1 }
 0x22f   : > { %8809 = vst [vmem:[#allocation76_spill] sm:$0xff] %v7255_v28  ;;  %2571 = vperm.xlu0 %5622, %v7104_v37   ;;  %v804_v28 = vmul.f32 %v7269_v22, %v8812_v39  ;;  %v8814_v37 = vld [vmem:[#allocation49_spill] sm:$0xff]  ;;  %v1081_v23 = vadd.f32 %v1065_v51, %v949_v49 }
 0x230   : > { %v803_v44 = vmul.f32 %v7269_v22, %v8814_v37  ;;  %v1215_v34 = vadd.f32 %v1199_v4, %v1082_v60  ;;  %v8816_v32 = vld [vmem:[#allocation101_spill] sm:$0xff]  ;;  %v1333_v4 = vmul.f32 %v6761_v43, %v6864_v35  ;;  %v1728_v35 = vmul.f32 %v6846_v24, %v7202_v47 }
 0x231   : > { %v7286_v39 = vpop.permute.xlu1 %2901  ;;  %v952_v50 = vadd.f32 %v936_v31, %v804_v28  ;;  %v1201_v10 = vmul.f32 %v6718_v12, %v8816_v32  ;;  %v1214_v49 = vadd.f32 %v1198_v26, %v1081_v23  ;;  %v1332_v23 = vmul.f32 %v6761_v43, %v6866_v41 }
 0x232   : > { %v7292_v9 = vpop.permute.xlu0 %2896  ;;  %2586 = vperm.xlu1 %5623, %v7264_v33   ;;  %v951_v51 = vadd.f32 %v935_v5, %v803_v44  ;;  %v1347_v31 = vadd.f32 %v1331_v58, %v1215_v34  ;;  %v1595_v12 = vmul.f32 %v6827_v15, %v7141_v25  ;;  %v1464_v43 = vmul.f32 %v6790_v21, %v7018_v38 }
 0x233   : > { %2581 = vperm.xlu0 %5622, %v7278_v16   ;;  %v1084_v28 = vadd.f32 %v1068_v29, %v952_v50  ;;  %v1346_v44 = vadd.f32 %v1330_v3, %v1214_v49  ;;  %v1465_v29 = vmul.f32 %v6790_v21, %v7016_v27  ;;  %v1727_v41 = vmul.f32 %v6846_v24, %v7204_v8 }
 0x234   : > { %v1083_v60 = vadd.f32 %v1067_v59, %v951_v51  ;;  %v1479_v26 = vadd.f32 %v1463_v54, %v1347_v31  ;;  %v1598_v27 = vmul.f32 %v6827_v15, %v7148_v13  ;;  %v1730_v21 = vmul.f32 %v6846_v24, %v7210_v45 }
 0x235   : > { %v7308_v2 = vpop.permute.xlu1 %2911  ;;  %v1217_v5 = vadd.f32 %v1201_v10, %v1084_v28  ;;  %v1478_v3 = vadd.f32 %v1462_v57, %v1346_v44  ;;  %v5700_v10 = vld [vmem:[%s5942_s27 + $0x122] sm:$0xff]  ;;  %v1729_v13 = vmul.f32 %v6846_v24, %v7212_v14 }
 0x236   : > { %v7314_v6 = vpop.permute.xlu0 %2906  ;;  %3049 = vperm.xlu1 %5623, %v8770_v55   ;;  %v1216_v59 = vadd.f32 %v1200_v40, %v1083_v60  ;;  %v1612_v58 = vadd.f32 %v1596_v46, %v1479_v26  ;;  %v1597_v55 = vmul.f32 %v6827_v15, %v7150_v7 }
 0x237   : > { %3044 = vperm.xlu0 %5622, %v5700_v10   ;;  %v1349_v25 = vadd.f32 %v1333_v4, %v1217_v5  ;;  %v1611_v37 = vadd.f32 %v1595_v12, %v1478_v3  ;;  %v8819_v12 = vld [vmem:[#allocation64_spill] sm:$0xff]  ;;  %v8822_v10 = vld [vmem:[#allocation58_spill] sm:$0xff] }
 0x238   : > { %v1348_v47 = vadd.f32 %v1332_v23, %v1216_v59  ;;  %v1744_v32 = vadd.f32 %v1728_v35, %v1612_v58  ;;  %v2204_v5 = vmul.f32 %v7249_v62, %v8819_v12  ;;  %v8820_v35 = vld [vmem:[#allocation57_spill] sm:$0xff]  ;;  %v8823_v58 = vld [vmem:[#allocation59_spill] sm:$0xff]  ;;  %v8829_v12 = vld [vmem:[#allocation96_spill] sm:$0xff] }
 0x239   : > { %v1831_v50 = vpop.permute.xlu1 %1830  ;;  %v1481_v34 = vadd.f32 %v1465_v29, %v1349_v25  ;;  %v1743_v51 = vadd.f32 %v1727_v41, %v1611_v37  ;;  %v8821_v59 = vld [vmem:[#allocation65_spill] sm:$0xff]  ;;  %v2076_v25 = vmul.f32 %v7269_v22, %v8822_v10 }
 0x23a   : > { %v1860_v38 = vmul.f32 %v6877_v61, %v1831_v50  ;;  %v1826_v8 = vpop.permute.xlu0 %1825  ;;  %3059 = vperm.xlu1 %5623, %v8775_v18   ;;  %v1480_v54 = vadd.f32 %v1464_v43, %v1348_v47  ;;  %v2207_v3 = vmul.f32 %v7249_v62, %v8821_v59 }
 0x23b   : > { %v1859_v49 = vmul.f32 %v6877_v61, %v1826_v8  ;;  %3054 = vperm.xlu0 %5622, %v8776_v52   ;;  %v1614_v7 = vadd.f32 %v1598_v27, %v1481_v34  ;;  %v8818_v52 = vld [vmem:[#allocation63_spill] sm:$0xff]  ;;  %v2079_v27 = vmul.f32 %v7269_v22, %v8823_v58  ;;  %v8830_v58 = vld [vmem:[#allocation72_spill] sm:$0xff] }
 0x23c   : > { %v1876_v1 = vadd.f32 %v1860_v38, %v1744_v32  ;;  %v1613_v40 = vadd.f32 %v1597_v55, %v1480_v54  ;;  %v2205_v44 = vmul.f32 %v7249_v62, %v8818_v52  ;;  %v8824_v55 = vld [vmem:[#allocation60_spill] sm:$0xff]  ;;  %v2220_v54 = vadd.f32 %v2204_v5, %v2076_v25 }
 0x23d   : > { %v1875_v57 = vadd.f32 %v1859_v49, %v1743_v51  ;;  %v1841_v28 = vpop.permute.xlu1 %1840  ;;  %v1746_v45 = vadd.f32 %v1730_v21, %v1614_v7  ;;  %v2078_v50 = vmul.f32 %v7269_v22, %v8824_v55  ;;  %v7367_v32 = vld [vmem:[%s8657_s25 + $0x2] ss:$0 sm:$0xff]  ;;  %v8825_v21 = vld [vmem:[#allocation93_spill] sm:$0xff]  ;;  %v8826_v51 = vld [vmem:[#allocation66_spill] sm:$0xff] }
 0x23e   : > { %v1898_v31 = vmul.f32 %v6902_v20, %v1876_v1  ;;  %v1862_v4 = vmul.f32 %v6877_v61, %v1841_v28  ;;  %v1836_v18 = vpop.permute.xlu0 %1835  ;;  %3069 = vperm.xlu1 %5623, %v7134_v30   ;;  %v1745_v46 = vadd.f32 %v1729_v13, %v1613_v40  ;;  %v2077_v30 = vmul.f32 %v7269_v22, %v8820_v35  ;;  %v8827_v49 = vld [vmem:[#allocation94_spill] sm:$0xff]  ;;  %v7382_v28 = vld [vmem:[%s8657_s25 + $0x3] ss:$0 sm:$0xff] }
 0x23f   : > { %v1897_v14 = vmul.f32 %v6902_v20, %v1875_v57  ;;  %v1861_v60 = vmul.f32 %v6877_v61, %v1836_v18  ;;  %3064 = vperm.xlu0 %5622, %v7137_v17   ;;  %v2333_v38 = vmul.f32 %v7367_v32, %v8825_v21  ;;  %v2206_v13 = vmul.f32 %v7249_v62, %v8826_v51 }
 0x240   : > { %v1878_v23 = vadd.f32 %v1862_v4, %v1746_v45  ;;  %v1920_v43 = vadd.f32 %v6915_v56, %v1898_v31  ;;  %v2221_v34 = vadd.f32 %v2205_v44, %v2077_v30  ;;  %v2332_v7 = vmul.f32 %v7367_v32, %v8827_v49 }
 0x241   : > { %v1877_v26 = vadd.f32 %v1861_v60, %v1745_v46  ;;  %v7344_v29 = vpop.permute.xlu1 %2536  ;;  %v1919_v47 = vadd.f32 %v6915_v56, %v1897_v14  ;;  %v2223_v57 = vadd.f32 %v2207_v3, %v2079_v27  ;;  %v2462_v45 = vmul.f32 %v7382_v28, %v6779_v63  ;;  %v8828_v46 = vld [vmem:[#allocation95_spill] sm:$0xff] }
 0x242   : > { %v1900_v17 = vmul.f32 %v6902_v20, %v1878_v23  ;;  %v7352_v41 = vpop.permute.xlu0 %2531  ;;  %3079 = vperm.xlu1 %5623, %v7155_v11   ;;  %v1936_v31 = vmax.f32 %v1920_v43, 0.0  ;;  %v2335_v14 = vmul.f32 %v7367_v32, %v8828_v46  ;;  %v2461_v60 = vmul.f32 %v7382_v28, %v6781_v53  ;;  %v7395_v23 = vld [vmem:[%s5942_s27 + $0x18a] sm:$0xff]  ;;  %v7407_v53 = vld [vmem:[%s5942_s27 + $0x182] sm:$0xff] }
 0x243   : > { %v1899_v37 = vmul.f32 %v6902_v20, %v1877_v26  ;;  %3074 = vperm.xlu0 %5622, %v7158_v48   ;;  %v1935_v52 = vmax.f32 %v1919_v47, 0.0  ;;  %v2349_v63 = vadd.f32 %v2333_v38, %v2221_v34  ;;  %v2334_v5 = vmul.f32 %v7367_v32, %v8829_v12  ;;  %v8833_v38 = vld [vmem:[#allocation26_spill] sm:$0xff] }
 0x244   : > { %v1922_v8 = vadd.f32 %v6915_v56, %v1900_v17  ;;  %v2348_v30 = vadd.f32 %v2332_v7, %v2220_v54  ;;  %v2222_v17 = vadd.f32 %v2206_v13, %v2078_v50  ;;  %v2463_v25 = vmul.f32 %v7382_v28, %v6814_v0  ;;  %v8832_v0 = vld [vmem:[#allocation73_spill] sm:$0xff]  ;;  %v8835_v7 = vld [vmem:[#allocation74_spill] sm:$0xff] }
 0x245   : > { %v1921_v1 = vadd.f32 %v6915_v56, %v1899_v37  ;;  %v7377_v40 = vpop.permute.xlu1 %2546  ;;  %v2478_v10 = vadd.f32 %v2462_v45, %v2349_v63  ;;  %v8831_v37 = vld [vmem:[#allocation25_spill] sm:$0xff]  ;;  %v8838_v63 = vld [vmem:[#allocation22_spill] sm:$0xff] }
 0x246   : > { %v1938_v4 = vmax.f32 %v1922_v8, 0.0  ;;  %v7386_v18 = vpop.permute.xlu0 %2541  ;;  %2704 = vperm.xlu1 %5623, %v7155_v11   ;;  %v7402_v11 = vld [vmem:[%s8657_s25 + $0x4] ss:$0 sm:$0xff]  ;;  %v2477_v47 = vadd.f32 %v2461_v60, %v2348_v30  ;;  %v2350_v34 = vadd.f32 %v2334_v5, %v2222_v17  ;;  %v8834_v54 = vld [vmem:[#allocation81_spill] sm:$0xff]  ;;  %v5238_v17 = vld [vmem:[%s5942_s27 + $0x198] sm:$0xff] }
 0x247   : > { %v1937_v44 = vmax.f32 %v1921_v1, 0.0  ;;  %2699 = vperm.xlu0 %5622, %v7158_v48   ;;  %v2590_v26 = vmul.f32 %v7402_v11, %v6984_v36  ;;  %v2464_v48 = vmul.f32 %v7382_v28, %v6812_v19  ;;  %v2589_v59 = vmul.f32 %v7402_v11, %v6986_v42  ;;  %v7420_v36 = vld [vmem:[%s8657_s25 + $0x5] ss:$0 sm:$0xff] }
 0x248   : > { %v1946_v35 = vmax.f32 %v1936_v31, %v1938_v4  ;;  %v2718_v27 = vmul.f32 %v7420_v36, %v8830_v58  ;;  %v2351_v42 = vadd.f32 %v2335_v14, %v2223_v57  ;;  %v2592_v55 = vmul.f32 %v7402_v11, %v8831_v37  ;;  %v8836_v57 = vld [vmem:[#allocation82_spill] sm:$0xff]  ;;  %v8837_v14 = vld [vmem:[#allocation105_spill] sm:$0xff] }
 0x249   : > { %v1945_v3 = vmax.f32 %v1935_v52, %v1937_v44  ;;  %v7413_v43 = vpop.permute.xlu1 %2556  ;;  %v2717_v50 = vmul.f32 %v7420_v36, %v8832_v0  ;;  %v2606_v21 = vadd.f32 %v2590_v26, %v2478_v10  ;;  %v2591_v8 = vmul.f32 %v7402_v11, %v8833_v38  ;;  %v8839_v26 = vld [vmem:[#allocation110_spill] sm:$0xff] }
 0x24a   : > { %1954 = vst.msk [vmem:[#allocation2 + $0x38] sm:$0xff] %vm642_vm0, %v1946_v35  ;;  %v7425_v19 = vpop.permute.xlu0 %2551  ;;  %2714 = vperm.xlu1 %5623, %v7395_v23   ;;  %v2847_v51 = vmul.f32 %v6827_v15, %v8834_v54  ;;  %v2480_v13 = vadd.f32 %v2464_v48, %v2351_v42  ;;  %v2605_v49 = vadd.f32 %v2589_v59, %v2477_v47  ;;  %v5239_v35 = vld [vmem:[%s5942_s27 + $0x1a0] sm:$0xff]  ;;  %v8841_v58 = vld [vmem:[#allocation86_spill] sm:$0xff] }
 0x24b   : > { %1953 = vst.msk [vmem:[#allocation2 + $0x30] sm:$0xff] %vm642_vm0, %v1945_v3  ;;  %2709 = vperm.xlu0 %5622, %v7407_v53   ;;  %v2720_v1 = vmul.f32 %v7420_v36, %v8835_v7  ;;  %v2846_v45 = vmul.f32 %v6827_v15, %v8836_v57  ;;  %v2479_v4 = vadd.f32 %v2463_v25, %v2350_v34  ;;  %v7458_v59 = vld [vmem:[%s8657_s25 + $0x6] ss:$0 sm:$0xff]  ;;  %v7468_v47 = vld [vmem:[%s8657_s25 + $0x7] ss:$0 sm:$0xff] }
 0x24c   : > { %v2734_v46 = vadd.f32 %v2718_v27, %v2606_v21  ;;  %v2719_v60 = vmul.f32 %v7420_v36, %v8837_v14  ;;  %v2975_v52 = vmul.f32 %v6846_v24, %v7286_v39  ;;  %v2608_v12 = vadd.f32 %v2592_v55, %v2480_v13  ;;  %v8840_v39 = vld [vmem:[#allocation85_spill] sm:$0xff]  ;;  %v7484_v14 = vld [vmem:[%s8657_s25 + $0x8] ss:$0 sm:$0xff] }
 0x24d   : > { %v7442_v31 = vpop.permute.xlu1 %2566  ;;  %v2733_v5 = vadd.f32 %v2717_v50, %v2605_v49  ;;  %v2974_v15 = vmul.f32 %v6846_v24, %v7292_v9  ;;  %v2607_v30 = vadd.f32 %v2591_v8, %v2479_v4  ;;  %v2849_v3 = vmul.f32 %v7458_v59, %v8840_v39 }
 0x24e   : > { %v7448_v44 = vpop.permute.xlu0 %2561  ;;  %2833 = vperm.xlu1 %5623, %v8838_v63   ;;  %v2863_v48 = vadd.f32 %v2847_v51, %v2734_v46  ;;  %v2736_v10 = vadd.f32 %v2720_v1, %v2608_v12  ;;  %v2848_v27 = vmul.f32 %v7458_v59, %v8841_v58  ;;  %v2977_v37 = vmul.f32 %v7468_v47, %v7308_v2  ;;  %v5254_v12 = vld [vmem:[%s5942_s27 + $0x199] sm:$0xff] }
 0x24f   : > { %2828 = vperm.xlu0 %5622, %v8839_v26   ;;  %v2862_v25 = vadd.f32 %v2846_v45, %v2733_v5  ;;  %v2735_v9 = vadd.f32 %v2719_v60, %v2607_v30  ;;  %v2976_v38 = vmul.f32 %v7468_v47, %v7314_v6 }
 0x250   : > { %v2991_v42 = vadd.f32 %v2975_v52, %v2863_v48  ;;  %v2865_v51 = vadd.f32 %v2849_v3, %v2736_v10  ;;  %v5255_v52 = vld [vmem:[%s5942_s27 + $0x1a1] sm:$0xff] }
 0x251   : > { %v3030_v24 = vpop.permute.xlu1 %3029  ;;  %v2990_v21 = vadd.f32 %v2974_v15, %v2862_v25  ;;  %v2864_v49 = vadd.f32 %v2848_v27, %v2735_v9  ;;  %v5626_v9 = vld [vmem:[%s8774_s5 + $0x78] sm:$0xff]  }
 0x252   : > { %v1961_v55 = vld [vmem:[#allocation2 + $0x30] ss:$2 sm:$0xff]  ;;  %v1969_v0 = vld [vmem:[#allocation2 + $0x31] ss:$2 sm:$0xff]  ;;  %v3103_v50 = vmul.f32 %v6877_v61, %v3030_v24  ;;  %v3025_v34 = vpop.permute.xlu0 %3024  ;;  %2843 = vperm.xlu1 %5623, %v5239_v35   ;;  %v2993_v1 = vadd.f32 %v2977_v37, %v2865_v51  ;;  %5361 = vmatprep.subr.bf16.mxu0 %v5626_v9  ;;  %v3231_v51 = vld [vmem:[#allocation3 + $0x1] sm:$0xff] }
 0x253   : > { %v3102_v8 = vmul.f32 %v6877_v61, %v3025_v34  ;;  %2838 = vperm.xlu0 %5622, %v5238_v17   ;;  %v1973_v54 = vmax.f32 %v1961_v55, %v1969_v0  ;;  %v2992_v6 = vadd.f32 %v2976_v38, %v2864_v49  ;;  %v5270_v37 = vld [vmem:[%s5942_s27 + $0x19a] sm:$0xff]  ;;  %v5629_v34 = vld [vmem:[%s8774_s5 + $0x30] sm:$0xff]  }
 0x254   : > { %v3119_v13 = vadd.f32 %v3103_v50, %v2991_v42  ;;  %v5627_v55 = vld [vmem:[%s8774_s5 + $0x38] sm:$0xff]  }
 0x255   : > { %v3118_v2 = vadd.f32 %v3102_v8, %v2990_v21  ;;  %v3040_v7 = vpop.permute.xlu1 %3039  ;;  %1978 = vst.msk [vmem:[#allocation3 + $0x41] sm:$0xff] %vm642_vm0, %v1973_v54  ;;  %5362 = vmatpush3.bf16.msra.mxu0 %v5627_v55  ;;  %v8851_v8 = vld [vmem:[#allocation30_spill] sm:$0xff]  ;;  %v5638_v55 = vld [vmem:[%s8774_s5 + $0x48] sm:$0xff]  }
 0x256   : > { %v3135_v57 = vmul.f32 %v6902_v20, %v3119_v13  ;;  %v3105_v45 = vmul.f32 %v6877_v61, %v3040_v7  ;;  %v3035_v4 = vpop.permute.xlu0 %3034  ;;  %2961 = vperm.xlu1 %5623, %v7264_v33   ;;  %v3394_v54 = vld [vmem:[#allocation3 + $0x12] sm:$0xff]  ;;  %v5630_v13 = vld [vmem:[%s8774_s5 + $0x68] sm:$0xff]  }
 0x257   : > { %v3134_v46 = vmul.f32 %v6902_v20, %v3118_v2  ;;  %v3104_v60 = vmul.f32 %v7484_v14, %v3035_v4  ;;  %2956 = vperm.xlu0 %5622, %v7278_v16   ;;  %v5631_v2 = vld [vmem:[%s8774_s5 + $0x28] sm:$0xff]  }
 0x258   : > { %v3121_v63 = vadd.f32 %v3105_v45, %v2993_v1  ;;  %v3151_v33 = vadd.f32 %v6915_v56, %v3135_v57  ;;  %v8852_v45 = vld [vmem:[#allocation27_spill] sm:$0xff] }
 0x259   : > { %v3120_v5 = vadd.f32 %v3104_v60, %v2992_v6  ;;  %v7490_v61 = vpop.permute.xlu1 %2063  ;;  %v3150_v35 = vadd.f32 %v6915_v56, %v3134_v46  ;;  %v3215_v6 = vld [vmem:[#allocation3] sm:$0xff] }
 0x25a   : > { %8842 = vst [vmem:[#allocation87_spill] sm:$0xff] %v7490_v61  ;;  %v3137_v15 = vmul.f32 %v6902_v20, %v3121_v63  ;;  %v7494_v26 = vpop.permute.xlu0 %2058  ;;  %2971 = vperm.xlu1 %5623, %v5255_v52   ;;  %v5632_v46 = vld [vmem:[%s8774_s5 + $0x60] sm:$0xff]   ;;  %3223 = vst.msk [vmem:[#allocation6] sm:$0xff] %vm642_vm0, %v3215_v6 }
 0x25b   : > { %8843 = vst [vmem:[#allocation88_spill] sm:$0xff] %v7494_v26  ;;  %v3136_v30 = vmul.f32 %v6902_v20, %v3120_v5  ;;  %2966 = vperm.xlu0 %5622, %v5254_v12   ;;  %v3167_v20 = vmax.f32 %v3151_v33, 0.0  ;;  %v3166_v27 = vmax.f32 %v3150_v35, 0.0  ;;  %v5633_v60 = vld [vmem:[%s8774_s5 + $0x20] sm:$0xff]   ;;  %v8853_v12 = vld [vmem:[#allocation37_spill] sm:$0xff]  ;;  %v5634_v33 = vld [vmem:[%s8774_s5 + $0x58] sm:$0xff]  }
 0x25c   : > { %v3153_v16 = vadd.f32 %v6915_v56, %v3137_v15  ;;  %v7499_v48 = vld [vmem:[#allocation3 + $0x42] sm:$0xff]  ;;  %v8854_v5 = vld [vmem:[#allocation21_spill] sm:$0xff]  ;;  %v5635_v15 = vld [vmem:[%s8774_s5 + $0x18] sm:$0xff]  }
 0x25d   : > { %8844 = vst [vmem:[#allocation91_spill] sm:$0xff] %v7499_v48  ;;  %v7501_v39 = vld [vmem:[#allocation3 + $0x40] sm:$0xff]  ;;  %v3152_v17 = vadd.f32 %v6915_v56, %v3136_v30  ;;  %v7506_v10 = vpop.permute.xlu1 %2073  ;;  %3549 = vst.msk [vmem:[#allocation6 + $0x40] sm:$0xff] %vm642_vm0, %v7499_v48 }
 0x25e   : > { %v7503_v3 = vld [vmem:[#allocation3 + $0x41] sm:$0xff]  ;;  %8845 = vst [vmem:[#allocation92_spill] sm:$0xff] %v7506_v10  ;;  %3227 = vst.msk [vmem:[#allocation6 + $0x60] sm:$0xff] %vm642_vm0, %v7501_v39  ;;  %v3169_v25 = vmax.f32 %v3153_v16, 0.0  ;;  %v7514_v58 = vpop.permute.xlu0 %2068  ;;  %3089 = vperm.xlu1 %5623, %v7395_v23  }
 0x25f   : > { %3389 = vst.msk [vmem:[#allocation6 + $0x50] sm:$0xff] %vm642_vm0, %v7503_v3  ;;  %8846 = vst [vmem:[#allocation97_spill] sm:$0xff] %v7514_v58  ;;  %v3168_v24 = vmax.f32 %v3152_v17, 0.0  ;;  %3084 = vperm.xlu0 %5622, %v7407_v53   ;;  %v5271_v56 = vld [vmem:[%s5942_s27 + $0x1a2] sm:$0xff]  ;;  %v5628_v53 = vld [vmem:[%s8774_s5 + $0x70] sm:$0xff]   ;;  %s8865_s27 = smov 32  }
 0x260   : > { %v3183_v42 = vmax.f32 %v3167_v20, %v3169_v25  ;;  %5363 = vmatprep.subr.bf16.mxu0 %v5628_v53  ;;  %v3280_v35 = vld [vmem:[#allocation3 + $0x2] sm:$0xff]  ;;  %v5636_v17 = vld [vmem:[%s8774_s5 + $0x50] sm:$0xff]  }
 0x261   : > { %v3182_v0 = vmax.f32 %v3166_v27, %v3168_v24  ;;  %v7526_v50 = vpop.permute.xlu1 %2191  ;;  %5364 = vmatpush3.bf16.msra.mxu0 %v5629_v34  ;;  %v5637_v20 = vld [vmem:[%s8774_s5 + $0x10] sm:$0xff]  }
 0x262   : > { %8847 = vst [vmem:[#allocation98_spill] sm:$0xff] %v7526_v50  ;;  %3191 = vst.msk [vmem:[#allocation2 + $0x8] sm:$0xff] %vm642_vm0, %v3183_v42  ;;  %v7529_v23 = vpop.permute.xlu0 %2186  ;;  %3099 = vperm.xlu1 %5623, %v5271_v56   ;;  %5365 = vmatprep.subr.bf16.mxu0 %v5630_v13  ;;  %v8858_v42 = vld [vmem:[#allocation38_spill] sm:$0xff] }
 0x263   : > { %8848 = vst [vmem:[#allocation16_spill] sm:$0xff] %v7529_v23  ;;  %3190 = vst.msk [vmem:[#allocation2] sm:$0xff] %vm642_vm0, %v3182_v0  ;;  %3094 = vperm.xlu0 %5622, %v5270_v37   ;;  %v8859_v37 = vld [vmem:[#allocation31_spill] sm:$0xff]  ;;  %v5639_v0 = vld [vmem:[%s8774_s5 + $0x8] sm:$0xff]  }
 0x264   : > { %v3563_v13 = vld [vmem:[#allocation6 + $0x40] sm:$0xff] }
 0x265   : > { %v7538_v21 = vpop.permute.xlu1 %2201  ;;  %5366 = vmatpush3.bf16.msra.mxu0 %v5631_v2 }
 0x266   : > { %8849 = vst [vmem:[#allocation17_spill] sm:$0xff] %v7538_v21  ;;  %v7540_v38 = vpop.permute.xlu0 %2196  ;;  %3412 = vrot.lane.b32.xlu1 %v8851_v8, %s8544_s3  ;;  %5367 = vmatprep.subr.bf16.mxu0 %v5632_v46  ;;  %v8866_v46 = vld [vmem:[#allocation36_spill] sm:$0xff] }
 0x267   : > { %8850 = vst [vmem:[#allocation18_spill] sm:$0xff] %v7540_v38  ;;  %3410 = vrot.lane.b32.xlu0 %v3394_v54, %s8544_s3 }
 0x269   : > { %v7548_v49 = vpop.permute.xlu1 %2664  ;;  %5368 = vmatpush3.bf16.msra.mxu0 %v5633_v60 }
 0x26a   : > { %v3198_v7 = vld [vmem:[#allocation2] ss:$2 sm:$0xff]  ;;  %v3202_v1 = vld [vmem:[#allocation2 + $0x1] ss:$2 sm:$0xff]  ;;  %v7553_v57 = vpop.permute.xlu0 %2659  ;;  %3249 = vrot.lane.b32.xlu1 %v8852_v45, %s8544_s3  ;;  %5369 = vmatprep.subr.bf16.mxu0 %v5634_v33 }
 0x26b   : > { %v3206_v4 = vmax.f32 %v3198_v7, %v3202_v1  ;;  %3247 = vrot.lane.b32.xlu0 %v3231_v51, %s8544_s3  ;;  %v5640_v51 = vld [vmem:[%s8774_s5 + $0x40] sm:$0xff]   ;;  %s632_s3 = scalar_lea.vmem [#allocation8], %s631_s29 }
 0x26c   : > { %v5641_v45 = vld [vmem:[%s8774_s5] sm:$0xff]   ;;  %s4952_s21 = sshll.u32 %s632_s3, 4  ;;  %s8422_s21 = int_to_ptr.vmem [resolvable:$true] %s4952_s21 }
 0x26d   : > { %3211 = vst.msk [vmem:[#allocation3 + $0x51] sm:$0xff] %vm642_vm0, %v3206_v4  ;;  %v7566_v52 = vpop.permute.xlu1 %2674  ;;  %5370 = vmatpush3.bf16.msra.mxu0 %v5635_v15  ;;  %v3546_v4 = vld [vmem:[#allocation3 + $0x92] sm:$0xff]  ;;  %s5712_s0 = scalar_lea.vmem %s8422_s21, 16 }
 0x26e   : > { %v7568_v63 = vpop.permute.xlu0 %2669  ;;  %3461 = vrot.lane.b32.xlu1 %v8853_v12, %s8547_s23  ;;  %5371 = vmatprep.subr.bf16.mxu0 %v5636_v17  ;;  %3554 = vst.msk [vmem:[#allocation6 + $0xb8] sm:$0xff] %vm642_vm0, %v3546_v4  ;;  %v8879_v4 = vld [vmem:[#allocation29_spill] sm:$0xff]  ;;  %p5713_p11 = scmp.ne.s32.totalorder %s8422_s21, %s5712_s0 }
 0x26f   : > { %3459 = vrot.lane.b32.xlu0 %v8854_v5, %s8547_s23 }
 0x270   : > { %p5714_p12 = pnand %p5713_p11, %p5924_p5 }
 0x271   : > { %v7580_v30 = vpop.permute.xlu1 %2684  ;;  %5372 = vmatpush3.bf16.msra.mxu0 %v5637_v20 }
 0x272   : > { %v7582_v16 = vpop.permute.xlu0 %2679  ;;  %3298 = vrot.lane.b32.xlu1 %v3394_v54, %s8547_s23  ;;  %5373 = vmatprep.subr.bf16.mxu0 %v5638_v55  ;;  %v8862_v54 = vld [vmem:[#allocation20_spill] sm:$0xff]  ;;  %p5715_p13 = pneg %p5714_p12 }
 0x273   : > { %3296 = vrot.lane.b32.xlu0 %v3280_v35, %s8547_s23  ;;  %s8867_s23 = smov 64  }
 0x274   : > { %v7592_v25 = vld [vmem:[#allocation3 + $0x52] sm:$0xff] }
 0x275   : > { %8855 = vst [vmem:[#allocation23_spill] sm:$0xff] %v7592_v25  ;;  %v7594_v27 = vld [vmem:[#allocation3 + $0x50] sm:$0xff]  ;;  %v7598_v56 = vpop.permute.xlu1 %2694  ;;  %3550 = vst.msk [vmem:[#allocation6 + $0x58] sm:$0xff] %vm642_vm0, %v7592_v25  ;;  %5374 = vmatpush3.bf16.msra.mxu0 %v5639_v0 }
 0x276   : > { %8856 = vst [vmem:[#allocation24_spill] sm:$0xff] %v7594_v27  ;;  %v7596_v24 = vld [vmem:[#allocation3 + $0x51] sm:$0xff]  ;;  %3228 = vst.msk [vmem:[#allocation6 + $0x78] sm:$0xff] %vm642_vm0, %v7594_v27  ;;  %v7606_v9 = vpop.permute.xlu0 %2689  ;;  %3509 = vrot.lane.b32.xlu1 %v8858_v42, %s5778_s1  ;;  %5375 = vmatprep.subr.bf16.mxu0 %v5640_v51 }
 0x277   : > { %8857 = vst [vmem:[#allocation19_spill] sm:$0xff] %v7596_v24  ;;  %3390 = vst.msk [vmem:[#allocation6 + $0x68] sm:$0xff] %vm642_vm0, %v7596_v24  ;;  %3507 = vrot.lane.b32.xlu0 %v8859_v37, %s5778_s1 }
 0x279   : > { %v7618_v53 = vpop.permute.xlu1 %2319  ;;  %5376 = vmatpush3.bf16.msra.mxu0 %v5641_v45 }
 0x27a   : > { %8860 = vst [vmem:[#allocation50_spill] sm:$0xff] %v7618_v53  ;;  %v7620_v34 = vpop.permute.xlu0 %2314  ;;  %3347 = vrot.lane.b32.xlu1 %v8854_v5, %s5778_s1  ;;  %v8896_v53 = vld [vmem:[#allocation107_spill] sm:$0xff] }
 0x27b   : > { %8861 = vst [vmem:[#allocation104_spill] sm:$0xff] %v7620_v34  ;;  %3345 = vrot.lane.b32.xlu0 %v8862_v54, %s5778_s1  ;;  %v8876_v54 = vld [vmem:[#allocation34_spill] sm:$0xff] }
 0x27c   : > { %v3566_v2 = vld [vmem:[#allocation6 + $0x58] sm:$0xff]  ;;  %v2209_v51 = vmul.f32 %v7249_v62, %v8876_v54 }
 0x27d   : > { %v7629_v7 = vpop.permute.xlu1 %2329  ;;  %v3584_v1 = vpack.c.bf16 %v3566_v2, %v3563_v13  ;;  %v8877_v13 = vld [vmem:[#allocation35_spill] sm:$0xff] }
 0x27e   : > { %8863 = vst [vmem:[#allocation51_spill] sm:$0xff] %v7629_v7  ;;  %v7634_v6 = vpop.permute.xlu0 %2324  ;;  %3416 = vrot.lane.b32.xlu1 %v7499_v48, %s8865_s27  ;;  %v2208_v2 = vmul.f32 %v7249_v62, %v8877_v13  ;;  %v8882_v54 = vld [vmem:[#allocation39_spill] sm:$0xff] }
 0x27f   : > { %8864 = vst [vmem:[#allocation46_spill] sm:$0xff] %v7634_v6  ;;  %3414 = vrot.lane.b32.xlu0 %v8866_v46, %s8865_s27  ;;  %5499 = vmatmul.mubr.msk.bf16.vlgmr.msra.gmra.mxu1 %vm642_vm0, %v3584_v1  ;;  %v2211_v13 = vmul.f32 %v7249_v62, %v8882_v54  ;;  %v8884_v6 = vld [vmem:[#allocation45_spill] sm:$0xff]  ;;  %v8887_v7 = vld [vmem:[#allocation55_spill] sm:$0xff] }
 0x280   : > { %v8888_v54 = vld [vmem:[#allocation41_spill] sm:$0xff] }
 0x281   : > { %v7642_v60 = vpop.permute.xlu1 %2793  ;;  %v2085_v34 = vmul.f32 %v7269_v22, %v8888_v54 }
 0x282   : > { %v7644_v5 = vpop.permute.xlu0 %2788  ;;  %3253 = vrot.lane.b32.xlu1 %v8858_v42, %s8865_s27 }
 0x283   : > { %3251 = vrot.lane.b32.xlu0 %v8859_v37, %s8865_s27 }
 0x285   : > { %v7650_v33 = vpop.permute.xlu1 %2803 }
 0x286   : > { %v7652_v15 = vpop.permute.xlu0 %2798  ;;  %3465 = vrot.lane.b32.xlu1 %v7594_v27, %s8867_s23  ;;  %v8880_v27 = vld [vmem:[#allocation32_spill] sm:$0xff] }
 0x287   : > { %3463 = vrot.lane.b32.xlu0 %v7501_v39, %s8867_s23 }
 0x289   : > { %v7658_v35 = vpop.permute.xlu1 %2813 }
 0x28a   : > { %8868 = vst [vmem:[#allocation103_spill] sm:$0xff] %v7658_v35  ;;  %v7660_v17 = vpop.permute.xlu0 %2808  ;;  %3302 = vrot.lane.b32.xlu1 %v8866_v46, %s8867_s23  ;;  %v2080_v46 = vmul.f32 %v7269_v22, %v8879_v4 }
 0x28b   : > { %8869 = vst [vmem:[#allocation67_spill] sm:$0xff] %v7660_v17  ;;  %3300 = vrot.lane.b32.xlu0 %v8851_v8, %s8867_s23  ;;  %v8898_v17 = vld [vmem:[#allocation79_spill] sm:$0xff] }
 0x28d   : > { %v7666_v20 = vpop.permute.xlu1 %2823 }
 0x28e   : > { %8870 = vst [vmem:[#allocation109_spill] sm:$0xff] %v7666_v20  ;;  %v7668_v42 = vpop.permute.xlu0 %2818  ;;  %3513 = vrot.lane.b32.xlu1 %v7596_v24, %s5778_s1  ;;  %v2083_v24 = vmul.f32 %v7269_v22, %v8880_v27  ;;  %v2224_v27 = vadd.f32 %v2208_v2, %v2080_v46  ;;  %v8895_v46 = vld [vmem:[#allocation56_spill] sm:$0xff] }
 0x28f   : > { %8871 = vst [vmem:[#allocation47_spill] sm:$0xff] %v7668_v42  ;;  %3511 = vrot.lane.b32.xlu0 %v7503_v3, %s5778_s1  ;;  %v2339_v54 = vmul.f32 %v7367_v32, %v8895_v46  ;;  %v8897_v42 = vld [vmem:[#allocation108_spill] sm:$0xff] }
 0x290   : > { %v2227_v21 = vadd.f32 %v2211_v13, %v2083_v24  ;;  %v2341_v20 = vmul.f32 %v7367_v32, %v8897_v42  ;;  %v8899_v46 = vld [vmem:[#allocation80_spill] sm:$0xff] }
 0x291   : > { %v7674_v37 = vpop.permute.xlu1 %2448  ;;  %v8902_v13 = vld [vmem:[#allocation84_spill] sm:$0xff] }
 0x292   : > { %8872 = vst [vmem:[#allocation68_spill] sm:$0xff] %v7674_v37  ;;  %v7676_v55 = vpop.permute.xlu0 %2443  ;;  %3351 = vrot.lane.b32.xlu1 %v7501_v39, %s5778_s1  ;;  %v8878_v39 = vld [vmem:[#allocation28_spill] sm:$0xff]  ;;  %v8886_v37 = vld [vmem:[#allocation71_spill] sm:$0xff] }
 0x293   : > { %8873 = vst [vmem:[#allocation52_spill] sm:$0xff] %v7676_v55  ;;  %3349 = vrot.lane.b32.xlu0 %v8853_v12, %s5778_s1  ;;  %v2081_v12 = vmul.f32 %v7269_v22, %v8878_v39  ;;  %v2213_v39 = vmul.f32 %v7249_v62, %v8884_v6  ;;  %v8885_v55 = vld [vmem:[#allocation54_spill] sm:$0xff] }
 0x294   : > { %v2212_v4 = vmul.f32 %v7249_v62, %v8885_v55  ;;  %v8890_v6 = vld [vmem:[#allocation106_spill] sm:$0xff]  ;;  %v8891_v55 = vld [vmem:[#allocation77_spill] sm:$0xff] }
 0x295   : > { %v7682_v8 = vpop.permute.xlu1 %2458  ;;  %v2225_v58 = vadd.f32 %v2209_v51, %v2081_v12  ;;  %v2337_v26 = vmul.f32 %v7367_v32, %v8890_v6  ;;  %v2336_v51 = vmul.f32 %v7367_v32, %v8891_v55  ;;  %v2229_v6 = vadd.f32 %v2213_v39, %v2085_v34  ;;  %v8903_v39 = vld [vmem:[#allocation89_spill] sm:$0xff] }
 0x296   : > { %8874 = vst [vmem:[#allocation99_spill] sm:$0xff] %v7682_v8  ;;  %v7684_v0 = vpop.permute.xlu0 %2453 }
 0x297   : > { %8875 = vst [vmem:[#allocation53_spill] sm:$0xff] %v7684_v0  ;;  %3418 = vrot.lane.b32.xlu0 %v7592_v25, %s8865_s27  ;;  %v8881_v25 = vld [vmem:[#allocation33_spill] sm:$0xff]  ;;  %v8883_v0 = vld [vmem:[#allocation40_spill] sm:$0xff] }
 0x298   : > { %v2082_v48 = vmul.f32 %v7269_v22, %v8881_v25  ;;  %v2210_v8 = vmul.f32 %v7249_v62, %v8883_v0  ;;  %v2215_v25 = vmul.f32 %v7249_v62, %v8886_v37  ;;  %v8889_v0 = vld [vmem:[#allocation42_spill] sm:$0xff]  ;;  %v8893_v37 = vld [vmem:[#allocation43_spill] sm:$0xff] }
 0x299   : > { %v7692_v1 = vpop.permute.xlu1 %2921  ;;  %v2084_v38 = vmul.f32 %v7269_v22, %v8889_v0  ;;  %v2087_v12 = vmul.f32 %v7269_v22, %v8893_v37  ;;  %v2338_v0 = vmul.f32 %v7367_v32, %v8896_v53  ;;  %v2340_v37 = vmul.f32 %v7367_v32, %v8898_v17  ;;  %v8900_v53 = vld [vmem:[#allocation78_spill] sm:$0xff] }
 0x29a   : > { %v7694_v45 = vpop.permute.xlu0 %2916  ;;  %v2226_v61 = vadd.f32 %v2210_v8, %v2082_v48  ;;  %v2342_v48 = vmul.f32 %v7367_v32, %v8900_v53  ;;  %v8901_v8 = vld [vmem:[#allocation83_spill] sm:$0xff]  ;;  %v2465_v17 = vmul.f32 %v7382_v28, %v8902_v13  ;;  %v2594_v13 = vmul.f32 %v7402_v11, %v7344_v29 }
 0x29b   : > { %3255 = vrot.lane.b32.xlu0 %v7503_v3, %s8865_s27  ;;  %v2214_v3 = vmul.f32 %v7249_v62, %v8887_v7  ;;  %v8894_v62 = vld [vmem:[#allocation44_spill] sm:$0xff]  ;;  %v2228_v23 = vadd.f32 %v2212_v4, %v2084_v38  ;;  %v2231_v50 = vadd.f32 %v2215_v25, %v2087_v12  ;;  %v2355_v38 = vadd.f32 %v2339_v54, %v2227_v21  ;;  %v8907_v12 = vld [vmem:[#allocation75_spill] sm:$0xff] }
 0x29c   : > { %v2086_v7 = vmul.f32 %v7269_v22, %v8894_v62  ;;  %v2353_v22 = vadd.f32 %v2337_v26, %v2225_v58  ;;  %v2352_v62 = vadd.f32 %v2336_v51, %v2224_v27  ;;  %v2354_v34 = vadd.f32 %v2338_v0, %v2226_v61  ;;  %v8904_v58 = vld [vmem:[#allocation61_spill] sm:$0xff]  ;;  %v8905_v27 = vld [vmem:[#allocation90_spill] sm:$0xff]  ;;  %v8908_v54 = vld [vmem:[#allocation76_spill] sm:$0xff] }
 0x29d   : > { %v7718_v10 = vpop.permute.xlu1 %2931  ;;  %v2466_v42 = vmul.f32 %v7382_v28, %v8901_v8  ;;  %v2468_v26 = vmul.f32 %v7382_v28, %v8903_v39  ;;  %v2467_v4 = vmul.f32 %v7382_v28, %v8904_v58  ;;  %v2470_v25 = vmul.f32 %v7382_v28, %v8905_v27 }
 0x29e   : > { %v7728_v2 = vpop.permute.xlu0 %2926  ;;  %v2230_v55 = vadd.f32 %v2214_v3, %v2086_v7  ;;  %v8906_v3 = vld [vmem:[#allocation62_spill] sm:$0xff]  ;;  %v2357_v21 = vadd.f32 %v2341_v20, %v2229_v6  ;;  %v2356_v61 = vadd.f32 %v2340_v37, %v2228_v23  ;;  %v2472_v7 = vmul.f32 %v7382_v28, %v8907_v12 }
 0x29f   : > { %8892 = vst [vmem:[#allocation100_spill] sm:$0xff] %v7728_v2  ;;  %v2343_v2 = vmul.f32 %v7367_v32, %v8899_v46  ;;  %v2469_v51 = vmul.f32 %v7382_v28, %v8906_v3  ;;  %v2471_v0 = vmul.f32 %v7382_v28, %v8908_v54  ;;  %v2593_v39 = vmul.f32 %v7402_v11, %v7352_v41 }
 0x2a0   : > { %v2358_v8 = vadd.f32 %v2342_v48, %v2230_v55  ;;  %v2482_v20 = vadd.f32 %v2466_v42, %v2353_v22  ;;  %v2481_v23 = vadd.f32 %v2465_v17, %v2352_v62  ;;  %v2596_v6 = vmul.f32 %v7402_v11, %v7377_v40 }
 0x2a1   : > { %v7742_v35 = vpop.permute.xlu1 %2941  ;;  %v2359_v53 = vadd.f32 %v2343_v2, %v2231_v50  ;;  %v2595_v37 = vmul.f32 %v7402_v11, %v7386_v18  ;;  %v2484_v27 = vadd.f32 %v2468_v26, %v2355_v38  ;;  %v2483_v3 = vadd.f32 %v2467_v4, %v2354_v34 }
 0x2a2   : > { %v7748_v24 = vpop.permute.xlu0 %2936  ;;  %v2486_v50 = vadd.f32 %v2470_v25, %v2357_v21  ;;  %v2485_v2 = vadd.f32 %v2469_v51, %v2356_v61  ;;  %v2487_v48 = vadd.f32 %v2471_v0, %v2358_v8  ;;  %v2598_v29 = vmul.f32 %v7402_v11, %v7413_v43 }
 0x2a3   : > { %v2488_v55 = vadd.f32 %v2472_v7, %v2359_v53  ;;  %v2597_v41 = vmul.f32 %v7402_v11, %v7425_v19  ;;  %v2610_v62 = vadd.f32 %v2594_v13, %v2482_v20  ;;  %v2609_v42 = vadd.f32 %v2593_v39, %v2481_v23 }
 0x2a4   : > { %v2600_v40 = vmul.f32 %v7402_v11, %v7442_v31  ;;  %v2722_v18 = vmul.f32 %v7420_v36, %v7548_v49  ;;  %v2612_v34 = vadd.f32 %v2596_v6, %v2484_v27  ;;  %v2611_v17 = vadd.f32 %v2595_v37, %v2483_v3 }
 0x2a5   : > { %v7766_v46 = vpop.permute.xlu1 %2951  ;;  %v2599_v43 = vmul.f32 %v7402_v11, %v7448_v44  ;;  %v2721_v19 = vmul.f32 %v7420_v36, %v7553_v57  ;;  %v2724_v26 = vmul.f32 %v7420_v36, %v7566_v52  ;;  %v2723_v4 = vmul.f32 %v7420_v36, %v7568_v63 }
 0x2a6   : > { %v7772_v58 = vpop.permute.xlu0 %2946  ;;  %v2726_v31 = vmul.f32 %v7420_v36, %v7580_v30  ;;  %v2851_v49 = vmul.f32 %v7458_v59, %v7642_v60  ;;  %v2614_v25 = vadd.f32 %v2598_v29, %v2486_v50  ;;  %v2613_v51 = vadd.f32 %v2597_v41, %v2485_v2  ;;  %v8909_v50 = vld [vmem:[#allocation100_spill] sm:$0xff]  ;;  %v8912_v41 = vld [vmem:[#allocation109_spill] sm:$0xff] }
 0x2a7   : > { %v2725_v44 = vmul.f32 %v7420_v36, %v7582_v16  ;;  %v2850_v57 = vmul.f32 %v7458_v59, %v7644_v5  ;;  %v2616_v52 = vadd.f32 %v2600_v40, %v2488_v55  ;;  %v2738_v61 = vadd.f32 %v2722_v18, %v2610_v62  ;;  %v8910_v55 = vld [vmem:[#allocation103_spill] sm:$0xff] }
 0x2a8   : > { %v2728_v63 = vmul.f32 %v7420_v36, %v7598_v56  ;;  %v2979_v30 = vmul.f32 %v7468_v47, %v7692_v1  ;;  %v2615_v60 = vadd.f32 %v2599_v43, %v2487_v48  ;;  %v2737_v7 = vadd.f32 %v2721_v19, %v2609_v42  ;;  %v8913_v18 = vld [vmem:[#allocation47_spill] sm:$0xff] }
 0x2a9   : > { %v7782_v22 = vpop.permute.xlu1 %2576  ;;  %v2853_v16 = vmul.f32 %v7458_v59, %v7650_v33  ;;  %v2978_v5 = vmul.f32 %v7468_v47, %v7694_v45  ;;  %v2740_v54 = vadd.f32 %v2724_v26, %v2612_v34  ;;  %v2739_v0 = vadd.f32 %v2723_v4, %v2611_v17  ;;  %v7841_v4 = vld [vmem:[%s8720_s28] ss:$0 sm:$0xff] }
 0x2aa   : > { %v7788_v38 = vpop.permute.xlu0 %2571  ;;  %v2742_v53 = vadd.f32 %v2726_v31, %v2614_v25  ;;  %v2867_v8 = vadd.f32 %v2851_v49, %v2738_v61  ;;  %v2741_v13 = vadd.f32 %v2725_v44, %v2613_v51  ;;  %v2727_v56 = vmul.f32 %v7420_v36, %v7606_v9 }
 0x2ab   : > { %v2866_v39 = vadd.f32 %v2850_v57, %v2737_v7  ;;  %v2852_v1 = vmul.f32 %v7458_v59, %v7652_v15  ;;  %v2744_v23 = vadd.f32 %v2728_v63, %v2616_v52  ;;  %v2981_v33 = vmul.f32 %v7468_v47, %v7718_v10  ;;  %v8911_v15 = vld [vmem:[#allocation67_spill] sm:$0xff] }
 0x2ac   : > { %v2995_v6 = vadd.f32 %v2979_v30, %v2867_v8  ;;  %v2869_v27 = vadd.f32 %v2853_v16, %v2740_v54  ;;  %v2980_v2 = vmul.f32 %v7468_v47, %v8909_v50  ;;  %v2855_v48 = vmul.f32 %v7458_v59, %v8910_v55 }
 0x2ad   : > { %v7806_v21 = vpop.permute.xlu1 %2586  ;;  %v2994_v3 = vadd.f32 %v2978_v5, %v2866_v39  ;;  %v2854_v29 = vmul.f32 %v7458_v59, %v8911_v15  ;;  %v2857_v62 = vmul.f32 %v7458_v59, %v8912_v41  ;;  %v2743_v42 = vadd.f32 %v2727_v56, %v2615_v60 }
 0x2ae   : > { %v7812_v12 = vpop.permute.xlu0 %2581  ;;  %v2868_v40 = vadd.f32 %v2852_v1, %v2739_v0  ;;  %v2856_v34 = vmul.f32 %v7458_v59, %v8913_v18  ;;  %v2997_v19 = vadd.f32 %v2981_v33, %v2869_v27  ;;  %v2983_v26 = vmul.f32 %v7468_v47, %v7742_v35 }
 0x2af   : > { %v2982_v44 = vmul.f32 %v7468_v47, %v7748_v24  ;;  %v2871_v61 = vadd.f32 %v2855_v48, %v2742_v53  ;;  %v2870_v35 = vadd.f32 %v2854_v29, %v2741_v13  ;;  %v2873_v63 = vadd.f32 %v2857_v62, %v2744_v23  ;;  %v7856_v24 = vld [vmem:[%s8725_s26] ss:$0 sm:$0xff] }
 0x2b0   : > { %v2996_v51 = vadd.f32 %v2980_v2, %v2868_v40  ;;  %v2872_v60 = vadd.f32 %v2856_v34, %v2743_v42  ;;  %v2985_v7 = vmul.f32 %v7468_v47, %v7766_v46  ;;  %v2984_v16 = vmul.f32 %v7468_v47, %v7772_v58 }
 0x2b1   : > { %v3050_v20 = vpop.permute.xlu1 %3049  ;;  %v2999_v0 = vadd.f32 %v2983_v26, %v2871_v61  ;;  %v2998_v39 = vadd.f32 %v2982_v44, %v2870_v35 }
 0x2b2   : > { %v3107_v45 = vmul.f32 %v7484_v14, %v3050_v20  ;;  %v3045_v37 = vpop.permute.xlu0 %3044  ;;  %v3000_v33 = vadd.f32 %v2984_v16, %v2872_v60  ;;  %v5710_v60 = vld [vmem:[%s8657_s25 + $0x1] ss:$0 sm:$0xff] }
 0x2b3   : > { %v3106_v9 = vmul.f32 %v7484_v14, %v3045_v37 }
 0x2b4   : > { %v3123_v10 = vadd.f32 %v3107_v45, %v2995_v6  ;;  %v3001_v6 = vadd.f32 %v2985_v7, %v2873_v63  ;;  %v8914_v7 = vld [vmem:[#allocation98_spill] sm:$0xff] }
 0x2b5   : > { %v3122_v17 = vadd.f32 %v3106_v9, %v2994_v3  ;;  %v3060_v43 = vpop.permute.xlu1 %3059  ;;  %v2217_v16 = vmul.f32 %v5710_v60, %v8914_v7  ;;  %v8928_v7 = vld [vmem:[#allocation99_spill] sm:$0xff] }
 0x2b6   : > { %v3139_v31 = vmul.f32 %v7841_v4, %v3123_v10  ;;  %v3109_v49 = vmul.f32 %v7484_v14, %v3060_v43  ;;  %v3055_v25 = vpop.permute.xlu0 %3054 }
 0x2b7   : > { %v3138_v57 = vmul.f32 %v7841_v4, %v3122_v17  ;;  %v3108_v52 = vmul.f32 %v7484_v14, %v3055_v25 }
 0x2b8   : > { %v3125_v30 = vadd.f32 %v3109_v49, %v2997_v19  ;;  %v3155_v53 = vadd.f32 %v7856_v24, %v3139_v31 }
 0x2b9   : > { %v3124_v5 = vadd.f32 %v3108_v52, %v2996_v51  ;;  %v3070_v54 = vpop.permute.xlu1 %3069  ;;  %v3154_v46 = vadd.f32 %v7856_v24, %v3138_v57 }
 0x2ba   : > { %v3141_v8 = vmul.f32 %v7841_v4, %v3125_v30  ;;  %v3111_v13 = vmul.f32 %v7484_v14, %v3070_v54  ;;  %v3065_v56 = vpop.permute.xlu0 %3064  ;;  %v3171_v3 = vmax.f32 %v3155_v53, 0.0  ;;  %v8915_v53 = vld [vmem:[#allocation16_spill] sm:$0xff] }
 0x2bb   : > { %v3140_v58 = vmul.f32 %v7841_v4, %v3124_v5  ;;  %v3110_v1 = vmul.f32 %v7484_v14, %v3065_v56  ;;  %v3170_v48 = vmax.f32 %v3154_v46, 0.0  ;;  %v5711_v56 = vld [vmem:[%s8657_s25] ss:$0 sm:$0xff]  ;;  %s5358_s25 = sshll.u32 %s5907_s2, 4  ;;  %s5780_s2 = smov [#allocation8]  }
 0x2bc   : > { %v3157_v20 = vadd.f32 %v7856_v24, %v3141_v8  ;;  %v3127_v23 = vadd.f32 %v3111_v13, %v2999_v0  ;;  %v2216_v8 = vmul.f32 %v5710_v60, %v8915_v53  ;;  %s8420_s5 = scalar_lea.hbm %s8481_s20, %s5358_s25 }
 0x2bd   : > { %v3156_v45 = vadd.f32 %v7856_v24, %v3140_v58  ;;  %v3126_v37 = vadd.f32 %v3110_v1, %v2998_v39  ;;  %v3080_v27 = vpop.permute.xlu1 %3079  ;;  %v8916_v39 = vld [vmem:[#allocation87_spill] sm:$0xff]  ;;  %v8917_v58 = vld [vmem:[#allocation17_spill] sm:$0xff] }
 0x2be   : > { %v3173_v50 = vmax.f32 %v3157_v20, 0.0  ;;  %v3143_v2 = vmul.f32 %v7841_v4, %v3127_v23  ;;  %v3113_v9 = vmul.f32 %v7484_v14, %v3080_v27  ;;  %v3075_v55 = vpop.permute.xlu0 %3074  ;;  %v2089_v46 = vmul.f32 %v5711_v56, %v8916_v39  ;;  %v8918_v20 = vld [vmem:[#allocation50_spill] sm:$0xff]  ;;  %v8921_v27 = vld [vmem:[#allocation104_spill] sm:$0xff] }
 0x2bf   : > { %v3172_v15 = vmax.f32 %v3156_v45, 0.0  ;;  %v3142_v29 = vmul.f32 %v7841_v4, %v3126_v37  ;;  %v3112_v41 = vmul.f32 %v7484_v14, %v3075_v55  ;;  %v2219_v1 = vmul.f32 %v5710_v60, %v8917_v58  ;;  %v8920_v45 = vld [vmem:[#allocation18_spill] sm:$0xff] }
 0x2c0   : > { %v3185_v62 = vmax.f32 %v3171_v3, %v3173_v50  ;;  %v3129_v10 = vadd.f32 %v3113_v9, %v3001_v6  ;;  %v3159_v34 = vadd.f32 %v7856_v24, %v3143_v2  ;;  %v2345_v23 = vmul.f32 %v7367_v32, %v8918_v20  ;;  %v8919_v6 = vld [vmem:[#allocation88_spill] sm:$0xff] }
 0x2c1   : > { %v3184_v42 = vmax.f32 %v3170_v48, %v3172_v15  ;;  %v3128_v40 = vadd.f32 %v3112_v41, %v3000_v33  ;;  %v2705_v18 = vpop.permute.xlu1 %2704  ;;  %v3158_v19 = vadd.f32 %v7856_v24, %v3142_v29  ;;  %v2088_v33 = vmul.f32 %v5711_v56, %v8919_v6  ;;  %v8922_v2 = vld [vmem:[#allocation92_spill] sm:$0xff]  ;;  %v8923_v48 = vld [vmem:[#allocation51_spill] sm:$0xff] }
 0x2c2   : > { %3193 = vst.msk [vmem:[#allocation2 + $0x18] sm:$0xff] %vm642_vm0, %v3185_v62  ;;  %v3145_v17 = vmul.f32 %v7841_v4, %v3129_v10  ;;  %v2700_v43 = vpop.permute.xlu0 %2699  ;;  %v3175_v51 = vmax.f32 %v3159_v34, 0.0  ;;  %v2218_v37 = vmul.f32 %v5710_v60, %v8920_v45  ;;  %v2344_v3 = vmul.f32 %v7367_v32, %v8921_v27  ;;  %v8924_v29 = vld [vmem:[#allocation68_spill] sm:$0xff]  ;;  %v8925_v10 = vld [vmem:[#allocation97_spill] sm:$0xff] }
 0x2c3   : > { %3192 = vst.msk [vmem:[#allocation2 + $0x10] sm:$0xff] %vm642_vm0, %v3184_v42  ;;  %v3144_v26 = vmul.f32 %v7841_v4, %v3128_v40  ;;  %v3174_v52 = vmax.f32 %v3158_v19, 0.0  ;;  %v2091_v9 = vmul.f32 %v5711_v56, %v8922_v2  ;;  %v2233_v55 = vadd.f32 %v2217_v16, %v2089_v46  ;;  %v8926_v34 = vld [vmem:[#allocation52_spill] sm:$0xff] }
 0x2c4   : > { %v3161_v31 = vadd.f32 %v7856_v24, %v3145_v17  ;;  %v2347_v15 = vmul.f32 %v7367_v32, %v8923_v48  ;;  %v2474_v41 = vmul.f32 %v7382_v28, %v8924_v29  ;;  %v2090_v42 = vmul.f32 %v5711_v56, %v8925_v10 }
 0x2c5   : > { %v3160_v49 = vadd.f32 %v7856_v24, %v3144_v26  ;;  %v7878_v25 = vpop.permute.xlu1 %2714  ;;  %v2232_v40 = vadd.f32 %v2216_v8, %v2088_v33  ;;  %v2473_v17 = vmul.f32 %v7382_v28, %v8926_v34  ;;  %v2235_v19 = vadd.f32 %v2219_v1, %v2091_v9 }
 0x2c6   : > { %v3177_v44 = vmax.f32 %v3161_v31, 0.0  ;;  %v7880_v57 = vpop.permute.xlu0 %2709  ;;  %v2361_v26 = vadd.f32 %v2345_v23, %v2233_v55  ;;  %v8927_v31 = vld [vmem:[#allocation46_spill] sm:$0xff]  ;;  %v2476_v16 = vmul.f32 %v7382_v28, %v8928_v7  ;;  %v2729_v56 = vmul.f32 %v7420_v36, %v2700_v43 }
 0x2c7   : > { %v3176_v61 = vmax.f32 %v3160_v49, 0.0  ;;  %v2346_v49 = vmul.f32 %v7367_v32, %v8927_v31  ;;  %v2604_v58 = vmul.f32 %v7402_v11, %v7806_v21  ;;  %v2731_v27 = vmul.f32 %v7420_v36, %v7880_v57 }
 0x2c8   : > { %v3187_v35 = vmax.f32 %v3175_v51, %v3177_v44  ;;  %v2602_v51 = vmul.f32 %v7402_v11, %v7782_v22  ;;  %v2234_v44 = vadd.f32 %v2218_v37, %v2090_v42  ;;  %v2490_v60 = vadd.f32 %v2474_v41, %v2361_v26  ;;  %v8931_v41 = vld [vmem:[#allocation19_spill] sm:$0xff] }
 0x2c9   : > { %v3186_v63 = vmax.f32 %v3174_v52, %v3176_v61  ;;  %v2834_v30 = vpop.permute.xlu1 %2833  ;;  %v2360_v52 = vadd.f32 %v2344_v3, %v2232_v40  ;;  %v2601_v61 = vmul.f32 %v7402_v11, %v7788_v38 }
 0x2ca   : > { %3195 = vst.msk [vmem:[#allocation2 + $0x28] sm:$0xff] %vm642_vm0, %v3187_v35  ;;  %v2829_v5 = vpop.permute.xlu0 %2828  ;;  %v3199_v54 = vld [vmem:[#allocation2 + $0x10] ss:$2 sm:$0xff]  ;;  %v3203_v0 = vld [vmem:[#allocation2 + $0x11] ss:$2 sm:$0xff]  ;;  %v2362_v46 = vadd.f32 %v2346_v49, %v2234_v44  ;;  %v2618_v38 = vadd.f32 %v2602_v51, %v2490_v60  ;;  %v2859_v1 = vmul.f32 %v7458_v59, %v2834_v30  ;;  %v2732_v30 = vmul.f32 %v7420_v36, %v7878_v25 }
 0x2cb   : > { %3194 = vst.msk [vmem:[#allocation2 + $0x20] sm:$0xff] %vm642_vm0, %v3186_v63  ;;  %v3207_v13 = vmax.f32 %v3199_v54, %v3203_v0  ;;  %v2363_v63 = vadd.f32 %v2347_v15, %v2235_v19  ;;  %v2730_v54 = vmul.f32 %v7420_v36, %v2705_v18  ;;  %v2489_v32 = vadd.f32 %v2473_v17, %v2360_v52  ;;  %v8930_v25 = vld [vmem:[#allocation91_spill] sm:$0xff] }
 0x2cc   : > { %v2858_v43 = vmul.f32 %v7458_v59, %v2829_v5 }
 0x2cd   : > { %v2844_v50 = vpop.permute.xlu1 %2843  ;;  %3212 = vst.msk [vmem:[#allocation3 + $0x61] sm:$0xff] %vm642_vm0, %v3207_v13  ;;  %v8929_v13 = vld [vmem:[#allocation53_spill] sm:$0xff]  ;;  %v2617_v6 = vadd.f32 %v2601_v61, %v2489_v32  ;;  %v8933_v32 = vld [vmem:[#allocation23_spill] sm:$0xff] }
 0x2ce   : > { %v2839_v62 = vpop.permute.xlu0 %2838  ;;  %v2475_v22 = vmul.f32 %v7382_v28, %v8929_v13  ;;  %v2603_v28 = vmul.f32 %v7402_v11, %v7812_v12  ;;  %v2492_v11 = vadd.f32 %v2476_v16, %v2363_v63  ;;  %v2746_v12 = vadd.f32 %v2730_v54, %v2618_v38 }
 0x2cf   : > { %v2745_v37 = vadd.f32 %v2729_v56, %v2617_v6  ;;  %v2861_v55 = vmul.f32 %v7458_v59, %v2844_v50  ;;  %v2860_v29 = vmul.f32 %v7458_v59, %v2839_v62 }
 0x2d0   : > { %v2491_v45 = vadd.f32 %v2475_v22, %v2362_v46  ;;  %v2620_v2 = vadd.f32 %v2604_v58, %v2492_v11  ;;  %v2875_v9 = vadd.f32 %v2859_v1, %v2746_v12 }
 0x2d1   : > { %v2962_v35 = vpop.permute.xlu1 %2961  ;;  %v2874_v15 = vadd.f32 %v2858_v43, %v2745_v37 }
 0x2d2   : > { %v2957_v0 = vpop.permute.xlu0 %2956  ;;  %v3200_v53 = vld [vmem:[#allocation2 + $0x20] ss:$2 sm:$0xff]  ;;  %v3204_v8 = vld [vmem:[#allocation2 + $0x21] ss:$2 sm:$0xff]  ;;  %v2987_v5 = vmul.f32 %v7468_v47, %v2962_v35  ;;  %v2619_v48 = vadd.f32 %v2603_v28, %v2491_v45  ;;  %v2748_v42 = vadd.f32 %v2732_v30, %v2620_v2 }
 0x2d3   : > { %v3208_v39 = vmax.f32 %v3200_v53, %v3204_v8  ;;  %v2986_v3 = vmul.f32 %v7468_v47, %v2957_v0  ;;  %v8932_v8 = vld [vmem:[#allocation24_spill] sm:$0xff] }
 0x2d4   : > { %v7924_v20 = vld [vmem:[#allocation3 + $0x60] sm:$0xff]  ;;  %v3003_v40 = vadd.f32 %v2987_v5, %v2875_v9  ;;  %v2747_v17 = vadd.f32 %v2731_v27, %v2619_v48  ;;  %v2877_v62 = vadd.f32 %v2861_v55, %v2748_v42 }
 0x2d5   : > { %v7926_v18 = vld [vmem:[#allocation3 + $0x62] sm:$0xff]  ;;  %3467 = vrot.lane.b32.xlu0 %v7924_v20, %s8867_s23  ;;  %v2972_v21 = vpop.permute.xlu1 %2971  ;;  %3213 = vst.msk [vmem:[#allocation3 + $0x71] sm:$0xff] %vm642_vm0, %v3208_v39  ;;  %3229 = vst.msk [vmem:[#allocation6 + $0x90] sm:$0xff] %vm642_vm0, %v7924_v20  ;;  %v3002_v50 = vadd.f32 %v2986_v3, %v2874_v15 }
 0x2d6   : > { %v7928_v23 = vld [vmem:[#allocation3 + $0x61] sm:$0xff]  ;;  %3420 = vrot.lane.b32.xlu1 %v7926_v18, %s8865_s27  ;;  %3551 = vst.msk [vmem:[#allocation6 + $0x70] sm:$0xff] %vm642_vm0, %v7926_v18  ;;  %v2967_v33 = vpop.permute.xlu0 %2966  ;;  %v2989_v36 = vmul.f32 %v7468_v47, %v2972_v21  ;;  %v2876_v44 = vadd.f32 %v2860_v29, %v2747_v17 }
 0x2d7   : > { %3391 = vst.msk [vmem:[#allocation6 + $0x80] sm:$0xff] %vm642_vm0, %v7928_v23  ;;  %v2988_v19 = vmul.f32 %v7468_v47, %v2967_v33 }
 0x2d8   : > { %v3005_v47 = vadd.f32 %v2989_v36, %v2877_v62 }
 0x2d9   : > { %3304 = vrot.lane.b32.xlu0 %v8930_v25, %s8867_s23  ;;  %v3090_v10 = vpop.permute.xlu1 %3089  ;;  %v3004_v7 = vadd.f32 %v2988_v19, %v2876_v44  ;;  %v3578_v44 = vld [vmem:[#allocation6 + $0xb8] sm:$0xff] }
 0x2da   : > { %3257 = vrot.lane.b32.xlu1 %v8931_v41, %s8865_s27  ;;  %v3115_v57 = vmul.f32 %v7484_v14, %v3090_v10  ;;  %v3085_v34 = vpop.permute.xlu0 %3084 }
 0x2db   : > { %v3114_v59 = vmul.f32 %v7484_v14, %v3085_v34 }
 0x2dc   : > { %v3131_v26 = vadd.f32 %v3115_v57, %v3003_v40  ;;  %v7960_v31 = vld [vmem:[#allocation3 + $0x70] sm:$0xff] }
 0x2dd   : > { %v7962_v49 = vld [vmem:[#allocation3 + $0x71] sm:$0xff]  ;;  %v3130_v52 = vadd.f32 %v3114_v59, %v3002_v50  ;;  %3515 = vrot.lane.b32.xlu0 %v7928_v23, %s5778_s1  ;;  %v3100_v61 = vpop.permute.xlu1 %3099  ;;  %3230 = vst.msk [vmem:[#allocation6 + $0xa8] sm:$0xff] %vm642_vm0, %v7960_v31 }
 0x2de   : > { %v7964_v51 = vld [vmem:[#allocation3 + $0x72] sm:$0xff]  ;;  %3469 = vrot.lane.b32.xlu1 %v7960_v31, %s8867_s23  ;;  %3392 = vst.msk [vmem:[#allocation6 + $0x98] sm:$0xff] %vm642_vm0, %v7962_v49  ;;  %v3147_v35 = vmul.f32 %v7841_v4, %v3131_v26  ;;  %v3117_v63 = vmul.f32 %v7484_v14, %v3100_v61  ;;  %v3095_v60 = vpop.permute.xlu0 %3094 }
 0x2df   : > { %3552 = vst.msk [vmem:[#allocation6 + $0x88] sm:$0xff] %vm642_vm0, %v7964_v51  ;;  %v3146_v16 = vmul.f32 %v7841_v4, %v3130_v52  ;;  %v3116_v54 = vmul.f32 %v7484_v14, %v3095_v60  ;;  %v3569_v58 = vld [vmem:[#allocation6 + $0x70] sm:$0xff] }
 0x2e0   : > { %v3133_v0 = vadd.f32 %v3117_v63, %v3005_v47  ;;  %v3163_v22 = vadd.f32 %v7856_v24, %v3147_v35  ;;  %v3450_v26 = vld [vmem:[#allocation3 + $0x90] sm:$0xff] }
 0x2e1   : > { %v3132_v53 = vadd.f32 %v3116_v54, %v3004_v7  ;;  %3353 = vrot.lane.b32.xlu0 %v8932_v8, %s5778_s1  ;;  %v3413_v13 = vpop.permute.xlu1 %3412  ;;  %v3162_v46 = vadd.f32 %v7856_v24, %v3146_v16  ;;  %v3498_v63 = vld [vmem:[#allocation3 + $0x91] sm:$0xff] }
 0x2e2   : > { %3306 = vrot.lane.b32.xlu1 %v8933_v32, %s8867_s23  ;;  %v3149_v56 = vmul.f32 %v7841_v4, %v3133_v0  ;;  %3435 = vst.msk [vmem:[#allocation6 + $0x20] sm:$0xff] %vm3271_vm2, %v3413_v13  ;;  %v3411_v39 = vpop.permute.xlu0 %3410  ;;  %v3179_v21 = vmax.f32 %v3163_v22, 0.0 }
 0x2e3   : > { %v3148_v14 = vmul.f32 %v7841_v4, %v3132_v53  ;;  %3434 = vst.msk [vmem:[#allocation6 + $0x8] sm:$0xff] %vm3271_vm2, %v3411_v39  ;;  %v3178_v12 = vmax.f32 %v3162_v46, 0.0  ;;  %v8934_v46 = vmov 0.0  }
 0x2e4   : > { %v3165_v38 = vadd.f32 %v7856_v24, %v3149_v56  ;;  %665 = vst.msk [vmem:[#allocation5] sm:$0xff] %vm664_vm5, %v8934_v46  ;;  %668 = vst.msk [vmem:[#allocation5 + $0x10] sm:$0xff] %vm664_vm5, %v8934_v46 }
 0x2e5   : > { %v3164_v6 = vadd.f32 %v7856_v24, %v3148_v14  ;;  %3422 = vrot.lane.b32.xlu0 %v7964_v51, %s8865_s27  ;;  %v3250_v28 = vpop.permute.xlu1 %3249  ;;  %670 = vst.msk [vmem:[#allocation5 + $0x20] sm:$0xff] %vm664_vm5, %v8934_v46  ;;  %672 = vst.msk [vmem:[#allocation5 + $0x30] sm:$0xff] %vm664_vm5, %v8934_v46 }
 0x2e6   : > { %v3572_v1 = vld [vmem:[#allocation6 + $0x88] sm:$0xff]  ;;  %3517 = vrot.lane.b32.xlu1 %v7962_v49, %s5778_s1  ;;  %v3181_v11 = vmax.f32 %v3165_v38, 0.0  ;;  %3273 = vst.msk [vmem:[#allocation6 + $0x18] sm:$0xff] %vm3271_vm2, %v3250_v28  ;;  %v3248_v4 = vpop.permute.xlu0 %3247 }
 0x2e7   : > { %v3587_v43 = vpack.c.bf16 %v3572_v1, %v3569_v58  ;;  %v3180_v30 = vmax.f32 %v3164_v6, 0.0  ;;  %3272 = vst.msk [vmem:[#allocation6] sm:$0xff] %vm3271_vm2, %v3248_v4 }
 0x2e8   : > { %v3189_v24 = vmax.f32 %v3179_v21, %v3181_v11  ;;  %674 = vst.msk [vmem:[#allocation5 + $0x40] sm:$0xff] %vm664_vm5, %v8934_v46  ;;  %676 = vst.msk [vmem:[#allocation5 + $0x50] sm:$0xff] %vm664_vm5, %v8934_v46 }
 0x2e9   : > { %5502 = vmatprep.mubr.msk.bf16.mxu1 %vm642_vm0, %v3587_v43  ;;  %v3188_v5 = vmax.f32 %v3178_v12, %v3180_v30  ;;  %3259 = vrot.lane.b32.xlu0 %v7928_v23, %s8865_s27  ;;  %v3462_v33 = vpop.permute.xlu1 %3461  ;;  %667 = vst.msk [vmem:[#allocation5 + $0x8] sm:$0x3] %vm666_vm6, %v8934_v46  ;;  %669 = vst.msk [vmem:[#allocation5 + $0x18] sm:$0x3] %vm666_vm6, %v8934_v46 }
 0x2ea   : > { %3355 = vrot.lane.b32.xlu1 %v7924_v20, %s5778_s1  ;;  %3197 = vst.msk [vmem:[#allocation2 + $0x38] sm:$0xff] %vm642_vm0, %v3189_v24  ;;  %v3460_v45 = vpop.permute.xlu0 %3459 }
 0x2eb   : > { %3484 = vst.msk [vmem:[#allocation6 + $0x20] sm:$0xff] %vm3320_vm3, %v3462_v33  ;;  %3483 = vst.msk [vmem:[#allocation6 + $0x8] sm:$0xff] %vm3320_vm3, %v3460_v45 }
 0x2ec   : > { %3196 = vst.msk [vmem:[#allocation2 + $0x30] sm:$0xff] %vm642_vm0, %v3188_v5 }
 0x2ed   : > { %v3299_v37 = vpop.permute.xlu1 %3298  ;;  %671 = vst.msk [vmem:[#allocation5 + $0x28] sm:$0x3] %vm666_vm6, %v8934_v46  ;;  %673 = vst.msk [vmem:[#allocation5 + $0x38] sm:$0x3] %vm666_vm6, %v8934_v46 }
 0x2ee   : > { %3322 = vst.msk [vmem:[#allocation6 + $0x18] sm:$0xff] %vm3320_vm3, %v3299_v37  ;;  %v3297_v27 = vpop.permute.xlu0 %3296 }
 0x2ef   : > { %3321 = vst.msk [vmem:[#allocation6] sm:$0xff] %vm3320_vm3, %v3297_v27 }
 0x2f0   : > { %675 = vst.msk [vmem:[#allocation5 + $0x48] sm:$0x3] %vm666_vm6, %v8934_v46  ;;  %677 = vst.msk [vmem:[#allocation5 + $0x58] sm:$0x3] %vm666_vm6, %v8934_v46 }
 0x2f1   : > { %v3510_v20 = vpop.permute.xlu1 %3509 }
 0x2f2   : > { %3532 = vst.msk [vmem:[#allocation6 + $0x20] sm:$0xff] %vm3369_vm4, %v3510_v20  ;;  %v3508_v23 = vpop.permute.xlu0 %3507 }
 0x2f3   : > { %v3201_v3 = vld [vmem:[#allocation2 + $0x30] ss:$2 sm:$0xff]  ;;  %v3205_v2 = vld [vmem:[#allocation2 + $0x31] ss:$2 sm:$0xff]  ;;  %3531 = vst.msk [vmem:[#allocation6 + $0x8] sm:$0xff] %vm3369_vm4, %v3508_v23 }
 0x2f4   : > { %v3209_v9 = vmax.f32 %v3201_v3, %v3205_v2 }
 0x2f5   : > { %v3348_v55 = vpop.permute.xlu1 %3347 }
 0x2f6   : > { %3214 = vst.msk [vmem:[#allocation3 + $0x81] sm:$0xff] %vm642_vm0, %v3209_v9  ;;  %v3346_v48 = vpop.permute.xlu0 %3345 }
 0x2f7   : > { %3371 = vst.msk [vmem:[#allocation6 + $0x18] sm:$0xff] %vm3369_vm4, %v3348_v55  ;;  %3370 = vst.msk [vmem:[#allocation6] sm:$0xff] %vm3369_vm4, %v3346_v48 }
 0x2f9   : > { %v3417_v15 = vpop.permute.xlu1 %3416  ;;  %v3559_v29 = vld [vmem:[#allocation6 + $0x20] sm:$0xff] }
 0x2fa   : > { %3437 = vst.msk [vmem:[#allocation6 + $0x50] sm:$0xff] %vm3271_vm2, %v3417_v15  ;;  %v3415_v25 = vpop.permute.xlu0 %3414  ;;  %v3556_v41 = vld [vmem:[#allocation6 + $0x8] sm:$0xff] }
 0x2fb   : > { %3436 = vst.msk [vmem:[#allocation6 + $0x38] sm:$0xff] %vm3271_vm2, %v3415_v25  ;;  %v3580_v10 = vpack.c.bf16 %v3559_v29, %v3556_v41 }
 0x2fd   : > { %v3449_v42 = vld [vmem:[#allocation3 + $0x80] sm:$0xff]  ;;  %v3254_v57 = vpop.permute.xlu1 %3253  ;;  %3779 = vmatprep.mubr.bf16.mxu0 %v3580_v10 }
 0x2fe   : > { %v3401_v40 = vld [vmem:[#allocation3 + $0x82] sm:$0xff]  ;;  %3471 = vrot.lane.b32.xlu0 %v3449_v42, %s8867_s23  ;;  %v3558_v34 = vld [vmem:[#allocation6 + $0x18] sm:$0xff]  ;;  %3275 = vst.msk [vmem:[#allocation6 + $0x48] sm:$0xff] %vm3271_vm2, %v3254_v57  ;;  %v3252_v17 = vpop.permute.xlu0 %3251 }
 0x2ff   : > { %v3497_v36 = vld [vmem:[#allocation3 + $0x81] sm:$0xff]  ;;  %3424 = vrot.lane.b32.xlu1 %v3401_v40, %s8865_s27  ;;  %3553 = vst.msk [vmem:[#allocation6 + $0xa0] sm:$0xff] %vm642_vm0, %v3401_v40 }
 0x300   : > { %3393 = vst.msk [vmem:[#allocation6 + $0xb0] sm:$0xff] %vm642_vm0, %v3497_v36  ;;  %v3555_v50 = vld [vmem:[#allocation6] sm:$0xff] }
 0x301   : > { %3274 = vst.msk [vmem:[#allocation6 + $0x30] sm:$0xff] %vm3271_vm2, %v3252_v17  ;;  %v3579_v19 = vpack.c.bf16 %v3558_v34, %v3555_v50  ;;  %v3466_v59 = vpop.permute.xlu1 %3465  ;;  %v8088_v50 = vld [vmem:[%s8935_s6] ss:$0 sm:$0xff]  ;;  %s4940_s6 = scalar_lea.sflag [#allocation9], %s631_s29 }
 0x302   : > { %3308 = vrot.lane.b32.xlu0 %v7926_v18, %s8867_s23  ;;  %3486 = vst.msk [vmem:[#allocation6 + $0x50] sm:$0xff] %vm3320_vm3, %v3466_v59  ;;  %v3464_v62 = vpop.permute.xlu0 %3463 }
 0x303   : > { %3261 = vrot.lane.b32.xlu1 %v7962_v49, %s8865_s27  ;;  %3780 = vmatmul.mubr.bf16.vlgmr.msra.gmra.mxu0 %v3579_v19  ;;  %3485 = vst.msk [vmem:[#allocation6 + $0x38] sm:$0xff] %vm3320_vm3, %v3464_v62 }
 0x305   : > { %v3303_v61 = vpop.permute.xlu1 %3302 }
 0x306   : > { %v3575_v52 = vld [vmem:[#allocation6 + $0xa0] sm:$0xff]  ;;  %3519 = vrot.lane.b32.xlu0 %v3497_v36, %s5778_s1  ;;  %3324 = vst.msk [vmem:[#allocation6 + $0x48] sm:$0xff] %vm3320_vm3, %v3303_v61  ;;  %v3301_v18 = vpop.permute.xlu0 %3300 }
 0x307   : > { %3473 = vrot.lane.b32.xlu1 %v3450_v26, %s8867_s23  ;;  %v3590_v47 = vpack.c.bf16 %v3578_v44, %v3575_v52  ;;  %3323 = vst.msk [vmem:[#allocation6 + $0x30] sm:$0xff] %vm3320_vm3, %v3301_v18  ;;  %v8094_v61 = vld [vmem:[%s8936_s7] ss:$0 sm:$0xff] }
 0x309   : > { %5503 = vmatmul.mubr.msk.bf16.gmra.mxu1 %vm642_vm0, %v3590_v47  ;;  %v3514_v49 = vpop.permute.xlu1 %3513 }
 0x30a   : > { %3357 = vrot.lane.b32.xlu0 %v7960_v31, %s5778_s1  ;;  %3534 = vst.msk [vmem:[#allocation6 + $0x50] sm:$0xff] %vm3369_vm4, %v3514_v49  ;;  %v3512_v35 = vpop.permute.xlu0 %3511 }
 0x30b   : > { %3310 = vrot.lane.b32.xlu1 %v7964_v51, %s8867_s23  ;;  %3533 = vst.msk [vmem:[#allocation6 + $0x38] sm:$0xff] %vm3369_vm4, %v3512_v35 }
 0x30d   : > { %v3352_v60 = vpop.permute.xlu1 %3351 }
 0x30e   : > { %3373 = vst.msk [vmem:[#allocation6 + $0x48] sm:$0xff] %vm3369_vm4, %v3352_v60  ;;  %v3350_v7 = vpop.permute.xlu0 %3349 }
 0x30f   : > { %3521 = vrot.lane.b32.xlu1 %v3498_v63, %s5778_s1  ;;  %3372 = vst.msk [vmem:[#allocation6 + $0x30] sm:$0xff] %vm3369_vm4, %v3350_v7 }
 0x311   : > { %v3565_v31 = vld [vmem:[#allocation6 + $0x50] sm:$0xff] }
 0x312   : > { %v3419_v16 = vpop.permute.xlu0 %3418  ;;  %v3562_v51 = vld [vmem:[#allocation6 + $0x38] sm:$0xff] }
 0x313   : > { %3359 = vrot.lane.b32.xlu1 %v3449_v42, %s5778_s1  ;;  %3438 = vst.msk [vmem:[#allocation6 + $0x68] sm:$0xff] %vm3271_vm2, %v3419_v16  ;;  %v3583_v54 = vpack.c.bf16 %v3565_v31, %v3562_v51  ;;  %s8937_s1 = sld [smem:[#allocation112_spill]] }
 0x315   : > { %3787 = vmatprep.mubr.bf16.mxu0 %v3583_v54  ;;  %v3564_v0 = vld [vmem:[#allocation6 + $0x48] sm:$0xff] }
 0x316   : > { %v3256_v53 = vpop.permute.xlu0 %3255  ;;  %v3561_v8 = vld [vmem:[#allocation6 + $0x30] sm:$0xff] }
 0x317   : > { %3276 = vst.msk [vmem:[#allocation6 + $0x60] sm:$0xff] %vm3271_vm2, %v3256_v53  ;;  %v3582_v32 = vpack.c.bf16 %v3564_v0, %v3561_v8 }
 0x319   : > { %3788 = vmatmul.mubr.bf16.gmra.mxu0 %v3582_v32  ;;  %s640_s27 = scalar_lea.vmem %s8937_s1, %s5936_s30  ;;  %s5716_s30 = sshll.u32 %s5780_s2, 4  ;;  %s5717_s30 = int_to_ptr.vmem [resolvable:$false] %s5716_s30 }
 0x31a   : > { %p5719_p0 = scmp.lt.s32.totalorder %s8422_s21, %s5717_s30 }
 0x33f   : > { %v5500_v42 = vpop.f32.mrf.mxu1 }
 0x341   : > { %v3846_v40 = vpop.f32.mrf.mxu1 }
 0x343   : > { %v5501_v17 = vpop.f32.mrf.mxu1 }
 0x345   : > { %v3849_v52 = vpop.f32.mrf.mxu1 }
 0x347   : > { %v3468_v22 = vpop.permute.xlu0 %3467 }
 0x348   : > { %v3421_v13 = vpop.permute.xlu1 %3420  ;;  %3487 = vst.msk [vmem:[#allocation6 + $0x68] sm:$0xff] %vm3320_vm3, %v3468_v22  ;;  %v5643_v22 = vld [vmem:[%s8469_s8 + $0x38] sm:$0xff]  }
 0x349   : > { %3439 = vst.msk [vmem:[#allocation6 + $0x80] sm:$0xff] %vm3271_vm2, %v3421_v13  ;;  %v5642_v13 = vld [vmem:[%s8469_s8 + $0x78] sm:$0xff]  }
 0x34a   : > { %5407 = vmatprep.subr.bf16.mxu1 %v5642_v13 }
 0x34b   : > { %v3305_v39 = vpop.permute.xlu0 %3304  ;;  %5408 = vmatpush3.bf16.msra.mxu1 %v5643_v22 }
 0x34c   : > { %v3258_v56 = vpop.permute.xlu1 %3257  ;;  %3325 = vst.msk [vmem:[#allocation6 + $0x60] sm:$0xff] %vm3320_vm3, %v3305_v39 }
 0x34d   : > { %3277 = vst.msk [vmem:[#allocation6 + $0x78] sm:$0xff] %vm3271_vm2, %v3258_v56  ;;  %v5644_v56 = vld [vmem:[%s8469_s8 + $0x70] sm:$0xff]  }
 0x34e   : > { %5409 = vmatprep.subr.bf16.mxu1 %v5644_v56 }
 0x34f   : > { %v3516_v38 = vpop.permute.xlu0 %3515 }
 0x350   : > { %v3470_v14 = vpop.permute.xlu1 %3469  ;;  %3535 = vst.msk [vmem:[#allocation6 + $0x68] sm:$0xff] %vm3369_vm4, %v3516_v38  ;;  %v3977_v38 = vld [vmem:[#allocation5 + $0x2] sm:$0xff] }
 0x351   : > { %3488 = vst.msk [vmem:[#allocation6 + $0x80] sm:$0xff] %vm3320_vm3, %v3470_v14  ;;  %v5645_v14 = vld [vmem:[%s8469_s8 + $0x30] sm:$0xff]  }
 0x352   : > { %3981 = vst.msk [vmem:[#allocation7 + $0x8] sm:$0xff] %vm664_vm5, %v3977_v38  ;;  %5410 = vmatpush3.bf16.msra.mxu1 %v5645_v14 }
 0x353   : > { %v3354_v1 = vpop.permute.xlu0 %3353 }
 0x354   : > { %v3307_v58 = vpop.permute.xlu1 %3306  ;;  %3374 = vst.msk [vmem:[#allocation6 + $0x60] sm:$0xff] %vm3369_vm4, %v3354_v1 }
 0x355   : > { %3326 = vst.msk [vmem:[#allocation6 + $0x78] sm:$0xff] %vm3320_vm3, %v3307_v58 }
 0x357   : > { %v3423_v28 = vpop.permute.xlu0 %3422  ;;  %v3568_v11 = vld [vmem:[#allocation6 + $0x68] sm:$0xff] }
 0x358   : > { %v3518_v6 = vpop.permute.xlu1 %3517  ;;  %3440 = vst.msk [vmem:[#allocation6 + $0x98] sm:$0xff] %vm3271_vm2, %v3423_v28 }
 0x359   : > { %3536 = vst.msk [vmem:[#allocation6 + $0x80] sm:$0xff] %vm3369_vm4, %v3518_v6  ;;  %v5646_v6 = vld [vmem:[%s8469_s8 + $0x68] sm:$0xff]  }
 0x35a   : > { %5411 = vmatprep.subr.bf16.mxu1 %v5646_v6 }
 0x35b   : > { %v3260_v21 = vpop.permute.xlu0 %3259  ;;  %v3567_v30 = vld [vmem:[#allocation6 + $0x60] sm:$0xff] }
 0x35c   : > { %v3356_v43 = vpop.permute.xlu1 %3355  ;;  %3278 = vst.msk [vmem:[#allocation6 + $0x90] sm:$0xff] %vm3271_vm2, %v3260_v21 }
 0x35d   : > { %3375 = vst.msk [vmem:[#allocation6 + $0x78] sm:$0xff] %vm3369_vm4, %v3356_v43  ;;  %v5647_v43 = vld [vmem:[%s8469_s8 + $0x28] sm:$0xff]  }
 0x35e   : > { %5412 = vmatpush3.bf16.msra.mxu1 %v5647_v43 }
 0x360   : > { %v3571_v4 = vld [vmem:[#allocation6 + $0x80] sm:$0xff] }
 0x361   : > { %v3586_v12 = vpack.c.bf16 %v3571_v4, %v3568_v11  ;;  %v5648_v4 = vld [vmem:[%s8469_s8 + $0x60] sm:$0xff]  }
 0x362   : > { %5413 = vmatprep.subr.bf16.mxu1 %v5648_v4 }
 0x363   : > { %3795 = vmatprep.mubr.bf16.mxu0 %v3586_v12 }
 0x364   : > { %v3570_v24 = vld [vmem:[#allocation6 + $0x78] sm:$0xff] }
 0x365   : > { %v3585_v5 = vpack.c.bf16 %v3570_v24, %v3567_v30  ;;  %v5649_v30 = vld [vmem:[%s8469_s8 + $0x20] sm:$0xff]   ;;  %v5650_v24 = vld [vmem:[%s8469_s8 + $0x58] sm:$0xff]  }
 0x366   : > { %5414 = vmatpush3.bf16.msra.mxu1 %v5649_v30  ;;  %v5663_v30 = vld [vmem:[%s8469_s8 + $0xa8] sm:$0xff]  }
 0x367   : > { %3796 = vmatmul.mubr.bf16.gmra.mxu0 %v3585_v5  ;;  %v5651_v5 = vld [vmem:[%s8469_s8 + $0x18] sm:$0xff]   ;;  %5415 = vmatprep.subr.bf16.mxu1 %v5650_v24 }
 0x36a   : > { %5416 = vmatpush3.bf16.msra.mxu1 %v5651_v5 }
 0x370   : > { %v3472_v45 = vpop.permute.xlu0 %3471 }
 0x371   : > { %v3425_v33 = vpop.permute.xlu1 %3424  ;;  %3489 = vst.msk [vmem:[#allocation6 + $0x98] sm:$0xff] %vm3320_vm3, %v3472_v45 }
 0x372   : > { %3441 = vst.msk [vmem:[#allocation6 + $0xb0] sm:$0xff] %vm3271_vm2, %v3425_v33 }
 0x374   : > { %v3309_v27 = vpop.permute.xlu0 %3308 }
 0x375   : > { %v3262_v37 = vpop.permute.xlu1 %3261  ;;  %3327 = vst.msk [vmem:[#allocation6 + $0x90] sm:$0xff] %vm3320_vm3, %v3309_v27 }
 0x376   : > { %3279 = vst.msk [vmem:[#allocation6 + $0xa8] sm:$0xff] %vm3271_vm2, %v3262_v37  ;;  %v5652_v37 = vld [vmem:[%s8469_s8 + $0x50] sm:$0xff]  }
 0x377   : > { %5417 = vmatprep.subr.bf16.mxu1 %v5652_v37  ;;  %v5666_v37 = vld [vmem:[%s8469_s8 + $0xd8] sm:$0xff]  }
 0x378   : > { %v3520_v23 = vpop.permute.xlu0 %3519 }
 0x379   : > { %v3474_v20 = vpop.permute.xlu1 %3473  ;;  %3537 = vst.msk [vmem:[#allocation6 + $0x98] sm:$0xff] %vm3369_vm4, %v3520_v23  ;;  %v4077_v23 = vld [vmem:[#allocation5 + $0x52] sm:$0xff] }
 0x37a   : > { %3490 = vst.msk [vmem:[#allocation6 + $0xb0] sm:$0xff] %vm3320_vm3, %v3474_v20  ;;  %v5653_v20 = vld [vmem:[%s8469_s8 + $0x10] sm:$0xff]  }
 0x37b   : > { %4081 = vst.msk [vmem:[#allocation7 + $0x98] sm:$0xff] %vm664_vm5, %v4077_v23  ;;  %5418 = vmatpush3.bf16.msra.mxu1 %v5653_v20  ;;  %v5668_v23 = vld [vmem:[%s8469_s8 + $0xd0] sm:$0xff]  }
 0x37c   : > { %v3358_v2 = vpop.permute.xlu0 %3357 }
 0x37d   : > { %v3311_v3 = vpop.permute.xlu1 %3310  ;;  %3376 = vst.msk [vmem:[#allocation6 + $0x90] sm:$0xff] %vm3369_vm4, %v3358_v2  ;;  %v3944_v2 = vld [vmem:[#allocation5] sm:$0xff] }
 0x37e   : > { %3328 = vst.msk [vmem:[#allocation6 + $0xa8] sm:$0xff] %vm3320_vm3, %v3311_v3 }
 0x37f   : > { %3948 = vst.msk [vmem:[#allocation7] sm:$0xff] %vm664_vm5, %v3944_v2 }
 0x380   : > { %v3574_v48 = vld [vmem:[#allocation6 + $0x98] sm:$0xff] }
 0x381   : > { %v3522_v9 = vpop.permute.xlu1 %3521 }
 0x382   : > { %3538 = vst.msk [vmem:[#allocation6 + $0xb0] sm:$0xff] %vm3369_vm4, %v3522_v9  ;;  %v5654_v9 = vld [vmem:[%s8469_s8 + $0x48] sm:$0xff]  }
 0x383   : > { %5419 = vmatprep.subr.bf16.mxu1 %v5654_v9 }
 0x384   : > { %v3573_v25 = vld [vmem:[#allocation6 + $0x90] sm:$0xff] }
 0x385   : > { %v3360_v55 = vpop.permute.xlu1 %3359 }
 0x386   : > { %3377 = vst.msk [vmem:[#allocation6 + $0xa8] sm:$0xff] %vm3369_vm4, %v3360_v55  ;;  %v5655_v55 = vld [vmem:[%s8469_s8 + $0x8] sm:$0xff]  }
 0x387   : > { %5420 = vmatpush3.bf16.msra.mxu1 %v5655_v55 }
 0x389   : > { %v3577_v15 = vld [vmem:[#allocation6 + $0xb0] sm:$0xff] }
 0x38a   : > { %v3589_v29 = vpack.c.bf16 %v3577_v15, %v3574_v48  ;;  %v5656_v48 = vld [vmem:[%s8469_s8 + $0x40] sm:$0xff]  }
 0x38b   : > { %5421 = vmatprep.subr.bf16.mxu1 %v5656_v48 }
 0x38c   : > { %3803 = vmatprep.mubr.bf16.mxu0 %v3589_v29 }
 0x38d   : > { %v3576_v41 = vld [vmem:[#allocation6 + $0xa8] sm:$0xff] }
 0x38e   : > { %v3588_v10 = vpack.c.bf16 %v3576_v41, %v3573_v25  ;;  %v3952_v41 = vld [vmem:[#allocation5 + $0x1] sm:$0xff] }
 0x390   : > { %3804 = vmatmul.mubr.bf16.gmra.mxu0 %v3588_v10  ;;  %v5657_v10 = vld [vmem:[%s8469_s8] sm:$0xff]  }
 0x391   : > { %5422 = vmatpush3.bf16.msra.mxu1 %v5657_v10 }
 0x3c3   : > { %v5377_v36 = vpop.f32.mrf.mxu0 }
 0x3c5   : > { %v5378_v57 = vpop.f32.mrf.mxu0 }
 0x3c6   : > { %v5379_v34 = vadd.f32 %v5378_v57, %v5377_v36  ;;  %v5658_v57 = vld [vmem:[%s8469_s8 + $0xf8] sm:$0xff]  }
 0x3c7   : > { %v5380_v19 = vpop.f32.mrf.mxu0  ;;  %5435 = vmatprep.subr.bf16.mxu0 %v5658_v57  ;;  %v5671_v57 = vld [vmem:[%s8469_s8 + $0xc8] sm:$0xff]  }
 0x3c8   : > { %v3847_v59 = vadd.f32 %v5379_v34, %v3846_v40  ;;  %v5659_v34 = vld [vmem:[%s8469_s8 + $0xb8] sm:$0xff]  }
 0x3c9   : > { %v5381_v62 = vpop.f32.mrf.mxu0  ;;  %5436 = vmatpush3.bf16.msra.mxu0 %v5659_v34 }
 0x3ca   : > { %v3884_v26 = vmul.f32 %v8088_v50, %v3847_v59  ;;  %v5382_v44 = vadd.f32 %v5381_v62, %v5380_v19  ;;  %v5661_v19 = vld [vmem:[%s8469_s8 + $0xb0] sm:$0xff]   ;;  %v5662_v59 = vld [vmem:[%s8469_s8 + $0xe8] sm:$0xff]   ;;  %v5504_v62 = vpop.f32.mrf.mxu1 }
 0x3cc   : > { %v3850_v47 = vadd.f32 %v5382_v44, %v3849_v52  ;;  %v3899_v18 = vadd.f32 %v8094_v61, %v3884_v26  ;;  %v3862_v26 = vpop.f32.mrf.mxu1 }
 0x3ce   : > { %v3885_v49 = vmul.f32 %v8088_v50, %v3850_v47  ;;  %v3907_v63 = vmax.f32 %v3899_v18, 0.0  ;;  %v5505_v18 = vpop.f32.mrf.mxu1 }
 0x3d0   : > { %v3900_v35 = vadd.f32 %v8094_v61, %v3885_v49 }
 0x3d2   : > { %v3908_v60 = vmax.f32 %v3900_v35, 0.0 }
 0x3d4   : > { %v3915_v7 = vmax.f32 %v3907_v63, %v3908_v60 }
 0x3d6   : > { %3919 = vst.msk [vmem:[#allocation4] sm:$0xff] %vm664_vm5, %v3915_v7 }
 0x3d9   : > { %v5383_v31 = vpop.f32.mrf.mxu0 }
 0x3db   : > { %v5384_v16 = vpop.f32.mrf.mxu0 }
 0x3dc   : > { %v5385_v51 = vadd.f32 %v5384_v16, %v5383_v31  ;;  %v3865_v31 = vpop.f32.mrf.mxu1 }
 0x3dd   : > { %v5386_v54 = vpop.f32.mrf.mxu0 }
 0x3de   : > { %v3855_v0 = vadd.f32 %v5500_v42, %v5385_v51 }
 0x3df   : > { %v5387_v53 = vpop.f32.mrf.mxu0 }
 0x3e0   : > { %v3886_v8 = vmul.f32 %v8088_v50, %v3855_v0  ;;  %v5388_v32 = vadd.f32 %v5387_v53, %v5386_v54 }
 0x3e2   : > { %v3858_v39 = vadd.f32 %v5501_v17, %v5388_v32  ;;  %v3901_v58 = vadd.f32 %v8094_v61, %v3886_v8  ;;  %v5660_v17 = vld [vmem:[%s8469_s8 + $0xf0] sm:$0xff]  }
 0x3e3   : > { %5437 = vmatprep.subr.bf16.mxu0 %v5660_v17  ;;  %v5672_v17 = vld [vmem:[%s8469_s8 + $0x88] sm:$0xff]  }
 0x3e4   : > { %v3887_v1 = vmul.f32 %v8088_v50, %v3858_v39  ;;  %v3909_v21 = vmax.f32 %v3901_v58, 0.0  ;;  %5438 = vmatpush3.bf16.msra.mxu0 %v5661_v19  ;;  %v4045_v19 = vld [vmem:[#allocation5 + $0x50] sm:$0xff] }
 0x3e5   : > { %5439 = vmatprep.subr.bf16.mxu0 %v5662_v59  ;;  %4049 = vst.msk [vmem:[#allocation7 + $0x90] sm:$0xff] %vm664_vm5, %v4045_v19  ;;  %v5674_v59 = vld [vmem:[%s8469_s8 + $0xc0] sm:$0xff]   ;;  %v5688_v19 = vld [vmem:[%s8476_s15 + $0x28] sm:$0xff]  }
 0x3e6   : > { %v3902_v28 = vadd.f32 %v8094_v61, %v3887_v1 }
 0x3e8   : > { %v3910_v11 = vmax.f32 %v3902_v28, 0.0  ;;  %5440 = vmatpush3.bf16.msra.mxu0 %v5663_v30 }
 0x3ea   : > { %v3916_v12 = vmax.f32 %v3909_v21, %v3910_v11 }
 0x3ec   : > { %3920 = vst.msk [vmem:[#allocation4 + $0x8] sm:$0xff] %vm664_vm5, %v3916_v12 }
 0x3f3   : > { %v3923_v33 = vld [vmem:[#allocation4] ss:$2 sm:$0xff]  ;;  %v3927_v45 = vld [vmem:[#allocation4 + $0x1] ss:$2 sm:$0xff] }
 0x3f4   : > { %v3930_v27 = vmax.f32 %v3923_v33, %v3927_v45  ;;  %v5664_v33 = vld [vmem:[%s8469_s8 + $0xe0] sm:$0xff]  }
 0x3f5   : > { %5441 = vmatprep.subr.bf16.mxu0 %v5664_v33 }
 0x3f6   : > { %3940 = vst.msk [vmem:[#allocation5 + $0x11] sm:$0xf] %vm3939_vm7, %v3930_v27  ;;  %v3934_v3 = vcombine.high %v3930_v27, %v3930_v27  ;;  %v5667_v27 = vld [vmem:[%s8469_s8 + $0x98] sm:$0xff]  }
 0x3f8   : > { %3941 = vst.msk [vmem:[#allocation5 + $0x21] sm:$0xf] %vm3939_vm7, %v3934_v3  ;;  %v5670_v3 = vld [vmem:[%s8469_s8 + $0x118] sm:$0xff]  }
 0x3f9   : > { %5506 = vmatprep.subr.bf16.mxu1 %v5670_v3 }
 0x3fd   : > { %v3985_v15 = vld [vmem:[#allocation5 + $0x10] sm:$0xff] }
 0x3fe   : > { %v3953_v29 = vld [vmem:[#allocation5 + $0x11] sm:$0xff]  ;;  %3993 = vrot.lane.b32.xlu0 %v3985_v15, %s8867_s23  ;;  %3949 = vst.msk [vmem:[#allocation7 + $0x28] sm:$0xff] %vm664_vm5, %v3985_v15 }
 0x3ff   : > { %v8155_v25 = vld [vmem:[#allocation5 + $0x12] sm:$0xff]  ;;  %4013 = vst.msk [vmem:[#allocation7 + $0x10] sm:$0xff] %vm664_vm5, %v3953_v29  ;;  %v3986_v42 = vld [vmem:[#allocation5 + $0x20] sm:$0xff] }
 0x400   : > { %3982 = vst.msk [vmem:[#allocation7 + $0x30] sm:$0xff] %vm664_vm5, %v8155_v25  ;;  %v8165_v40 = vld [vmem:[#allocation5 + $0x21] sm:$0xff]  ;;  %3995 = vrot.lane.b32.xlu1 %v3986_v42, %s8867_s23  ;;  %4046 = vst.msk [vmem:[#allocation7 + $0x18] sm:$0xff] %vm664_vm5, %v3986_v42  ;;  %v5669_v15 = vld [vmem:[%s8469_s8 + $0x90] sm:$0xff]  }
 0x401   : > { %v8167_v36 = vld [vmem:[#allocation5 + $0x22] sm:$0xff]  ;;  %3950 = vst.msk [vmem:[#allocation7 + $0x50] sm:$0xff] %vm664_vm5, %v3986_v42  ;;  %4014 = vst.msk [vmem:[#allocation7 + $0x38] sm:$0xff] %vm664_vm5, %v8165_v40 }
 0x402   : > { %3983 = vst.msk [vmem:[#allocation7 + $0x58] sm:$0xff] %vm664_vm5, %v8167_v36  ;;  %4078 = vst.msk [vmem:[#allocation7 + $0x20] sm:$0xff] %vm664_vm5, %v8167_v36  ;;  %3960 = vrot.lane.b32.xlu0 %v3952_v41, %s8867_s23 }
 0x404   : > { %3962 = vrot.lane.b32.xlu1 %v3953_v29, %s8867_s23 }
 0x427   : > { %v5389_v44 = vpop.f32.mrf.mxu0 }
 0x429   : > { %v5390_v52 = vpop.f32.mrf.mxu0 }
 0x42a   : > { %v5391_v47 = vadd.f32 %v5390_v52, %v5389_v44  ;;  %v5675_v44 = vld [vmem:[%s8469_s8 + $0x80] sm:$0xff]  }
 0x42b   : > { %v5392_v49 = vpop.f32.mrf.mxu0 }
 0x42c   : > { %v3863_v35 = vadd.f32 %v5391_v47, %v3862_v26 }
 0x42d   : > { %v5393_v63 = vpop.f32.mrf.mxu0 }
 0x42e   : > { %v3888_v60 = vmul.f32 %v8088_v50, %v3863_v35  ;;  %v5394_v7 = vadd.f32 %v5393_v63, %v5392_v49  ;;  %v5673_v35 = vld [vmem:[%s8469_s8 + $0x110] sm:$0xff]  }
 0x430   : > { %v3866_v16 = vadd.f32 %v5394_v7, %v3865_v31  ;;  %v3903_v51 = vadd.f32 %v8094_v61, %v3888_v60 }
 0x432   : > { %v3889_v54 = vmul.f32 %v8088_v50, %v3866_v16  ;;  %v3911_v53 = vmax.f32 %v3903_v51, 0.0 }
 0x434   : > { %v3904_v0 = vadd.f32 %v8094_v61, %v3889_v54 }
 0x436   : > { %v3912_v8 = vmax.f32 %v3904_v0, 0.0 }
 0x438   : > { %v3917_v32 = vmax.f32 %v3911_v53, %v3912_v8 }
 0x43a   : > { %3921 = vst.msk [vmem:[#allocation4 + $0x10] sm:$0xff] %vm664_vm5, %v3917_v32 }
 0x450   : > { %v5395_v13 = vpop.f32.mrf.mxu0 }
 0x452   : > { %v5396_v22 = vpop.f32.mrf.mxu0 }
 0x453   : > { %v5397_v56 = vadd.f32 %v5396_v22, %v5395_v13 }
 0x454   : > { %v5398_v39 = vpop.f32.mrf.mxu0 }
 0x455   : > { %v3871_v14 = vadd.f32 %v5504_v62, %v5397_v56 }
 0x456   : > { %v5399_v38 = vpop.f32.mrf.mxu0 }
 0x457   : > { %v3890_v58 = vmul.f32 %v8088_v50, %v3871_v14  ;;  %v5400_v1 = vadd.f32 %v5399_v38, %v5398_v39 }
 0x459   : > { %v3874_v6 = vadd.f32 %v5505_v18, %v5400_v1  ;;  %v3905_v28 = vadd.f32 %v8094_v61, %v3890_v58 }
 0x45b   : > { %v3891_v43 = vmul.f32 %v8088_v50, %v3874_v6  ;;  %v3913_v11 = vmax.f32 %v3905_v28, 0.0  ;;  %v5665_v50 = vld [vmem:[%s8469_s8 + $0xa0] sm:$0xff]  }
 0x45c   : > { %5442 = vmatpush3.bf16.msra.mxu0 %v5665_v50  ;;  %v4086_v28 = vld [vmem:[#allocation7 + $0x20] sm:$0xff] }
 0x45d   : > { %v3906_v21 = vadd.f32 %v8094_v61, %v3891_v43  ;;  %5443 = vmatprep.subr.bf16.mxu0 %v5666_v37 }
 0x45f   : > { %v3914_v4 = vmax.f32 %v3906_v21, 0.0 }
 0x460   : > { %5444 = vmatpush3.bf16.msra.mxu0 %v5667_v27 }
 0x461   : > { %v3918_v12 = vmax.f32 %v3913_v11, %v3914_v4  ;;  %5445 = vmatprep.subr.bf16.mxu0 %v5668_v23  ;;  %v5678_v23 = vld [vmem:[%s8472_s11 + $0x38] sm:$0xff]  }
 0x463   : > { %3922 = vst.msk [vmem:[#allocation4 + $0x18] sm:$0xff] %vm664_vm5, %v3918_v12 }
 0x464   : > { %5446 = vmatpush3.bf16.msra.mxu0 %v5669_v15  ;;  %v4610_v15 = vld [vmem:[%s8473_s12] sm:$0xf] }
 0x465   : > { %5447 = vmatprep.subr.bf16.mxu0 %v5671_v57  ;;  %v5685_v57 = vld [vmem:[%s8472_s11] sm:$0xff]  }
 0x468   : > { %5448 = vmatpush3.bf16.msra.mxu0 %v5672_v17  ;;  %v5687_v17 = vld [vmem:[%s8476_s15 + $0x30] sm:$0xff]  }
 0x469   : > { %5449 = vmatprep.subr.bf16.mxu0 %v5674_v59  ;;  %v5689_v59 = vld [vmem:[%s8476_s15 + $0x20] sm:$0xff]  }
 0x46a   : > { %v3925_v24 = vld [vmem:[#allocation4 + $0x10] ss:$2 sm:$0xff]  ;;  %v3929_v5 = vld [vmem:[#allocation4 + $0x11] ss:$2 sm:$0xff] }
 0x46b   : > { %v3931_v45 = vmax.f32 %v3925_v24, %v3929_v5  ;;  %v4101_v5 = vld [vmem:[#allocation7 + $0x98] sm:$0xff] }
 0x46c   : > { %5450 = vmatpush3.bf16.msra.mxu0 %v5675_v44 }
 0x46d   : > { %3942 = vst.msk [vmem:[#allocation5 + $0x31] sm:$0xf] %vm3939_vm7, %v3931_v45  ;;  %v3935_v61 = vcombine.high %v3931_v45, %v3931_v45  ;;  %5524 = vmatprep.subr.bf16.mxu0 %v8934_v46 }
 0x46f   : > { %3943 = vst.msk [vmem:[#allocation5 + $0x41] sm:$0xf] %vm3939_vm7, %v3935_v61 }
 0x470   : > { %v3994_v20 = vpop.permute.xlu0 %3993 }
 0x471   : > { %4005 = vst.msk [vmem:[#allocation7 + $0x8] sm:$0xff] %vm3972_vm8, %v3994_v20 }
 0x472   : > { %v3996_v2 = vpop.permute.xlu1 %3995 }
 0x473   : > { %4006 = vst.msk [vmem:[#allocation7 + $0x30] sm:$0xff] %vm3972_vm8, %v3996_v2  ;;  %v5680_v2 = vld [vmem:[%s8472_s11 + $0x28] sm:$0xff]  }
 0x474   : > { %v3987_v9 = vld [vmem:[#allocation5 + $0x30] sm:$0xff]  ;;  %v3961_v41 = vpop.permute.xlu0 %3960 }
 0x475   : > { %v4051_v55 = vld [vmem:[#allocation5 + $0x31] sm:$0xff]  ;;  %3997 = vrot.lane.b32.xlu0 %v3987_v9, %s8867_s23  ;;  %4047 = vst.msk [vmem:[#allocation7 + $0x40] sm:$0xff] %vm664_vm5, %v3987_v9  ;;  %3951 = vst.msk [vmem:[#allocation7 + $0x78] sm:$0xff] %vm664_vm5, %v3987_v9  ;;  %v5681_v9 = vld [vmem:[%s8472_s11 + $0x20] sm:$0xff]  }
 0x476   : > { %v4019_v48 = vld [vmem:[#allocation5 + $0x32] sm:$0xff]  ;;  %4015 = vst.msk [vmem:[#allocation7 + $0x60] sm:$0xff] %vm664_vm5, %v4051_v55  ;;  %v3988_v29 = vld [vmem:[#allocation5 + $0x40] sm:$0xff]  ;;  %v3963_v34 = vpop.permute.xlu1 %3962 }
 0x477   : > { %3984 = vst.msk [vmem:[#allocation7 + $0x80] sm:$0xff] %vm664_vm5, %v4019_v48  ;;  %4079 = vst.msk [vmem:[#allocation7 + $0x48] sm:$0xff] %vm664_vm5, %v4019_v48  ;;  %v4052_v10 = vld [vmem:[#allocation5 + $0x41] sm:$0xff]  ;;  %3999 = vrot.lane.b32.xlu1 %v3988_v29, %s8867_s23 }
 0x478   : > { %v4020_v42 = vld [vmem:[#allocation5 + $0x42] sm:$0xff]  ;;  %3973 = vst.msk [vmem:[#allocation7] sm:$0xff] %vm3972_vm8, %v3961_v41  ;;  %3974 = vst.msk [vmem:[#allocation7 + $0x28] sm:$0xff] %vm3972_vm8, %v3963_v34  ;;  %v5686_v34 = vld [vmem:[%s8476_s15 + $0x38] sm:$0xff]  }
 0x479   : > { %4048 = vst.msk [vmem:[#allocation7 + $0x68] sm:$0xff] %vm664_vm5, %v3988_v29  ;;  %4016 = vst.msk [vmem:[#allocation7 + $0x88] sm:$0xff] %vm664_vm5, %v4052_v10  ;;  %4058 = vrot.lane.b32.xlu0 %v8165_v40, %s8867_s23  ;;  %v4083_v62 = vld [vmem:[#allocation7 + $0x8] sm:$0xff]  ;;  %v4616_v29 = vsel %vm4582_vm9, %v4610_v15, 0 }
 0x47a   : > { %4080 = vst.msk [vmem:[#allocation7 + $0x70] sm:$0xff] %vm664_vm5, %v4020_v42  ;;  %v4088_v26 = vld [vmem:[#allocation7 + $0x30] sm:$0xff]  ;;  %v5684_v41 = vld [vmem:[%s8472_s11 + $0x8] sm:$0xff]  }
 0x47b   : > { %4060 = vrot.lane.b32.xlu1 %v4051_v55, %s8867_s23  ;;  %v4103_v52 = vpack.c.bf16 %v4088_v26, %v4083_v62  ;;  %v5690_v62 = vld [vmem:[%s8476_s15 + $0x18] sm:$0xff]  }
 0x47d   : > { %3964 = vrot.lane.b32.xlu0 %v8165_v40, %s8867_s23  ;;  %4438 = vmatprep.mubr.bf16.mxu1 %v4103_v52  ;;  %v4053_v40 = vld [vmem:[#allocation5 + $0x51] sm:$0xff] }
 0x47e   : > { %v4091_v14 = vld [vmem:[#allocation7 + $0x48] sm:$0xff] }
 0x47f   : > { %v4082_v47 = vld [vmem:[#allocation7] sm:$0xff]  ;;  %3966 = vrot.lane.b32.xlu1 %v4051_v55, %s8867_s23  ;;  %v4087_v18 = vld [vmem:[#allocation7 + $0x28] sm:$0xff]  ;;  %v4106_v21 = vpack.c.bf16 %v4091_v14, %v4086_v28  ;;  %v5682_v55 = vld [vmem:[%s8472_s11 + $0x18] sm:$0xff]  }
 0x480   : > { %v4102_v49 = vpack.c.bf16 %v4087_v18, %v4082_v47 }
 0x481   : > { %4025 = vrot.lane.b32.xlu0 %v8155_v25, %s8867_s23  ;;  %v5676_v25 = vld [vmem:[%s8469_s8 + $0x108] sm:$0xff]   ;;  %v4096_v24 = vld [vmem:[#allocation7 + $0x70] sm:$0xff] }
 0x482   : > { %4439 = vmatmul.mubr.bf16.vlgmr.msra.gmra.mxu1 %v4102_v49  ;;  %v4111_v61 = vpack.c.bf16 %v4101_v5, %v4096_v24 }
 0x483   : > { %4027 = vrot.lane.b32.xlu1 %v8167_v36, %s8867_s23  ;;  %5507 = vmatpush3.bf16.msra.mxu1 %v5670_v3  ;;  %v5677_v36 = vld [vmem:[%s8469_s8 + $0x100] sm:$0xff]   ;;  %v5679_v3 = vld [vmem:[%s8472_s11 + $0x30] sm:$0xff]  }
 0x484   : > { %5508 = vmatprep.subr.bf16.mxu1 %v5673_v35 }
 0x485   : > { %4062 = vrot.lane.b32.xlu0 %v4052_v10, %s8867_s23  ;;  %v4592_v10 = vld [vmem:[%s640_s27] sm:$0x1] }
 0x487   : > { %4064 = vrot.lane.b32.xlu1 %v4053_v40, %s8867_s23  ;;  %5509 = vmatpush3.bf16.msra.mxu1 %v5673_v35 }
 0x488   : > { %5510 = vmatprep.subr.bf16.mxu1 %v5676_v25 }
 0x489   : > { %4029 = vrot.lane.b32.xlu0 %v4019_v48, %s8867_s23  ;;  %v5683_v48 = vld [vmem:[%s8472_s11 + $0x10] sm:$0xff]  }
 0x48b   : > { %4031 = vrot.lane.b32.xlu1 %v4020_v42, %s8867_s23  ;;  %5511 = vmatpush3.bf16.msra.mxu1 %v5676_v25  ;;  %v4593_v42 = vpack.c.bf16 %v4592_v10, %v4592_v10  ;;  %s5718_s23 = scalar_lea.vmem %s5717_s30, 32 }
 0x48c   : > { %5512 = vmatprep.subr.bf16.mxu1 %v5677_v36  ;;  %p5720_p1 = scmp.lt.s32.totalorder %s5718_s23, %s5712_s0 }
 0x48e   : > { %p5721_p2 = por %p5720_p1, %p5719_p0 }
 0x48f   : > { %5513 = vmatpush3.bf16.msra.mxu1 %v5677_v36 }
 0x490   : > { %5518 = vmatprep.subr.bf16.mxu1 %v8934_v46  ;;  %p5722_p3 = pnand %p5721_p2, %p5715_p13 }
 0x4e7   : > { %v3998_v63 = vpop.permute.xlu0 %3997 }
 0x4e8   : > { %4007 = vst.msk [vmem:[#allocation7 + $0x58] sm:$0xff] %vm3972_vm8, %v3998_v63 }
 0x4e9   : > { %v4000_v60 = vpop.permute.xlu1 %3999 }
 0x4ea   : > { %4008 = vst.msk [vmem:[#allocation7 + $0x80] sm:$0xff] %vm3972_vm8, %v4000_v60 }
 0x4eb   : > { %v4059_v7 = vpop.permute.xlu0 %4058 }
 0x4ec   : > { %4070 = vst.msk [vmem:[#allocation7 + $0x18] sm:$0xff] %vm3972_vm8, %v4059_v7 }
 0x4ed   : > { %v4061_v31 = vpop.permute.xlu1 %4060 }
 0x4ee   : > { %4071 = vst.msk [vmem:[#allocation7 + $0x40] sm:$0xff] %vm3972_vm8, %v4061_v31 }
 0x4ef   : > { %v3965_v16 = vpop.permute.xlu0 %3964  ;;  %v4093_v54 = vld [vmem:[#allocation7 + $0x58] sm:$0xff] }
 0x4f0   : > { %3975 = vst.msk [vmem:[#allocation7 + $0x50] sm:$0xff] %vm3972_vm8, %v3965_v16 }
 0x4f1   : > { %v3967_v51 = vpop.permute.xlu1 %3966  ;;  %v4098_v0 = vld [vmem:[#allocation7 + $0x80] sm:$0xff] }
 0x4f2   : > { %3976 = vst.msk [vmem:[#allocation7 + $0x78] sm:$0xff] %vm3972_vm8, %v3967_v51  ;;  %v4108_v53 = vpack.c.bf16 %v4098_v0, %v4093_v54 }
 0x4f3   : > { %v4026_v8 = vpop.permute.xlu0 %4025  ;;  %v4085_v13 = vld [vmem:[#allocation7 + $0x18] sm:$0xff] }
 0x4f4   : > { %4037 = vst.msk [vmem:[#allocation7 + $0x10] sm:$0xff] %vm3972_vm8, %v4026_v8  ;;  %4446 = vmatprep.mubr.bf16.mxu1 %v4108_v53 }
 0x4f5   : > { %v4028_v32 = vpop.permute.xlu1 %4027  ;;  %v4090_v22 = vld [vmem:[#allocation7 + $0x40] sm:$0xff] }
 0x4f6   : > { %4038 = vst.msk [vmem:[#allocation7 + $0x38] sm:$0xff] %vm3972_vm8, %v4028_v32  ;;  %v4105_v56 = vpack.c.bf16 %v4090_v22, %v4085_v13 }
 0x4f7   : > { %v4063_v39 = vpop.permute.xlu0 %4062  ;;  %v4092_v58 = vld [vmem:[#allocation7 + $0x50] sm:$0xff] }
 0x4f8   : > { %4072 = vst.msk [vmem:[#allocation7 + $0x68] sm:$0xff] %vm3972_vm8, %v4063_v39  ;;  %4487 = vmatprep.mubr.bf16.mxu0 %v4105_v56  ;;  %v5334_v56 = vld [vmem:[%s8470_s9] ss:$0 sm:$0xff] }
 0x4f9   : > { %v4065_v38 = vpop.permute.xlu1 %4064  ;;  %v4097_v1 = vld [vmem:[#allocation7 + $0x78] sm:$0xff] }
 0x4fa   : > { %4073 = vst.msk [vmem:[#allocation7 + $0x90] sm:$0xff] %vm3972_vm8, %v4065_v38  ;;  %v4107_v6 = vpack.c.bf16 %v4097_v1, %v4092_v58 }
 0x4fb   : > { %v4030_v43 = vpop.permute.xlu0 %4029  ;;  %v4084_v4 = vld [vmem:[#allocation7 + $0x10] sm:$0xff] }
 0x4fc   : > { %4039 = vst.msk [vmem:[#allocation7 + $0x60] sm:$0xff] %vm3972_vm8, %v4030_v43  ;;  %4447 = vmatmul.mubr.bf16.gmra.mxu1 %v4107_v6 }
 0x4fd   : > { %v4032_v11 = vpop.permute.xlu1 %4031  ;;  %5514 = vmatprep.mubr.msk.bf16.mxu1 %vm664_vm5, %v4106_v21  ;;  %v4089_v12 = vld [vmem:[#allocation7 + $0x38] sm:$0xff] }
 0x4fe   : > { %4040 = vst.msk [vmem:[#allocation7 + $0x88] sm:$0xff] %vm3972_vm8, %v4032_v11  ;;  %v4104_v30 = vpack.c.bf16 %v4089_v12, %v4084_v4  ;;  %v5335_v11 = vld [vmem:[%s8471_s10] ss:$0 sm:$0xff] }
 0x4ff   : > { %v4095_v33 = vld [vmem:[#allocation7 + $0x68] sm:$0xff] }
 0x500   : > { %4488 = vmatmul.mubr.bf16.vlgmr.msra.gmra.mxu0 %v4104_v30 }
 0x501   : > { %v4100_v45 = vld [vmem:[#allocation7 + $0x90] sm:$0xff]  ;;  %5525 = vmatpush3.bf16.msra.mxu0 %v5678_v23 }
 0x502   : > { %v4110_v50 = vpack.c.bf16 %v4100_v45, %v4095_v33  ;;  %5526 = vmatprep.subr.bf16.mxu0 %v8934_v46 }
 0x503   : > { %v4094_v37 = vld [vmem:[#allocation7 + $0x60] sm:$0xff] }
 0x504   : > { %4495 = vmatprep.mubr.bf16.mxu0 %v4110_v50  ;;  %5515 = vmatmul.mubr.msk.bf16.vlgmr.msra.gmra.mxu1 %vm664_vm5, %v4111_v61 }
 0x505   : > { %v4099_v27 = vld [vmem:[#allocation7 + $0x88] sm:$0xff]  ;;  %5527 = vmatpush3.bf16.msra.mxu0 %v5679_v3  ;;  %5519 = vmatpush3.bf16.msra.mxu1 %v4616_v29 }
 0x506   : > { %v4109_v20 = vpack.c.bf16 %v4099_v27, %v4094_v37  ;;  %5528 = vmatprep.subr.bf16.mxu0 %v8934_v46  ;;  %5544 = vmatprep.subr.bf16.mxu1 %v8934_v46 }
 0x507   : > { %5520 = vmatprep.mubr.msk.bf16.mxu1 %vm5779_vm10, %v8934_v46 }
 0x508   : > { %4496 = vmatmul.mubr.bf16.gmra.mxu0 %v4109_v20 }
 0x509   : > { %5529 = vmatpush3.bf16.msra.mxu0 %v5680_v2  ;;  %5540 = vmatprep.mubr.msk.bf16.mxu0 %vm5779_vm10, %v8934_v46 }
 0x50a   : > { %5530 = vmatprep.subr.bf16.mxu0 %v8934_v46 }
 0x50c   : > { %5521 = vmatmul.mubr.msk.bf16.vlgmr.msra.gmra.mxu1 %vm4611_vm11, %v4593_v42 }
 0x50d   : > { %5531 = vmatpush3.bf16.msra.mxu0 %v5681_v9  ;;  %5560 = vmatprep.mubr.msk.bf16.mxu1 %vm5779_vm10, %v8934_v46 }
 0x50e   : > { %5532 = vmatprep.subr.bf16.mxu0 %v8934_v46  ;;  %5545 = vmatpush3.bf16.msra.mxu1 %v5686_v34 }
 0x50f   : > { %5546 = vmatprep.subr.bf16.mxu1 %v8934_v46 }
 0x511   : > { %5533 = vmatpush3.bf16.msra.mxu0 %v5682_v55 }
 0x512   : > { %5534 = vmatprep.subr.bf16.mxu0 %v8934_v46  ;;  %5547 = vmatpush3.bf16.msra.mxu1 %v5687_v17 }
 0x513   : > { %5548 = vmatprep.subr.bf16.mxu1 %v8934_v46 }
 0x515   : > { %5535 = vmatpush3.bf16.msra.mxu0 %v5683_v48 }
 0x516   : > { %5536 = vmatprep.subr.bf16.mxu0 %v8934_v46  ;;  %5549 = vmatpush3.bf16.msra.mxu1 %v5688_v19 }
 0x517   : > { %5550 = vmatprep.subr.bf16.mxu1 %v8934_v46 }
 0x519   : > { %5537 = vmatpush3.bf16.msra.mxu0 %v5684_v41 }
 0x51a   : > { %5538 = vmatprep.subr.bf16.mxu0 %v8934_v46  ;;  %5551 = vmatpush3.bf16.msra.mxu1 %v5689_v59 }
 0x51b   : > { %5552 = vmatprep.subr.bf16.mxu1 %v8934_v46 }
 0x51d   : > { %5539 = vmatpush3.bf16.msra.mxu0 %v5685_v57 }
 0x51e   : > { %5564 = vmatprep.subr.bf16.mxu0 %v8934_v46  ;;  %5553 = vmatpush3.bf16.msra.mxu1 %v5690_v62 }
 0x51f   : > { %5554 = vmatprep.subr.bf16.mxu1 %v8934_v46 }
 0x542   : > { %v5423_v26 = vpop.f32.mrf.mxu1 }
 0x544   : > { %v5424_v44 = vpop.f32.mrf.mxu1 }
 0x545   : > { %v5425_v63 = vadd.f32 %v5424_v44, %v5423_v26 }
 0x546   : > { %v5426_v52 = vpop.f32.mrf.mxu1 }
 0x548   : > { %v5427_v47 = vpop.f32.mrf.mxu1 }
 0x549   : > { %v5428_v0 = vadd.f32 %v5427_v47, %v5426_v52  ;;  %v5691_v52 = vld [vmem:[%s8476_s15 + $0x10] sm:$0xff]  }
 0x54a   : > { %5555 = vmatpush3.bf16.msra.mxu1 %v5691_v52 }
 0x54b   : > { %5556 = vmatprep.subr.bf16.mxu1 %v8934_v46 }
 0x5bc   : > { %v5429_v18 = vpop.f32.mrf.mxu1 }
 0x5be   : > { %v5430_v49 = vpop.f32.mrf.mxu1 }
 0x5bf   : > { %v5431_v38 = vadd.f32 %v5430_v49, %v5429_v18  ;;  %v5692_v18 = vld [vmem:[%s8476_s15 + $0x8] sm:$0xff]   ;;  %v5693_v49 = vld [vmem:[%s8476_s15] sm:$0xff]  }
 0x5c0   : > { %v5432_v35 = vpop.f32.mrf.mxu1  ;;  %v5451_v40 = vpop.f32.mrf.mxu0  ;;  %5557 = vmatpush3.bf16.msra.mxu1 %v5692_v18 }
 0x5c1   : > { %5558 = vmatprep.subr.bf16.mxu1 %v8934_v46 }
 0x5c2   : > { %v5433_v25 = vpop.f32.mrf.mxu1  ;;  %v5452_v36 = vpop.f32.mrf.mxu0 }
 0x5c3   : > { %v5453_v60 = vadd.f32 %v5452_v36, %v5451_v40  ;;  %v5434_v12 = vadd.f32 %v5433_v25, %v5432_v35  ;;  %v5694_v35 = vld [vmem:[%s8479_s18 + $0x18] sm:$0xff]   ;;  %v5695_v40 = vld [vmem:[%s8479_s18 + $0x10] sm:$0xff]   ;;  %v4746_v36 = vld [vmem:[%s8474_s13] sm:$0x1] }
 0x5c4   : > { %v5454_v7 = vpop.f32.mrf.mxu0  ;;  %v5516_v31 = vpop.f32.mrf.mxu1  ;;  %5559 = vmatpush3.bf16.msra.mxu1 %v5693_v49 }
 0x5c5   : > { %v4490_v16 = vadd.f32 %v5453_v60, %v5425_v63  ;;  %v4748_v60 = vld [vmem:[%s8475_s14] sm:$0x1] }
 0x5c6   : > { %v5455_v51 = vpop.f32.mrf.mxu0  ;;  %v4538_v54 = vpop.f32.mrf.mxu1 }
 0x5c7   : > { %v5456_v53 = vadd.f32 %v5455_v51, %v5454_v7  ;;  %v4539_v13 = vadd.f32 %v4538_v54, %v4490_v16 }
 0x5c8   : > { %v5457_v8 = vpop.f32.mrf.mxu0  ;;  %v5517_v32 = vpop.f32.mrf.mxu1 }
 0x5c9   : > { %v4493_v22 = vadd.f32 %v5456_v53, %v5428_v0  ;;  %v4560_v28 = vmul.f32 %v5334_v56, %v4539_v13  ;;  %v4856_v13 = vld [vmem:[%s8477_s16] sm:$0x1] }
 0x5ca   : > { %v5458_v39 = vpop.f32.mrf.mxu0  ;;  %v4541_v14 = vpop.f32.mrf.mxu1 }
 0x5cb   : > { %v5459_v58 = vadd.f32 %v5458_v39, %v5457_v8  ;;  %v4542_v1 = vadd.f32 %v4541_v14, %v4493_v22  ;;  %v4571_v33 = vadd.f32 %v5335_v11, %v4560_v28  ;;  %v5696_v8 = vld [vmem:[%s8479_s18 + $0x8] sm:$0xff]   ;;  %v4870_v28 = vld [vmem:[%s8480_s19] sm:$0x1] }
 0x5cc   : > { %v5460_v6 = vpop.f32.mrf.mxu0  ;;  %v4652_v62 = vpop.f32.mrf.mxu1 }
 0x5cd   : > { %v4498_v43 = vadd.f32 %v5459_v58, %v5431_v38  ;;  %v4561_v21 = vmul.f32 %v5334_v56, %v4542_v1  ;;  %v4575_v20 = vmax.f32 %v4571_v33, 0.0 }
 0x5ce   : > { %v5461_v4 = vpop.f32.mrf.mxu0  ;;  %v5522_v26 = vpop.f32.mrf.mxu1 }
 0x5cf   : > { %v4547_v30 = vadd.f32 %v5516_v31, %v4498_v43  ;;  %v4572_v24 = vadd.f32 %v5335_v11, %v4561_v21  ;;  %v5462_v5 = vadd.f32 %v5461_v4, %v5460_v6 }
 0x5d0   : > { %v4655_v44 = vpop.f32.mrf.mxu1 }
 0x5d1   : > { %v4562_v45 = vmul.f32 %v5334_v56, %v4547_v30  ;;  %v4501_v50 = vadd.f32 %v5462_v5, %v5434_v12  ;;  %v4576_v37 = vmax.f32 %v4572_v24, 0.0 }
 0x5d2   : > { %v5523_v47 = vpop.f32.mrf.mxu1 }
 0x5d3   : > { %v4573_v61 = vadd.f32 %v5335_v11, %v4562_v45  ;;  %v4550_v27 = vadd.f32 %v5517_v32, %v4501_v50  ;;  %v4579_v2 = vadd.f32 %v4576_v37, %v4575_v20  ;;  %v5697_v32 = vld [vmem:[%s8479_s18] sm:$0xff]  }
 0x5d5   : > { %v4577_v23 = vmax.f32 %v4573_v61, 0.0  ;;  %v4563_v3 = vmul.f32 %v5334_v56, %v4550_v27  ;;  %v4858_v56 = vld [vmem:[%s8478_s17] sm:$0x1] }
 0x5d7   : > { %v4574_v9 = vadd.f32 %v5335_v11, %v4563_v3  ;;  %v4580_v55 = vadd.f32 %v4579_v2, %v4577_v23 }
 0x5d9   : > { %v4578_v48 = vmax.f32 %v4574_v9, 0.0 }
 0x5db   : > { %v4581_v15 = vadd.f32 %v4580_v55, %v4578_v48 }
 0x5dd   : > { %v4583_v29 = vsel %vm4582_vm9, %v4581_v15, 0.0 }
 0x5de   : > { %v4584_v41 = vrot.slane %v4583_v29, 4 }
 0x5e0   : > { %v4585_v10 = vadd.f32 %v4584_v41, %v4583_v29 }
 0x5e2   : > { %v4586_v42 = vrot.slane %v4585_v10, 2 }
 0x5e4   : > { %v4587_v57 = vadd.f32 %v4586_v42, %v4585_v10 }
 0x5e6   : > { %v4588_v34 = vrot.slane %v4587_v57, 1 }
 0x5e8   : > { %v4589_v17 = vadd.f32 %v4588_v34, %v4587_v57 }
 0x5ea   : > { %v4590_v19 = vmul.f32 0.0625, %v4589_v17 }
 0x5ec   : > { %v4591_v59 = vpack.c.bf16 %v4590_v19, %v4590_v19 }
 0x5ee   : > { %5541 = vmatmul.mubr.bf16.vlgmr.msra.gmra.mxu0 %v4591_v59 }
 0x5ef   : > { %5572 = vmatprep.mubr.msk.bf16.mxu0 %vm5779_vm10, %v8934_v46  ;;  %5565 = vmatpush3.bf16.msra.mxu0 %v5694_v35 }
 0x5f0   : > { %5566 = vmatprep.subr.bf16.mxu0 %v8934_v46 }
 0x5f3   : > { %5567 = vmatpush3.bf16.msra.mxu0 %v5695_v40 }
 0x5f4   : > { %5568 = vmatprep.subr.bf16.mxu0 %v8934_v46 }
 0x5f7   : > { %5569 = vmatpush3.bf16.msra.mxu0 %v5696_v8 }
 0x5f8   : > { %5570 = vmatprep.subr.bf16.mxu0 %v8934_v46 }
 0x5fb   : > { %5571 = vmatpush3.bf16.msra.mxu0 %v5697_v32 }
 0x6ae   : > { %v4740_v25 = vpop.f32.mrf.mxu0 }
 0x6af   : > { %v4741_v63 = vadd.f32 %v4740_v25, %v4652_v62 }
 0x6b0   : > { %v5542_v7 = vpop.f32.mrf.mxu0 }
 0x6b1   : > { %v4747_v31 = vmul.f32 %v4746_v36, %v4741_v63 }
 0x6b2   : > { %v4743_v16 = vpop.f32.mrf.mxu0 }
 0x6b3   : > { %v4749_v51 = vadd.f32 %v4748_v60, %v4747_v31 }
 0x6b4   : > { %v5543_v54 = vpop.f32.mrf.mxu0 }
 0x6b5   : > { %v4750_v0 = vmax.f32 %v4749_v51, 0.0 }
 0x6b7   : > { %v4751_v53 = vpack.c.bf16 %v4750_v0, %v4750_v0 }
 0x6b9   : > { %5561 = vmatmul.mubr.bf16.vlgmr.msra.gmra.mxu1 %v4751_v53 }
 0x779   : > { %v4850_v22 = vpop.f32.mrf.mxu1 }
 0x77a   : > { %v4857_v39 = vmul.f32 %v4856_v13, %v4850_v22 }
 0x77b   : > { %v5562_v14 = vpop.f32.mrf.mxu1 }
 0x77c   : > { %v4859_v38 = vadd.f32 %v4858_v56, %v4857_v39 }
 0x77d   : > { %v4853_v58 = vpop.f32.mrf.mxu1 }
 0x77e   : > { %v4860_v46 = vmax.f32 %v4859_v38, 0.0 }
 0x77f   : > { %v5563_v1 = vpop.f32.mrf.mxu1 }
 0x780   : > { %v4861_v6 = vpack.c.bf16 %v4860_v46, %v4860_v46 }
 0x782   : > { %5573 = vmatmul.mubr.msk.bf16.vlgmr.msra.gmra.mxu0 %vm664_vm5, %v4861_v6 }
 0x842   : > { %v4932_v43 = vpop.f32.mrf.mxu0 }
 0x843   : > { %v4933_v21 = vadd.f32 %v4932_v43, %v4870_v28 }
 0x844   : > { %v5574_v11 = vpop.f32.mrf.mxu0 }
 0x845   : > { %4938 = vst [vmem:[%s632_s3] sm:$0x1] %v4933_v21 }
 0x846   : > { %v4935_v4 = vpop.f32.mrf.mxu0 }
 0x847   : > { %5725 = shalt.err (!%p5722_p3)
}
 0x848   : > { %s5726_s7 = scalar_lea.hbm %s8420_s5, 16  ;;  %s5730_s3 = scalar_lea.hbm %s8481_s20, 32 }
 0x849   : > { %p5727_p4 = scmp.ne.s32.totalorder %s8420_s5, %s5726_s7  ;;  %p5731_p9 = scmp.lt.s32.totalorder %s8420_s5, %s8481_s20 }
 0x84a   : > { %p5732_p10 = scmp.lt.s32.totalorder %s5730_s3, %s5726_s7 }
 0x84b   : > { %p5728_p7 = pnand %p5727_p4, %p5924_p5 }
 0x84c   : > { %p5733_p11 = por %p5732_p10, %p5731_p9 }
 0x84d   : > { %p5729_p8 = pneg %p5728_p7 }
 0x84f   : > { %p5734_p12 = pnand %p5733_p11, %p5729_p8 }
 0x851   : > { %5737 = shalt.err (!%p5734_p12)
}
 0x852   : > { %5577 = dma.vmem_to_hbm [thread:$0]  (%p5924_p5), %s8422_s21, 16, %s8420_s5, %s4940_s6   ;;  %v5575_v12 = vpop.f32.mrf.mxu0 }
 0x853 PF: > { %s8938_s0 = sld [smem:[#allocation11_spill]]  ;;  %p5583_p13 = scmp.ge.s32.totalorder %s5772_s24, 2 }
 0x855   : > { %p5580_p0 = pnand %p5583_p13, %p5928_p6 }
 0x857   : > { %p5581_p1 = pneg %p5580_p0 }
 0x859   : > { %s4964_s30 = sand.u32 1, %s8938_s0  }
 0x85a   : > { %s4965_s23 = scalar_lea.sflag [#allocation9], %s4964_s30 }
 0x85b   : > { %5755 = dma.done.wait (%p5581_p1), %s4965_s23, 16  }
 0x85c   : > { %5757 = vsyncadd (%p5581_p1), %s4965_s23, 4294967280  ;;  %s8940_s24 = sld [smem:[#allocation13_spill]]  ;;  %s8943_s1 = smov %s5764_s22 }
 0x85d   : > { %s8941_s7 = sld [smem:[#allocation12_spill]] }
 0x85e   : > { %s8942_s23 = sld [smem:[#allocation14_spill]] }
 0x862   : > { %p30_p2 = scmp.ge.s32.totalorder %s8940_s24, 4  }
 0x863   : > { %s8944_s22 = smov %s8941_s7 }
 0x864   :  { %32 = sbr.rel (!%p30_p2) target bundleno = 12 (0xc), region = 158 }
 0x869   :  { %4969 = vsyncpa [#allocation9], 1 }
 0x86a   :  { %4971 = vsyncpa [#allocation9 + $0x1], 1 }

</bundles_post_ra>
